<compile_context>
chip_gen: v7x
topology: tpu7x:2x2x1
jax: 0.10.0
libtpu: 0.0.40
codegen_flags: <defaults>
</compile_context>

<pallas_src>
import jax
import jax.numpy as jnp
from jax.experimental import pallas as pl
from jax.experimental.pallas import tpu as pltpu

POOL_SIZES = (5, 9, 13)  # module spec; implemented as a cascade of 5x5 pools


def _neg_fill(dtype):
    """Identity element for max (−inf for floats, dtype-min for ints)."""
    if jnp.issubdtype(dtype, jnp.floating):
        return jnp.asarray(-jnp.inf, dtype)
    return jnp.asarray(jnp.iinfo(dtype).min, dtype)


def _axis_window_max(x, axis, radius):
    """Stride-1 'same' max over a (2*radius+1) window along `axis`.

    Boundary handled as -inf padding (PyTorch MaxPool2d semantics), but
    without materializing padded buffers: static roll + iota edge mask.
    """
    n = x.shape[axis]
    neg = _neg_fill(x.dtype)
    idx = jax.lax.broadcasted_iota(jnp.int32, x.shape, axis)
    out = x
    for d in range(-radius, radius + 1):
        if d == 0:
            continue
        # shifted[i] = x[i + d]  (valid only where 0 <= i + d < n)
        shifted = jnp.roll(x, -d, axis=axis)
        valid = (idx >= -d) & (idx < n - d)
        out = jnp.maximum(out, jnp.where(valid, shifted, neg))
    return out


def _maxpool5_same(x):
    """Separable 5x5 stride-1 'same' max pool over (H, W) of an (H, W, C) tile."""
    x = _axis_window_max(x, axis=0, radius=2)  # rows (outer dim)
    x = _axis_window_max(x, axis=1, radius=2)  # cols (sublane dim)
    return x


def _spp_kernel(x_ref, o_ref):
    # x_ref: (H, W, Ct)   channels on lanes
    # o_ref: (4, H, W, Ct) branch order [pool13, pool9, pool5, identity]
    x = x_ref[...]
    o_ref[3] = x                      # identity branch, streamed out first
    p5 = _maxpool5_same(x)            # == maxpool5(x)
    o_ref[2] = p5
    p9 = _maxpool5_same(p5)           # 5∘5 == maxpool9(x)   (SPPF cascade)
    o_ref[1] = p9
    p13 = _maxpool5_same(p9)          # 5∘5∘5 == maxpool13(x)
    o_ref[0] = p13


def spatial_pyramid_pooling(x):
    """x: (B, C, H, W) -> (B, 4*C, H, W), channel order [pool13, pool9, pool5, x]."""
    B, C, H, W = x.shape

    # Channels to the lane axis (layout plumbing outside the kernel).
    x_l = jnp.transpose(x, (0, 2, 3, 1))  # (B, H, W, C)

    # Lane-dense channel tile: multiples of 128 when possible, else full C.
    c_tile = 128 if (C >= 128 and C % 128 == 0) else C
    grid = (B, C // c_tile)

    out = pl.pallas_call(
        _spp_kernel,
        out_shape=jax.ShapeDtypeStruct((4, B, H, W, C), x.dtype),
        grid_spec=pltpu.PrefetchScalarGridSpec(
            num_scalar_prefetch=0,
            grid=grid,
            in_specs=[
                pl.BlockSpec(
                    (pl.Squeezed(), H, W, c_tile),
                    lambda b, c: (b, 0, 0, c),
                ),
            ],
            out_specs=pl.BlockSpec(
                (4, pl.Squeezed(), H, W, c_tile),
                lambda b, c: (0, b, 0, 0, c),
            ),
        ),
        compiler_params=pltpu.CompilerParams(
            dimension_semantics=("parallel", "parallel"),
        ),
    )(x_l)

    # (4, B, H, W, C) -> (B, 4, C, H, W) -> (B, 4*C, H, W)
    out = jnp.transpose(out, (1, 0, 4, 2, 3))
    return out.reshape(B, 4 * C, H, W)


def _reference_spp(x):
    """Pure-JAX reference (lax.reduce_window) for correctness checking."""
    def pool(x, k):
        p = k // 2
        return jax.lax.reduce_window(
            x, -jnp.inf, jax.lax.max,
            window_dimensions=(1, 1, k, k),
            window_strides=(1, 1, 1, 1),
            padding=[(0, 0), (0, 0), (p, p), (p, p)],
        )
    feats = [pool(x, k) for k in POOL_SIZES[::-1]] + [x]
    return jnp.concatenate(feats, axis=1)


if __name__ == "__main__":
    key = jax.random.PRNGKey(0)
    x = jax.random.normal(key, (2, 4, 16, 16), dtype=jnp.float32)

    out = jax.block_until_ready(spatial_pyramid_pooling(x))
    ref = jax.block_until_ready(_reference_spp(x))

    assert out.shape == (2, 16, 16, 16), out.shape
    assert out.dtype == x.dtype
    assert jnp.allclose(out, ref), "Pallas SPP output does not match reference"

    print("KERNEL_OK")
</pallas_src>

<mosaic_0001>
module attributes {stable_mosaic.version = 11 : i64} {
  func.func @_spp_kernel(%arg0: i32, %arg1: i32, %arg2: memref<1x16x16x4xf32, #tpu.memory_space<vmem>>, %arg3: memref<4x1x16x16x4xf32, #tpu.memory_space<vmem>>) attributes {dimension_semantics = [#tpu.dimension_semantics<parallel>, #tpu.dimension_semantics<parallel>], iteration_bounds = array<i64: 2, 1>, scalar_prefetch = 0 : i64, scratch_operands = 0 : i64, tpu.core_type = #tpu.core_type<tc>, window_params = [{transform_indices = @transform_0, window_bounds = array<i64: 1, 16, 16, 4>}, {transform_indices = @transform_1, window_bounds = array<i64: 4, 1, 16, 16, 4>}]} {
    %c0 = arith.constant 0 : index
    %c0_0 = arith.constant 0 : index
    %c0_1 = arith.constant 0 : index
    %c0_2 = arith.constant 0 : index
    %0 = vector.load %arg2[%c0, %c0_0, %c0_1, %c0_2] : memref<1x16x16x4xf32, #tpu.memory_space<vmem>>, vector<1x16x16x4xf32>
    %1 = vector.shape_cast %0 : vector<1x16x16x4xf32> to vector<16x16x4xf32>
    %c3 = arith.constant 3 : index
    %c0_3 = arith.constant 0 : index
    %c0_4 = arith.constant 0 : index
    %c0_5 = arith.constant 0 : index
    %c0_6 = arith.constant 0 : index
    %2 = vector.load %arg3[%c3, %c0_3, %c0_4, %c0_5, %c0_6] : memref<4x1x16x16x4xf32, #tpu.memory_space<vmem>>, vector<1x1x16x16x4xf32>
    %3 = vector.shape_cast %2 : vector<1x1x16x16x4xf32> to vector<16x16x4xf32>
    %4 = vector.shape_cast %1 : vector<16x16x4xf32> to vector<1x1x16x16x4xf32>
    tpu.vector_store %arg3[%c3, %c0_3, %c0_4, %c0_5, %c0_6], %4 {strides = array<i32>} : memref<4x1x16x16x4xf32, #tpu.memory_space<vmem>>, vector<1x1x16x16x4xf32>,
    %5 = tpu.iota {dimensions = array<i32: 0>} : vector<16x16x4xi32>
    %6 = vector.extract_strided_slice %1 {offsets = [14, 0, 0], sizes = [2, 16, 4], strides = [1, 1, 1]} : vector<16x16x4xf32> to vector<2x16x4xf32>
    %7 = vector.extract_strided_slice %1 {offsets = [0, 0, 0], sizes = [14, 16, 4], strides = [1, 1, 1]} : vector<16x16x4xf32> to vector<14x16x4xf32>
    %8 = tpu.concatenate %6, %7 in 0 : vector<2x16x4xf32>, vector<14x16x4xf32> -> vector<16x16x4xf32>
    %c2_i32 = arith.constant 2 : i32
    %9 = vector.broadcast %c2_i32 : i32 to vector<16x16x4xi32>
    %10 = arith.cmpi sge, %5, %9 : vector<16x16x4xi32>
    %c18_i32 = arith.constant 18 : i32
    %11 = vector.broadcast %c18_i32 : i32 to vector<16x16x4xi32>
    %12 = arith.cmpi slt, %5, %11 : vector<16x16x4xi32>
    %13 = arith.andi %10, %12 : vector<16x16x4xi1>
    %cst = arith.constant 0xFF800000 : f32
    %14 = vector.broadcast %cst : f32 to vector<16x16x4xf32>
    %15 = arith.select %13, %8, %14 : vector<16x16x4xi1>, vector<16x16x4xf32>
    %16 = arith.maximumf %1, %15 : vector<16x16x4xf32>
    %17 = vector.extract_strided_slice %1 {offsets = [15, 0, 0], sizes = [1, 16, 4], strides = [1, 1, 1]} : vector<16x16x4xf32> to vector<1x16x4xf32>
    %18 = vector.extract_strided_slice %1 {offsets = [0, 0, 0], sizes = [15, 16, 4], strides = [1, 1, 1]} : vector<16x16x4xf32> to vector<15x16x4xf32>
    %19 = tpu.concatenate %17, %18 in 0 : vector<1x16x4xf32>, vector<15x16x4xf32> -> vector<16x16x4xf32>
    %c1_i32 = arith.constant 1 : i32
    %20 = vector.broadcast %c1_i32 : i32 to vector<16x16x4xi32>
    %21 = arith.cmpi sge, %5, %20 : vector<16x16x4xi32>
    %c17_i32 = arith.constant 17 : i32
    %22 = vector.broadcast %c17_i32 : i32 to vector<16x16x4xi32>
    %23 = arith.cmpi slt, %5, %22 : vector<16x16x4xi32>
    %24 = arith.andi %21, %23 : vector<16x16x4xi1>
    %cst_7 = arith.constant 0xFF800000 : f32
    %25 = vector.broadcast %cst_7 : f32 to vector<16x16x4xf32>
    %26 = arith.select %24, %19, %25 : vector<16x16x4xi1>, vector<16x16x4xf32>
    %27 = arith.maximumf %16, %26 : vector<16x16x4xf32>
    %28 = vector.extract_strided_slice %1 {offsets = [1, 0, 0], sizes = [15, 16, 4], strides = [1, 1, 1]} : vector<16x16x4xf32> to vector<15x16x4xf32>
    %29 = vector.extract_strided_slice %1 {offsets = [0, 0, 0], sizes = [1, 16, 4], strides = [1, 1, 1]} : vector<16x16x4xf32> to vector<1x16x4xf32>
    %30 = tpu.concatenate %28, %29 in 0 : vector<15x16x4xf32>, vector<1x16x4xf32> -> vector<16x16x4xf32>
    %c-1_i32 = arith.constant -1 : i32
    %31 = vector.broadcast %c-1_i32 : i32 to vector<16x16x4xi32>
    %32 = arith.cmpi sge, %5, %31 : vector<16x16x4xi32>
    %c15_i32 = arith.constant 15 : i32
    %33 = vector.broadcast %c15_i32 : i32 to vector<16x16x4xi32>
    %34 = arith.cmpi slt, %5, %33 : vector<16x16x4xi32>
    %35 = arith.andi %32, %34 : vector<16x16x4xi1>
    %cst_8 = arith.constant 0xFF800000 : f32
    %36 = vector.broadcast %cst_8 : f32 to vector<16x16x4xf32>
    %37 = arith.select %35, %30, %36 : vector<16x16x4xi1>, vector<16x16x4xf32>
    %38 = arith.maximumf %27, %37 : vector<16x16x4xf32>
    %39 = vector.extract_strided_slice %1 {offsets = [2, 0, 0], sizes = [14, 16, 4], strides = [1, 1, 1]} : vector<16x16x4xf32> to vector<14x16x4xf32>
    %40 = vector.extract_strided_slice %1 {offsets = [0, 0, 0], sizes = [2, 16, 4], strides = [1, 1, 1]} : vector<16x16x4xf32> to vector<2x16x4xf32>
    %41 = tpu.concatenate %39, %40 in 0 : vector<14x16x4xf32>, vector<2x16x4xf32> -> vector<16x16x4xf32>
    %c-2_i32 = arith.constant -2 : i32
    %42 = vector.broadcast %c-2_i32 : i32 to vector<16x16x4xi32>
    %43 = arith.cmpi sge, %5, %42 : vector<16x16x4xi32>
    %c14_i32 = arith.constant 14 : i32
    %44 = vector.broadcast %c14_i32 : i32 to vector<16x16x4xi32>
    %45 = arith.cmpi slt, %5, %44 : vector<16x16x4xi32>
    %46 = arith.andi %43, %45 : vector<16x16x4xi1>
    %cst_9 = arith.constant 0xFF800000 : f32
    %47 = vector.broadcast %cst_9 : f32 to vector<16x16x4xf32>
    %48 = arith.select %46, %41, %47 : vector<16x16x4xi1>, vector<16x16x4xf32>
    %49 = arith.maximumf %38, %48 : vector<16x16x4xf32>
    %50 = tpu.iota {dimensions = array<i32: 1>} : vector<16x16x4xi32>
    %51 = vector.extract_strided_slice %49 {offsets = [0, 14, 0], sizes = [16, 2, 4], strides = [1, 1, 1]} : vector<16x16x4xf32> to vector<16x2x4xf32>
    %52 = vector.extract_strided_slice %49 {offsets = [0, 0, 0], sizes = [16, 14, 4], strides = [1, 1, 1]} : vector<16x16x4xf32> to vector<16x14x4xf32>
    %53 = tpu.concatenate %51, %52 in 1 : vector<16x2x4xf32>, vector<16x14x4xf32> -> vector<16x16x4xf32>
    %c2_i32_10 = arith.constant 2 : i32
    %54 = vector.broadcast %c2_i32_10 : i32 to vector<16x16x4xi32>
    %55 = arith.cmpi sge, %50, %54 : vector<16x16x4xi32>
    %c18_i32_11 = arith.constant 18 : i32
    %56 = vector.broadcast %c18_i32_11 : i32 to vector<16x16x4xi32>
    %57 = arith.cmpi slt, %50, %56 : vector<16x16x4xi32>
    %58 = arith.andi %55, %57 : vector<16x16x4xi1>
    %cst_12 = arith.constant 0xFF800000 : f32
    %59 = vector.broadcast %cst_12 : f32 to vector<16x16x4xf32>
    %60 = arith.select %58, %53, %59 : vector<16x16x4xi1>, vector<16x16x4xf32>
    %61 = arith.maximumf %49, %60 : vector<16x16x4xf32>
    %62 = vector.extract_strided_slice %49 {offsets = [0, 15, 0], sizes = [16, 1, 4], strides = [1, 1, 1]} : vector<16x16x4xf32> to vector<16x1x4xf32>
    %63 = vector.extract_strided_slice %49 {offsets = [0, 0, 0], sizes = [16, 15, 4], strides = [1, 1, 1]} : vector<16x16x4xf32> to vector<16x15x4xf32>
    %64 = tpu.concatenate %62, %63 in 1 : vector<16x1x4xf32>, vector<16x15x4xf32> -> vector<16x16x4xf32>
    %c1_i32_13 = arith.constant 1 : i32
    %65 = vector.broadcast %c1_i32_13 : i32 to vector<16x16x4xi32>
    %66 = arith.cmpi sge, %50, %65 : vector<16x16x4xi32>
    %c17_i32_14 = arith.constant 17 : i32
    %67 = vector.broadcast %c17_i32_14 : i32 to vector<16x16x4xi32>
    %68 = arith.cmpi slt, %50, %67 : vector<16x16x4xi32>
    %69 = arith.andi %66, %68 : vector<16x16x4xi1>
    %cst_15 = arith.constant 0xFF800000 : f32
    %70 = vector.broadcast %cst_15 : f32 to vector<16x16x4xf32>
    %71 = arith.select %69, %64, %70 : vector<16x16x4xi1>, vector<16x16x4xf32>
    %72 = arith.maximumf %61, %71 : vector<16x16x4xf32>
    %73 = vector.extract_strided_slice %49 {offsets = [0, 1, 0], sizes = [16, 15, 4], strides = [1, 1, 1]} : vector<16x16x4xf32> to vector<16x15x4xf32>
    %74 = vector.extract_strided_slice %49 {offsets = [0, 0, 0], sizes = [16, 1, 4], strides = [1, 1, 1]} : vector<16x16x4xf32> to vector<16x1x4xf32>
    %75 = tpu.concatenate %73, %74 in 1 : vector<16x15x4xf32>, vector<16x1x4xf32> -> vector<16x16x4xf32>
    %c-1_i32_16 = arith.constant -1 : i32
    %76 = vector.broadcast %c-1_i32_16 : i32 to vector<16x16x4xi32>
    %77 = arith.cmpi sge, %50, %76 : vector<16x16x4xi32>
    %c15_i32_17 = arith.constant 15 : i32
    %78 = vector.broadcast %c15_i32_17 : i32 to vector<16x16x4xi32>
    %79 = arith.cmpi slt, %50, %78 : vector<16x16x4xi32>
    %80 = arith.andi %77, %79 : vector<16x16x4xi1>
    %cst_18 = arith.constant 0xFF800000 : f32
    %81 = vector.broadcast %cst_18 : f32 to vector<16x16x4xf32>
    %82 = arith.select %80, %75, %81 : vector<16x16x4xi1>, vector<16x16x4xf32>
    %83 = arith.maximumf %72, %82 : vector<16x16x4xf32>
    %84 = vector.extract_strided_slice %49 {offsets = [0, 2, 0], sizes = [16, 14, 4], strides = [1, 1, 1]} : vector<16x16x4xf32> to vector<16x14x4xf32>
    %85 = vector.extract_strided_slice %49 {offsets = [0, 0, 0], sizes = [16, 2, 4], strides = [1, 1, 1]} : vector<16x16x4xf32> to vector<16x2x4xf32>
    %86 = tpu.concatenate %84, %85 in 1 : vector<16x14x4xf32>, vector<16x2x4xf32> -> vector<16x16x4xf32>
    %c-2_i32_19 = arith.constant -2 : i32
    %87 = vector.broadcast %c-2_i32_19 : i32 to vector<16x16x4xi32>
    %88 = arith.cmpi sge, %50, %87 : vector<16x16x4xi32>
    %c14_i32_20 = arith.constant 14 : i32
    %89 = vector.broadcast %c14_i32_20 : i32 to vector<16x16x4xi32>
    %90 = arith.cmpi slt, %50, %89 : vector<16x16x4xi32>
    %91 = arith.andi %88, %90 : vector<16x16x4xi1>
    %cst_21 = arith.constant 0xFF800000 : f32
    %92 = vector.broadcast %cst_21 : f32 to vector<16x16x4xf32>
    %93 = arith.select %91, %86, %92 : vector<16x16x4xi1>, vector<16x16x4xf32>
    %94 = arith.maximumf %83, %93 : vector<16x16x4xf32>
    %c2 = arith.constant 2 : index
    %c0_22 = arith.constant 0 : index
    %c0_23 = arith.constant 0 : index
    %c0_24 = arith.constant 0 : index
    %c0_25 = arith.constant 0 : index
    %95 = vector.load %arg3[%c2, %c0_22, %c0_23, %c0_24, %c0_25] : memref<4x1x16x16x4xf32, #tpu.memory_space<vmem>>, vector<1x1x16x16x4xf32>
    %96 = vector.shape_cast %95 : vector<1x1x16x16x4xf32> to vector<16x16x4xf32>
    %97 = vector.shape_cast %94 : vector<16x16x4xf32> to vector<1x1x16x16x4xf32>
    tpu.vector_store %arg3[%c2, %c0_22, %c0_23, %c0_24, %c0_25], %97 {strides = array<i32>} : memref<4x1x16x16x4xf32, #tpu.memory_space<vmem>>, vector<1x1x16x16x4xf32>,
    %98 = tpu.iota {dimensions = array<i32: 0>} : vector<16x16x4xi32>
    %99 = vector.extract_strided_slice %94 {offsets = [14, 0, 0], sizes = [2, 16, 4], strides = [1, 1, 1]} : vector<16x16x4xf32> to vector<2x16x4xf32>
    %100 = vector.extract_strided_slice %94 {offsets = [0, 0, 0], sizes = [14, 16, 4], strides = [1, 1, 1]} : vector<16x16x4xf32> to vector<14x16x4xf32>
    %101 = tpu.concatenate %99, %100 in 0 : vector<2x16x4xf32>, vector<14x16x4xf32> -> vector<16x16x4xf32>
    %c2_i32_26 = arith.constant 2 : i32
    %102 = vector.broadcast %c2_i32_26 : i32 to vector<16x16x4xi32>
    %103 = arith.cmpi sge, %98, %102 : vector<16x16x4xi32>
    %c18_i32_27 = arith.constant 18 : i32
    %104 = vector.broadcast %c18_i32_27 : i32 to vector<16x16x4xi32>
    %105 = arith.cmpi slt, %98, %104 : vector<16x16x4xi32>
    %106 = arith.andi %103, %105 : vector<16x16x4xi1>
    %cst_28 = arith.constant 0xFF800000 : f32
    %107 = vector.broadcast %cst_28 : f32 to vector<16x16x4xf32>
    %108 = arith.select %106, %101, %107 : vector<16x16x4xi1>, vector<16x16x4xf32>
    %109 = arith.maximumf %94, %108 : vector<16x16x4xf32>
    %110 = vector.extract_strided_slice %94 {offsets = [15, 0, 0], sizes = [1, 16, 4], strides = [1, 1, 1]} : vector<16x16x4xf32> to vector<1x16x4xf32>
    %111 = vector.extract_strided_slice %94 {offsets = [0, 0, 0], sizes = [15, 16, 4], strides = [1, 1, 1]} : vector<16x16x4xf32> to vector<15x16x4xf32>
    %112 = tpu.concatenate %110, %111 in 0 : vector<1x16x4xf32>, vector<15x16x4xf32> -> vector<16x16x4xf32>
    %c1_i32_29 = arith.constant 1 : i32
    %113 = vector.broadcast %c1_i32_29 : i32 to vector<16x16x4xi32>
    %114 = arith.cmpi sge, %98, %113 : vector<16x16x4xi32>
    %c17_i32_30 = arith.constant 17 : i32
    %115 = vector.broadcast %c17_i32_30 : i32 to vector<16x16x4xi32>
    %116 = arith.cmpi slt, %98, %115 : vector<16x16x4xi32>
    %117 = arith.andi %114, %116 : vector<16x16x4xi1>
    %cst_31 = arith.constant 0xFF800000 : f32
    %118 = vector.broadcast %cst_31 : f32 to vector<16x16x4xf32>
    %119 = arith.select %117, %112, %118 : vector<16x16x4xi1>, vector<16x16x4xf32>
    %120 = arith.maximumf %109, %119 : vector<16x16x4xf32>
    %121 = vector.extract_strided_slice %94 {offsets = [1, 0, 0], sizes = [15, 16, 4], strides = [1, 1, 1]} : vector<16x16x4xf32> to vector<15x16x4xf32>
    %122 = vector.extract_strided_slice %94 {offsets = [0, 0, 0], sizes = [1, 16, 4], strides = [1, 1, 1]} : vector<16x16x4xf32> to vector<1x16x4xf32>
    %123 = tpu.concatenate %121, %122 in 0 : vector<15x16x4xf32>, vector<1x16x4xf32> -> vector<16x16x4xf32>
    %c-1_i32_32 = arith.constant -1 : i32
    %124 = vector.broadcast %c-1_i32_32 : i32 to vector<16x16x4xi32>
    %125 = arith.cmpi sge, %98, %124 : vector<16x16x4xi32>
    %c15_i32_33 = arith.constant 15 : i32
    %126 = vector.broadcast %c15_i32_33 : i32 to vector<16x16x4xi32>
    %127 = arith.cmpi slt, %98, %126 : vector<16x16x4xi32>
    %128 = arith.andi %125, %127 : vector<16x16x4xi1>
    %cst_34 = arith.constant 0xFF800000 : f32
    %129 = vector.broadcast %cst_34 : f32 to vector<16x16x4xf32>
    %130 = arith.select %128, %123, %129 : vector<16x16x4xi1>, vector<16x16x4xf32>
    %131 = arith.maximumf %120, %130 : vector<16x16x4xf32>
    %132 = vector.extract_strided_slice %94 {offsets = [2, 0, 0], sizes = [14, 16, 4], strides = [1, 1, 1]} : vector<16x16x4xf32> to vector<14x16x4xf32>
    %133 = vector.extract_strided_slice %94 {offsets = [0, 0, 0], sizes = [2, 16, 4], strides = [1, 1, 1]} : vector<16x16x4xf32> to vector<2x16x4xf32>
    %134 = tpu.concatenate %132, %133 in 0 : vector<14x16x4xf32>, vector<2x16x4xf32> -> vector<16x16x4xf32>
    %c-2_i32_35 = arith.constant -2 : i32
    %135 = vector.broadcast %c-2_i32_35 : i32 to vector<16x16x4xi32>
    %136 = arith.cmpi sge, %98, %135 : vector<16x16x4xi32>
    %c14_i32_36 = arith.constant 14 : i32
    %137 = vector.broadcast %c14_i32_36 : i32 to vector<16x16x4xi32>
    %138 = arith.cmpi slt, %98, %137 : vector<16x16x4xi32>
    %139 = arith.andi %136, %138 : vector<16x16x4xi1>
    %cst_37 = arith.constant 0xFF800000 : f32
    %140 = vector.broadcast %cst_37 : f32 to vector<16x16x4xf32>
    %141 = arith.select %139, %134, %140 : vector<16x16x4xi1>, vector<16x16x4xf32>
    %142 = arith.maximumf %131, %141 : vector<16x16x4xf32>
    %143 = tpu.iota {dimensions = array<i32: 1>} : vector<16x16x4xi32>
    %144 = vector.extract_strided_slice %142 {offsets = [0, 14, 0], sizes = [16, 2, 4], strides = [1, 1, 1]} : vector<16x16x4xf32> to vector<16x2x4xf32>
    %145 = vector.extract_strided_slice %142 {offsets = [0, 0, 0], sizes = [16, 14, 4], strides = [1, 1, 1]} : vector<16x16x4xf32> to vector<16x14x4xf32>
    %146 = tpu.concatenate %144, %145 in 1 : vector<16x2x4xf32>, vector<16x14x4xf32> -> vector<16x16x4xf32>
    %c2_i32_38 = arith.constant 2 : i32
    %147 = vector.broadcast %c2_i32_38 : i32 to vector<16x16x4xi32>
    %148 = arith.cmpi sge, %143, %147 : vector<16x16x4xi32>
    %c18_i32_39 = arith.constant 18 : i32
    %149 = vector.broadcast %c18_i32_39 : i32 to vector<16x16x4xi32>
    %150 = arith.cmpi slt, %143, %149 : vector<16x16x4xi32>
    %151 = arith.andi %148, %150 : vector<16x16x4xi1>
    %cst_40 = arith.constant 0xFF800000 : f32
    %152 = vector.broadcast %cst_40 : f32 to vector<16x16x4xf32>
    %153 = arith.select %151, %146, %152 : vector<16x16x4xi1>, vector<16x16x4xf32>
    %154 = arith.maximumf %142, %153 : vector<16x16x4xf32>
    %155 = vector.extract_strided_slice %142 {offsets = [0, 15, 0], sizes = [16, 1, 4], strides = [1, 1, 1]} : vector<16x16x4xf32> to vector<16x1x4xf32>
    %156 = vector.extract_strided_slice %142 {offsets = [0, 0, 0], sizes = [16, 15, 4], strides = [1, 1, 1]} : vector<16x16x4xf32> to vector<16x15x4xf32>
    %157 = tpu.concatenate %155, %156 in 1 : vector<16x1x4xf32>, vector<16x15x4xf32> -> vector<16x16x4xf32>
    %c1_i32_41 = arith.constant 1 : i32
    %158 = vector.broadcast %c1_i32_41 : i32 to vector<16x16x4xi32>
    %159 = arith.cmpi sge, %143, %158 : vector<16x16x4xi32>
    %c17_i32_42 = arith.constant 17 : i32
    %160 = vector.broadcast %c17_i32_42 : i32 to vector<16x16x4xi32>
    %161 = arith.cmpi slt, %143, %160 : vector<16x16x4xi32>
    %162 = arith.andi %159, %161 : vector<16x16x4xi1>
    %cst_43 = arith.constant 0xFF800000 : f32
    %163 = vector.broadcast %cst_43 : f32 to vector<16x16x4xf32>
    %164 = arith.select %162, %157, %163 : vector<16x16x4xi1>, vector<16x16x4xf32>
    %165 = arith.maximumf %154, %164 : vector<16x16x4xf32>
    %166 = vector.extract_strided_slice %142 {offsets = [0, 1, 0], sizes = [16, 15, 4], strides = [1, 1, 1]} : vector<16x16x4xf32> to vector<16x15x4xf32>
    %167 = vector.extract_strided_slice %142 {offsets = [0, 0, 0], sizes = [16, 1, 4], strides = [1, 1, 1]} : vector<16x16x4xf32> to vector<16x1x4xf32>
    %168 = tpu.concatenate %166, %167 in 1 : vector<16x15x4xf32>, vector<16x1x4xf32> -> vector<16x16x4xf32>
    %c-1_i32_44 = arith.constant -1 : i32
    %169 = vector.broadcast %c-1_i32_44 : i32 to vector<16x16x4xi32>
    %170 = arith.cmpi sge, %143, %169 : vector<16x16x4xi32>
    %c15_i32_45 = arith.constant 15 : i32
    %171 = vector.broadcast %c15_i32_45 : i32 to vector<16x16x4xi32>
    %172 = arith.cmpi slt, %143, %171 : vector<16x16x4xi32>
    %173 = arith.andi %170, %172 : vector<16x16x4xi1>
    %cst_46 = arith.constant 0xFF800000 : f32
    %174 = vector.broadcast %cst_46 : f32 to vector<16x16x4xf32>
    %175 = arith.select %173, %168, %174 : vector<16x16x4xi1>, vector<16x16x4xf32>
    %176 = arith.maximumf %165, %175 : vector<16x16x4xf32>
    %177 = vector.extract_strided_slice %142 {offsets = [0, 2, 0], sizes = [16, 14, 4], strides = [1, 1, 1]} : vector<16x16x4xf32> to vector<16x14x4xf32>
    %178 = vector.extract_strided_slice %142 {offsets = [0, 0, 0], sizes = [16, 2, 4], strides = [1, 1, 1]} : vector<16x16x4xf32> to vector<16x2x4xf32>
    %179 = tpu.concatenate %177, %178 in 1 : vector<16x14x4xf32>, vector<16x2x4xf32> -> vector<16x16x4xf32>
    %c-2_i32_47 = arith.constant -2 : i32
    %180 = vector.broadcast %c-2_i32_47 : i32 to vector<16x16x4xi32>
    %181 = arith.cmpi sge, %143, %180 : vector<16x16x4xi32>
    %c14_i32_48 = arith.constant 14 : i32
    %182 = vector.broadcast %c14_i32_48 : i32 to vector<16x16x4xi32>
    %183 = arith.cmpi slt, %143, %182 : vector<16x16x4xi32>
    %184 = arith.andi %181, %183 : vector<16x16x4xi1>
    %cst_49 = arith.constant 0xFF800000 : f32
    %185 = vector.broadcast %cst_49 : f32 to vector<16x16x4xf32>
    %186 = arith.select %184, %179, %185 : vector<16x16x4xi1>, vector<16x16x4xf32>
    %187 = arith.maximumf %176, %186 : vector<16x16x4xf32>
    %c1 = arith.constant 1 : index
    %c0_50 = arith.constant 0 : index
    %c0_51 = arith.constant 0 : index
    %c0_52 = arith.constant 0 : index
    %c0_53 = arith.constant 0 : index
    %188 = vector.load %arg3[%c1, %c0_50, %c0_51, %c0_52, %c0_53] : memref<4x1x16x16x4xf32, #tpu.memory_space<vmem>>, vector<1x1x16x16x4xf32>
    %189 = vector.shape_cast %188 : vector<1x1x16x16x4xf32> to vector<16x16x4xf32>
    %190 = vector.shape_cast %187 : vector<16x16x4xf32> to vector<1x1x16x16x4xf32>
    tpu.vector_store %arg3[%c1, %c0_50, %c0_51, %c0_52, %c0_53], %190 {strides = array<i32>} : memref<4x1x16x16x4xf32, #tpu.memory_space<vmem>>, vector<1x1x16x16x4xf32>,
    %191 = tpu.iota {dimensions = array<i32: 0>} : vector<16x16x4xi32>
    %192 = vector.extract_strided_slice %187 {offsets = [14, 0, 0], sizes = [2, 16, 4], strides = [1, 1, 1]} : vector<16x16x4xf32> to vector<2x16x4xf32>
    %193 = vector.extract_strided_slice %187 {offsets = [0, 0, 0], sizes = [14, 16, 4], strides = [1, 1, 1]} : vector<16x16x4xf32> to vector<14x16x4xf32>
    %194 = tpu.concatenate %192, %193 in 0 : vector<2x16x4xf32>, vector<14x16x4xf32> -> vector<16x16x4xf32>
    %c2_i32_54 = arith.constant 2 : i32
    %195 = vector.broadcast %c2_i32_54 : i32 to vector<16x16x4xi32>
    %196 = arith.cmpi sge, %191, %195 : vector<16x16x4xi32>
    %c18_i32_55 = arith.constant 18 : i32
    %197 = vector.broadcast %c18_i32_55 : i32 to vector<16x16x4xi32>
    %198 = arith.cmpi slt, %191, %197 : vector<16x16x4xi32>
    %199 = arith.andi %196, %198 : vector<16x16x4xi1>
    %cst_56 = arith.constant 0xFF800000 : f32
    %200 = vector.broadcast %cst_56 : f32 to vector<16x16x4xf32>
    %201 = arith.select %199, %194, %200 : vector<16x16x4xi1>, vector<16x16x4xf32>
    %202 = arith.maximumf %187, %201 : vector<16x16x4xf32>
    %203 = vector.extract_strided_slice %187 {offsets = [15, 0, 0], sizes = [1, 16, 4], strides = [1, 1, 1]} : vector<16x16x4xf32> to vector<1x16x4xf32>
    %204 = vector.extract_strided_slice %187 {offsets = [0, 0, 0], sizes = [15, 16, 4], strides = [1, 1, 1]} : vector<16x16x4xf32> to vector<15x16x4xf32>
    %205 = tpu.concatenate %203, %204 in 0 : vector<1x16x4xf32>, vector<15x16x4xf32> -> vector<16x16x4xf32>
    %c1_i32_57 = arith.constant 1 : i32
    %206 = vector.broadcast %c1_i32_57 : i32 to vector<16x16x4xi32>
    %207 = arith.cmpi sge, %191, %206 : vector<16x16x4xi32>
    %c17_i32_58 = arith.constant 17 : i32
    %208 = vector.broadcast %c17_i32_58 : i32 to vector<16x16x4xi32>
    %209 = arith.cmpi slt, %191, %208 : vector<16x16x4xi32>
    %210 = arith.andi %207, %209 : vector<16x16x4xi1>
    %cst_59 = arith.constant 0xFF800000 : f32
    %211 = vector.broadcast %cst_59 : f32 to vector<16x16x4xf32>
    %212 = arith.select %210, %205, %211 : vector<16x16x4xi1>, vector<16x16x4xf32>
    %213 = arith.maximumf %202, %212 : vector<16x16x4xf32>
    %214 = vector.extract_strided_slice %187 {offsets = [1, 0, 0], sizes = [15, 16, 4], strides = [1, 1, 1]} : vector<16x16x4xf32> to vector<15x16x4xf32>
    %215 = vector.extract_strided_slice %187 {offsets = [0, 0, 0], sizes = [1, 16, 4], strides = [1, 1, 1]} : vector<16x16x4xf32> to vector<1x16x4xf32>
    %216 = tpu.concatenate %214, %215 in 0 : vector<15x16x4xf32>, vector<1x16x4xf32> -> vector<16x16x4xf32>
    %c-1_i32_60 = arith.constant -1 : i32
    %217 = vector.broadcast %c-1_i32_60 : i32 to vector<16x16x4xi32>
    %218 = arith.cmpi sge, %191, %217 : vector<16x16x4xi32>
    %c15_i32_61 = arith.constant 15 : i32
    %219 = vector.broadcast %c15_i32_61 : i32 to vector<16x16x4xi32>
    %220 = arith.cmpi slt, %191, %219 : vector<16x16x4xi32>
    %221 = arith.andi %218, %220 : vector<16x16x4xi1>
    %cst_62 = arith.constant 0xFF800000 : f32
    %222 = vector.broadcast %cst_62 : f32 to vector<16x16x4xf32>
    %223 = arith.select %221, %216, %222 : vector<16x16x4xi1>, vector<16x16x4xf32>
    %224 = arith.maximumf %213, %223 : vector<16x16x4xf32>
    %225 = vector.extract_strided_slice %187 {offsets = [2, 0, 0], sizes = [14, 16, 4], strides = [1, 1, 1]} : vector<16x16x4xf32> to vector<14x16x4xf32>
    %226 = vector.extract_strided_slice %187 {offsets = [0, 0, 0], sizes = [2, 16, 4], strides = [1, 1, 1]} : vector<16x16x4xf32> to vector<2x16x4xf32>
    %227 = tpu.concatenate %225, %226 in 0 : vector<14x16x4xf32>, vector<2x16x4xf32> -> vector<16x16x4xf32>
    %c-2_i32_63 = arith.constant -2 : i32
    %228 = vector.broadcast %c-2_i32_63 : i32 to vector<16x16x4xi32>
    %229 = arith.cmpi sge, %191, %228 : vector<16x16x4xi32>
    %c14_i32_64 = arith.constant 14 : i32
    %230 = vector.broadcast %c14_i32_64 : i32 to vector<16x16x4xi32>
    %231 = arith.cmpi slt, %191, %230 : vector<16x16x4xi32>
    %232 = arith.andi %229, %231 : vector<16x16x4xi1>
    %cst_65 = arith.constant 0xFF800000 : f32
    %233 = vector.broadcast %cst_65 : f32 to vector<16x16x4xf32>
    %234 = arith.select %232, %227, %233 : vector<16x16x4xi1>, vector<16x16x4xf32>
    %235 = arith.maximumf %224, %234 : vector<16x16x4xf32>
    %236 = tpu.iota {dimensions = array<i32: 1>} : vector<16x16x4xi32>
    %237 = vector.extract_strided_slice %235 {offsets = [0, 14, 0], sizes = [16, 2, 4], strides = [1, 1, 1]} : vector<16x16x4xf32> to vector<16x2x4xf32>
    %238 = vector.extract_strided_slice %235 {offsets = [0, 0, 0], sizes = [16, 14, 4], strides = [1, 1, 1]} : vector<16x16x4xf32> to vector<16x14x4xf32>
    %239 = tpu.concatenate %237, %238 in 1 : vector<16x2x4xf32>, vector<16x14x4xf32> -> vector<16x16x4xf32>
    %c2_i32_66 = arith.constant 2 : i32
    %240 = vector.broadcast %c2_i32_66 : i32 to vector<16x16x4xi32>
    %241 = arith.cmpi sge, %236, %240 : vector<16x16x4xi32>
    %c18_i32_67 = arith.constant 18 : i32
    %242 = vector.broadcast %c18_i32_67 : i32 to vector<16x16x4xi32>
    %243 = arith.cmpi slt, %236, %242 : vector<16x16x4xi32>
    %244 = arith.andi %241, %243 : vector<16x16x4xi1>
    %cst_68 = arith.constant 0xFF800000 : f32
    %245 = vector.broadcast %cst_68 : f32 to vector<16x16x4xf32>
    %246 = arith.select %244, %239, %245 : vector<16x16x4xi1>, vector<16x16x4xf32>
    %247 = arith.maximumf %235, %246 : vector<16x16x4xf32>
    %248 = vector.extract_strided_slice %235 {offsets = [0, 15, 0], sizes = [16, 1, 4], strides = [1, 1, 1]} : vector<16x16x4xf32> to vector<16x1x4xf32>
    %249 = vector.extract_strided_slice %235 {offsets = [0, 0, 0], sizes = [16, 15, 4], strides = [1, 1, 1]} : vector<16x16x4xf32> to vector<16x15x4xf32>
    %250 = tpu.concatenate %248, %249 in 1 : vector<16x1x4xf32>, vector<16x15x4xf32> -> vector<16x16x4xf32>
    %c1_i32_69 = arith.constant 1 : i32
    %251 = vector.broadcast %c1_i32_69 : i32 to vector<16x16x4xi32>
    %252 = arith.cmpi sge, %236, %251 : vector<16x16x4xi32>
    %c17_i32_70 = arith.constant 17 : i32
    %253 = vector.broadcast %c17_i32_70 : i32 to vector<16x16x4xi32>
    %254 = arith.cmpi slt, %236, %253 : vector<16x16x4xi32>
    %255 = arith.andi %252, %254 : vector<16x16x4xi1>
    %cst_71 = arith.constant 0xFF800000 : f32
    %256 = vector.broadcast %cst_71 : f32 to vector<16x16x4xf32>
    %257 = arith.select %255, %250, %256 : vector<16x16x4xi1>, vector<16x16x4xf32>
    %258 = arith.maximumf %247, %257 : vector<16x16x4xf32>
    %259 = vector.extract_strided_slice %235 {offsets = [0, 1, 0], sizes = [16, 15, 4], strides = [1, 1, 1]} : vector<16x16x4xf32> to vector<16x15x4xf32>
    %260 = vector.extract_strided_slice %235 {offsets = [0, 0, 0], sizes = [16, 1, 4], strides = [1, 1, 1]} : vector<16x16x4xf32> to vector<16x1x4xf32>
    %261 = tpu.concatenate %259, %260 in 1 : vector<16x15x4xf32>, vector<16x1x4xf32> -> vector<16x16x4xf32>
    %c-1_i32_72 = arith.constant -1 : i32
    %262 = vector.broadcast %c-1_i32_72 : i32 to vector<16x16x4xi32>
    %263 = arith.cmpi sge, %236, %262 : vector<16x16x4xi32>
    %c15_i32_73 = arith.constant 15 : i32
    %264 = vector.broadcast %c15_i32_73 : i32 to vector<16x16x4xi32>
    %265 = arith.cmpi slt, %236, %264 : vector<16x16x4xi32>
    %266 = arith.andi %263, %265 : vector<16x16x4xi1>
    %cst_74 = arith.constant 0xFF800000 : f32
    %267 = vector.broadcast %cst_74 : f32 to vector<16x16x4xf32>
    %268 = arith.select %266, %261, %267 : vector<16x16x4xi1>, vector<16x16x4xf32>
    %269 = arith.maximumf %258, %268 : vector<16x16x4xf32>
    %270 = vector.extract_strided_slice %235 {offsets = [0, 2, 0], sizes = [16, 14, 4], strides = [1, 1, 1]} : vector<16x16x4xf32> to vector<16x14x4xf32>
    %271 = vector.extract_strided_slice %235 {offsets = [0, 0, 0], sizes = [16, 2, 4], strides = [1, 1, 1]} : vector<16x16x4xf32> to vector<16x2x4xf32>
    %272 = tpu.concatenate %270, %271 in 1 : vector<16x14x4xf32>, vector<16x2x4xf32> -> vector<16x16x4xf32>
    %c-2_i32_75 = arith.constant -2 : i32
    %273 = vector.broadcast %c-2_i32_75 : i32 to vector<16x16x4xi32>
    %274 = arith.cmpi sge, %236, %273 : vector<16x16x4xi32>
    %c14_i32_76 = arith.constant 14 : i32
    %275 = vector.broadcast %c14_i32_76 : i32 to vector<16x16x4xi32>
    %276 = arith.cmpi slt, %236, %275 : vector<16x16x4xi32>
    %277 = arith.andi %274, %276 : vector<16x16x4xi1>
    %cst_77 = arith.constant 0xFF800000 : f32
    %278 = vector.broadcast %cst_77 : f32 to vector<16x16x4xf32>
    %279 = arith.select %277, %272, %278 : vector<16x16x4xi1>, vector<16x16x4xf32>
    %280 = arith.maximumf %269, %279 : vector<16x16x4xf32>
    %c0_78 = arith.constant 0 : index
    %c0_79 = arith.constant 0 : index
    %c0_80 = arith.constant 0 : index
    %c0_81 = arith.constant 0 : index
    %c0_82 = arith.constant 0 : index
    %281 = vector.load %arg3[%c0_78, %c0_79, %c0_80, %c0_81, %c0_82] : memref<4x1x16x16x4xf32, #tpu.memory_space<vmem>>, vector<1x1x16x16x4xf32>
    %282 = vector.shape_cast %281 : vector<1x1x16x16x4xf32> to vector<16x16x4xf32>
    %283 = vector.shape_cast %280 : vector<16x16x4xf32> to vector<1x1x16x16x4xf32>
    tpu.vector_store %arg3[%c0_78, %c0_79, %c0_80, %c0_81, %c0_82], %283 {strides = array<i32>} : memref<4x1x16x16x4xf32, #tpu.memory_space<vmem>>, vector<1x1x16x16x4xf32>,
    return
  }
  func.func @transform_0(%arg0: i32, %arg1: i32) -> (i32, i32, i32, i32) {
    %c0_i32 = arith.constant 0 : i32
    %c0_i32_0 = arith.constant 0 : i32
    %c0_i32_1 = arith.constant 0 : i32
    return %arg0, %c0_i32, %c0_i32_0, %arg1 : i32, i32, i32, i32
  }
  func.func @transform_1(%arg0: i32, %arg1: i32) -> (i32, i32, i32, i32, i32) {
    %c0_i32 = arith.constant 0 : i32
    %c0_i32_0 = arith.constant 0 : i32
    %c0_i32_1 = arith.constant 0 : i32
    %c0_i32_2 = arith.constant 0 : i32
    return %c0_i32, %arg0, %c0_i32_0, %c0_i32_1, %arg1 : i32, i32, i32, i32, i32
  }
}

</mosaic_0001>

<bundles_post_ra>
// kernel: tpu_custom_call.1
= control target key start
LH: loop header
LB: loop body
LE: loop exit
PB: predicated region body
PF: predicated region fallthrough
CT: control target
= control target key end

     0   :  { %s3862_s6 = smov 0   ;;  %s3864_s7 = smov 0   ;;  %s6578_s0 = inlined_call_operand.vmem [shape: f32[2,16,16,4], index: 0, kind: input, shape index: {}]   ;;  %s6579_s1 = inlined_call_operand.vmem [shape: f32[4,2,16,16,4], index: 1, kind: output, shape index: {}]  }
   0x1   :  { %s3866_s8 = smov 0   ;;  %s3868_s9 = smov 0  }
   0x2   :  { %s3870_s10 = smov 0  }
   0x3 LB: > { %s3661_s11 = sadd.s32 4294967295, %s3850_s10   ;;  %s23_s12 = sadd.s32 1, %s3846_s9  ;;  %s3850_s10 = sphi %s3870_s10, %s11_s10   ;;  %s3846_s9 = sphi %s3868_s9, %s6702_s9   ;;  %s3842_s8 = sphi %s3866_s8, %s6701_s8   ;;  %s3838_s7 = sphi %s3864_s7, %s6700_s7   ;;  %s3834_s6 = sphi %s3862_s6, %s6699_s6  }
   0x4   : > { %p25_p0 = scmp.ge.s32.totalorder %s23_s12, 2  ;;  %s60_s13 = sadd.s32 1, %s3838_s7 }
   0x5   : > { %p70_p1 = scmp.ne.s32.totalorder %s3838_s7, %s3834_s6  ;;  %p71_p2 = scmp.eq.s32.totalorder %s3661_s11, 1 }
   0x6   : > { %s6704_s12 = smov (%p25_p0, %s23_s12), 0  ;;  %p3665_p4 = scmp.ge.s32.totalorder %s3850_s10, 1 }
   0x7   : > { %p3891_p3 = por %p71_p2, %p70_p1  ;;  %s55_s15 = ssub.s32 %s3846_s9, %s6704_s12 }
   0x8   : > { %p106_p5 = scmp.lt.s32.totalorder %s3850_s10, 3  ;;  %p58_p6 = scmp.eq.s32.totalorder %s55_s15, 0 }
   0xa   : > { %p107_p7 = pnand %p3665_p4, %p106_p5 }
   0xb   : > { %s3900_s16 = scalar_select %p58_p6, %s3838_s7, %s60_s13  }
   0xc   : > { %110 = sbr.rel (%p107_p7) target bundleno = 515 (0x203), region = 24 }
  0x13   : > { %s125_s17 = sand.u32 1, %s3834_s6   ;;  %p128_p8 = scmp.lt.s32.totalorder %s3842_s8, 1  ;;  %v370_v0 = vlaneseq  ;;  %vm169_vm0 = vcmask 31744   ;;  %vm437_vm1 = vcmask 1041408   ;;  %vm620_vm2 = vcmask 1040384  }
  0x14   : > { %s3666_s18 = sshll.u32 %s125_s17, 10  ;;  %vm771_vm5 = vcmask 1046528   ;;  %vm954_vm6 = vcmask 1045504   ;;  %s3771_s25 = sshll.u32 (%p3891_p3), %s3842_s8, 8 }
  0x15   : > { %s129_s19 = scalar_select %p128_p8, %s3842_s8, 1  ;;  %v3904_v1 = vshrl.u32 %v370_v0, 7 }
  0x16   : > { %s3919_s24 = scalar_lea.vmem [#allocation2], %s3666_s18  ;;  %s6308_s28 = scalar_lea.vmem (%p3891_p3), %s6579_s1, %s3771_s25 }
  0x17   : > { %s3770_s20 = sshll.u32 %s129_s19, 8  ;;  %v3917_v5 = vadd.s32 8, %v3904_v1  ;;  %vm518_vm3 = vcmp.ge.s32.totalorder %v3904_v1, 2  ;;  %vm701_vm4 = vcmp.ge.s32.totalorder %v3904_v1, 1 }
  0x18   : > { %s3909_s23 = scalar_lea.vmem %s6578_s0, %s3770_s20 }
  0x19   : > { %v136_v2 = vld [vmem:[%s3909_s23] sm:$0xff]  ;;  %v137_v4 = vld [vmem:[%s3909_s23 + $0x8] sm:$0xff]  ;;  %v138_v8 = vld [vmem:[%s3909_s23 + $0x10] sm:$0xff]  ;;  %vm887_vm7 = vcmp.lt.s32.totalorder %v3917_v5, 15  ;;  %vm1070_vm8 = vcmp.lt.s32.totalorder %v3917_v5, 14 }
  0x1a   : > { %v3913_v3 = vld [vmem:[%s3909_s23 + $0x20] sm:$0xff]  ;;  %3669 = vst.msk [vmem:[%s3919_s24 + $0x300] sm:$0xff] %vm169_vm0, %v136_v2  ;;  %v3928_v7 = vld [vmem:[%s3909_s23 + $0x28] sm:$0xff]  ;;  %3670 = vst.msk [vmem:[%s3919_s24 + $0x308] sm:$0xff] %vm169_vm0, %v137_v4  ;;  %v270_v11 = vmax.f32 %v138_v8, %v136_v2  ;;  %v304_v12 = vmax.f32 %v136_v2, %v138_v8 }
  0x1b   : > { %v238_v6 = vmax.f32 %v3913_v3, %v136_v2  ;;  %3673 = vst.msk [vmem:[%s3919_s24 + $0x320] sm:$0xff] %vm169_vm0, %v3913_v3  ;;  %v139_v9 = vld [vmem:[%s3909_s23 + $0x18] sm:$0xff]  ;;  %v239_v10 = vmax.f32 %v3928_v7, %v137_v4  ;;  %3674 = vst.msk [vmem:[%s3919_s24 + $0x328] sm:$0xff] %vm169_vm0, %v3928_v7  ;;  %v3943_v14 = vld [vmem:[%s3909_s23 + $0x30] sm:$0xff] }
  0x1c   : > { %3671 = vst.msk [vmem:[%s3919_s24 + $0x310] sm:$0xff] %vm169_vm0, %v138_v8  ;;  %3672 = vst.msk [vmem:[%s3919_s24 + $0x318] sm:$0xff] %vm169_vm0, %v139_v9  ;;  %v271_v13 = vmax.f32 %v139_v9, %v137_v4  ;;  %v3946_v15 = vld [vmem:[%s3909_s23 + $0x38] sm:$0xff]  ;;  %v3949_v16 = vld [vmem:[%s3909_s23 + $0x40] sm:$0xff]  ;;  %v305_v18 = vmax.f32 %v137_v4, %v139_v9  ;;  %v240_v19 = vmax.f32 %v3943_v14, %v138_v8 }
  0x1d   : > { %v272_v17 = vmax.f32 %v238_v6, %v138_v8  ;;  %3675 = vst.msk [vmem:[%s3919_s24 + $0x330] sm:$0xff] %vm169_vm0, %v3943_v14  ;;  %3676 = vst.msk [vmem:[%s3919_s24 + $0x338] sm:$0xff] %vm169_vm0, %v3946_v15  ;;  %v241_v20 = vmax.f32 %v3946_v15, %v139_v9  ;;  %v3965_v21 = vld [vmem:[%s3909_s23 + $0x48] sm:$0xff]  ;;  %v3968_v22 = vld [vmem:[%s3909_s23 + $0x50] sm:$0xff]  ;;  %v306_v24 = vmax.f32 %v270_v11, %v3913_v3 }
  0x1e   : > { %3677 = vst.msk [vmem:[%s3919_s24 + $0x340] sm:$0xff] %vm169_vm0, %v3949_v16  ;;  %v3971_v23 = vld [vmem:[%s3909_s23 + $0x58] sm:$0xff]  ;;  %v3975_v25 = vmax.f32 %v304_v12, %v3913_v3  ;;  %v273_v26 = vmax.f32 %v239_v10, %v139_v9  ;;  %v307_v27 = vmax.f32 %v271_v13, %v3928_v7  ;;  %3678 = vst.msk [vmem:[%s3919_s24 + $0x348] sm:$0xff] %vm169_vm0, %v3965_v21  ;;  %v3989_v28 = vld [vmem:[%s3909_s23 + $0x60] sm:$0xff] }
  0x1f   : > { %3679 = vst.msk [vmem:[%s3919_s24 + $0x350] sm:$0xff] %vm169_vm0, %v3968_v22  ;;  %3680 = vst.msk [vmem:[%s3919_s24 + $0x358] sm:$0xff] %vm169_vm0, %v3971_v23  ;;  %v3992_v29 = vld [vmem:[%s3909_s23 + $0x68] sm:$0xff]  ;;  %v3995_v30 = vld [vmem:[%s3909_s23 + $0x70] sm:$0xff]  ;;  %v3998_v31 = vmax.f32 %v305_v18, %v3928_v7  ;;  %v274_v32 = vmax.f32 %v240_v19, %v3913_v3  ;;  %v308_v33 = vmax.f32 %v272_v17, %v3943_v14 }
  0x20   : > { %v275_v34 = vmax.f32 %v241_v20, %v3928_v7  ;;  %3681 = vst.msk [vmem:[%s3919_s24 + $0x360] sm:$0xff] %vm169_vm0, %v3989_v28  ;;  %3682 = vst.msk [vmem:[%s3919_s24 + $0x368] sm:$0xff] %vm169_vm0, %v3992_v29  ;;  %v4013_v35 = vld [vmem:[%s3909_s23 + $0x78] sm:$0xff]  ;;  %v4016_v36 = vld [vmem:[%s3909_s23 + $0x80] sm:$0xff]  ;;  %v4022_v38 = vmax.f32 %v306_v24, %v3943_v14  ;;  %v309_v39 = vmax.f32 %v273_v26, %v3946_v15 }
  0x21   : > { %3683 = vst.msk [vmem:[%s3919_s24 + $0x370] sm:$0xff] %vm169_vm0, %v3995_v30  ;;  %v4019_v37 = vld [vmem:[%s3909_s23 + $0x88] sm:$0xff]  ;;  %v4026_v40 = vmax.f32 %v307_v27, %v3946_v15  ;;  %v242_v41 = vmax.f32 %v3949_v16, %v3913_v3  ;;  %3684 = vst.msk [vmem:[%s3919_s24 + $0x378] sm:$0xff] %vm169_vm0, %v4013_v35  ;;  %v4040_v42 = vld [vmem:[%s3909_s23 + $0x90] sm:$0xff]  ;;  %v310_v45 = vmax.f32 %v274_v32, %v3949_v16 }
  0x22   : > { %3685 = vst.msk [vmem:[%s3919_s24 + $0x380] sm:$0xff] %vm169_vm0, %v4016_v36  ;;  %3686 = vst.msk [vmem:[%s3919_s24 + $0x388] sm:$0xff] %vm169_vm0, %v4019_v37  ;;  %v4043_v43 = vld [vmem:[%s3909_s23 + $0x98] sm:$0xff]  ;;  %v4046_v44 = vld [vmem:[%s3909_s23 + $0xa0] sm:$0xff]  ;;  %v4050_v46 = vmax.f32 %v308_v33, %v3949_v16  ;;  %v243_v47 = vmax.f32 %v3965_v21, %v3928_v7  ;;  %v311_v48 = vmax.f32 %v275_v34, %v3965_v21 }
  0x23   : > { %3687 = vst.msk [vmem:[%s3919_s24 + $0x390] sm:$0xff] %vm169_vm0, %v4040_v42  ;;  %3688 = vst.msk [vmem:[%s3919_s24 + $0x398] sm:$0xff] %vm169_vm0, %v4043_v43  ;;  %v4065_v49 = vld [vmem:[%s3909_s23 + $0xa8] sm:$0xff]  ;;  %v4068_v50 = vld [vmem:[%s3909_s23 + $0xb0] sm:$0xff]  ;;  %v4074_v52 = vmax.f32 %v309_v39, %v3965_v21  ;;  %v244_v53 = vmax.f32 %v3968_v22, %v3943_v14  ;;  %v276_v54 = vmax.f32 %v242_v41, %v3943_v14 }
  0x24   : > { %3689 = vst.msk [vmem:[%s3919_s24 + $0x3a0] sm:$0xff] %vm169_vm0, %v4046_v44  ;;  %v4071_v51 = vld [vmem:[%s3909_s23 + $0xb8] sm:$0xff]  ;;  %v245_v55 = vmax.f32 %v3971_v23, %v3946_v15  ;;  %3690 = vst.msk [vmem:[%s3919_s24 + $0x3a8] sm:$0xff] %vm169_vm0, %v4065_v49  ;;  %v4091_v56 = vld [vmem:[%s3909_s23 + $0xc0] sm:$0xff]  ;;  %v442_v59 = vrot.slane %v4050_v46, 6  ;;  %v625_v60 = vrot.slane %v4050_v46, 7  ;;  %v4136_v10 = vmax.f32 %v310_v45, %v3968_v22 }
  0x25   : > { %3691 = vst.msk [vmem:[%s3919_s24 + $0x3b0] sm:$0xff] %vm169_vm0, %v4068_v50  ;;  %3692 = vst.msk [vmem:[%s3919_s24 + $0x3b8] sm:$0xff] %vm169_vm0, %v4071_v51  ;;  %v4094_v57 = vld [vmem:[%s3909_s23 + $0xc8] sm:$0xff]  ;;  %v4097_v58 = vld [vmem:[%s3909_s23 + $0xd0] sm:$0xff]  ;;  %v778_v61 = vrot.slane %v4050_v46, 1  ;;  %v961_v62 = vrot.slane %v4050_v46, 2  ;;  %v312_v9 = vmax.f32 %v276_v54, %v3968_v22  ;;  %v277_v11 = vmax.f32 %v243_v47, %v3946_v15 }
  0x26   : > { %3693 = vst.msk [vmem:[%s3919_s24 + $0x3c0] sm:$0xff] %vm169_vm0, %v4091_v56  ;;  %3694 = vst.msk [vmem:[%s3919_s24 + $0x3c8] sm:$0xff] %vm169_vm0, %v4094_v57  ;;  %v4113_v63 = vld [vmem:[%s3909_s23 + $0xd8] sm:$0xff]  ;;  %v4116_v0 = vld [vmem:[%s3909_s23 + $0xe0] sm:$0xff]  ;;  %v391_v2 = vrot.slane %v4074_v52, 6  ;;  %v590_v3 = vrot.slane %v4074_v52, 7  ;;  %v4140_v12 = vmax.f32 %v311_v48, %v3971_v23  ;;  %v246_v45 = vmax.f32 %v3989_v28, %v3949_v16 }
  0x27   : > { %3695 = vst.msk [vmem:[%s3919_s24 + $0x3d0] sm:$0xff] %vm169_vm0, %v4097_v58  ;;  %v779_v4 = vrot.slane %v4074_v52, 1  ;;  %v962_v6 = vrot.slane %v4074_v52, 2  ;;  %3696 = vst.msk [vmem:[%s3919_s24 + $0x3d8] sm:$0xff] %vm169_vm0, %v4113_v63  ;;  %v4129_v7 = vld [vmem:[%s3909_s23 + $0xe8] sm:$0xff]  ;;  %v4132_v8 = vld [vmem:[%s3909_s23 + $0xf0] sm:$0xff]  ;;  %v313_v34 = vmax.f32 %v277_v11, %v3971_v23  ;;  %v278_v47 = vmax.f32 %v244_v53, %v3949_v16 }
  0x28   : > { %3697 = vst.msk [vmem:[%s3919_s24 + $0x3e0] sm:$0xff] %vm169_vm0, %v4116_v0  ;;  %3698 = vst.msk [vmem:[%s3919_s24 + $0x3e8] sm:$0xff] %vm169_vm0, %v4129_v7  ;;  %v4149_v13 = vld [vmem:[%s3909_s23 + $0xf8] sm:$0xff]  ;;  %v443_v14 = vsel %vm437_vm1, %v442_v59, %v391_v2  ;;  %v504_v17 = vsel %vm437_vm1, %v391_v2, %v442_v59  ;;  %v626_v18 = vsel %vm620_vm2, %v625_v60, %v590_v3 }
  0x29   : > { %3699 = vst.msk [vmem:[%s3919_s24 + $0x3f0] sm:$0xff] %vm169_vm0, %v4132_v8  ;;  %v687_v19 = vsel %vm620_vm2, %v590_v3, %v625_v60  ;;  %3700 = vst.msk [vmem:[%s3919_s24 + $0x3f8] sm:$0xff] %vm169_vm0, %v4149_v13  ;;  %v528_v15 = vsel %vm518_vm3, %v504_v17, -inf  ;;  %v561_v20 = vmax.f32 %v4074_v52, %v443_v14  ;;  %v4164_v26 = vsel %vm771_vm5, %v778_v61, %v779_v4 }
  0x2a   : > { %v711_v24 = vsel %vm701_vm4, %v687_v19, -inf  ;;  %v560_v27 = vmax.f32 %v4050_v46, %v528_v15  ;;  %v870_v32 = vsel %vm771_vm5, %v779_v4, %v778_v61  ;;  %v4173_v33 = vsel %vm954_vm6, %v962_v6, %v961_v62 }
  0x2b   : > { %v4176_v39 = vmax.f32 %v561_v20, %v626_v18  ;;  %v4180_v41 = vsel %vm887_vm7, %v870_v32, -inf  ;;  %v4188_v54 = vmax.f32 %v312_v9, %v3989_v28  ;;  %v247_v59 = vmax.f32 %v3992_v29, %v3965_v21 }
  0x2c   : > { %v4185_v48 = vmax.f32 %v560_v27, %v711_v24  ;;  %v279_v60 = vmax.f32 %v245_v55, %v3965_v21  ;;  %v314_v2 = vmax.f32 %v278_v47, %v3989_v28  ;;  %v4197_v3 = vmax.f32 %v313_v34, %v3992_v29 }
  0x2d   : > { %v927_v61 = vmax.f32 %v4176_v39, %v4180_v41  ;;  %v248_v16 = vmax.f32 %v3995_v30, %v3968_v22  ;;  %v280_v4 = vmax.f32 %v246_v45, %v3968_v22  ;;  %v249_v9 = vmax.f32 %v4013_v35, %v3971_v23 }
  0x2e   : > { %v315_v53 = vmax.f32 %v279_v60, %v3992_v29  ;;  %v281_v21 = vmax.f32 %v247_v59, %v3971_v23  ;;  %v4207_v55 = vmax.f32 %v314_v2, %v3995_v30  ;;  %v250_v11 = vmax.f32 %v4016_v36, %v3989_v28 }
  0x2f   : > { %v282_v14 = vmax.f32 %v248_v16, %v3989_v28  ;;  %v251_v17 = vmax.f32 %v4019_v37, %v3992_v29  ;;  %v316_v18 = vmax.f32 %v280_v4, %v3995_v30  ;;  %v283_v23 = vmax.f32 %v249_v9, %v3992_v29 }
  0x30   : > { %v317_v22 = vmax.f32 %v281_v21, %v4013_v35  ;;  %v4217_v19 = vmax.f32 %v315_v53, %v4013_v35  ;;  %v252_v20 = vmax.f32 %v4040_v42, %v3995_v30  ;;  %v284_v24 = vmax.f32 %v250_v11, %v3995_v30 }
  0x31   : > { %v318_v15 = vmax.f32 %v282_v14, %v4016_v36  ;;  %v253_v28 = vmax.f32 %v4043_v43, %v4013_v35  ;;  %v4227_v27 = vmax.f32 %v316_v18, %v4016_v36  ;;  %v319_v32 = vmax.f32 %v283_v23, %v4019_v37 }
  0x32   : > { %v4231_v34 = vmax.f32 %v317_v22, %v4019_v37  ;;  %v285_v29 = vmax.f32 %v251_v17, %v4013_v35  ;;  %v320_v45 = vmax.f32 %v284_v24, %v4040_v42  ;;  %v254_v30 = vmax.f32 %v4046_v44, %v4016_v36 }
  0x33   : > { %v4236_v47 = vmax.f32 %v318_v15, %v4040_v42  ;;  %v286_v59 = vmax.f32 %v252_v20, %v4016_v36  ;;  %v4243_v2 = vmax.f32 %v319_v32, %v4043_v43  ;;  %v255_v16 = vmax.f32 %v4065_v49, %v4019_v37 }
  0x34   : > { %v321_v60 = vmax.f32 %v285_v29, %v4043_v43  ;;  %v287_v35 = vmax.f32 %v253_v28, %v4019_v37  ;;  %v4250_v4 = vmax.f32 %v320_v45, %v4046_v44  ;;  %v256_v9 = vmax.f32 %v4068_v50, %v4040_v42 }
  0x35   : > { %v322_v53 = vmax.f32 %v286_v59, %v4046_v44  ;;  %v288_v36 = vmax.f32 %v254_v30, %v4040_v42  ;;  %v257_v14 = vmax.f32 %v4071_v51, %v4043_v43  ;;  %v289_v37 = vmax.f32 %v255_v16, %v4043_v43 }
  0x36   : > { %v323_v21 = vmax.f32 %v287_v35, %v4065_v49  ;;  %v4257_v11 = vmax.f32 %v321_v60, %v4065_v49  ;;  %v258_v22 = vmax.f32 %v4091_v56, %v4046_v44  ;;  %v290_v42 = vmax.f32 %v256_v9, %v4046_v44 }
  0x37   : > { %v324_v17 = vmax.f32 %v288_v36, %v4068_v50  ;;  %v4264_v18 = vmax.f32 %v322_v53, %v4068_v50  ;;  %v325_v23 = vmax.f32 %v289_v37, %v4071_v51  ;;  %v259_v20 = vmax.f32 %v4094_v57, %v4065_v49 }
  0x38   : > { %v4271_v15 = vmax.f32 %v323_v21, %v4071_v51  ;;  %v291_v43 = vmax.f32 %v257_v14, %v4065_v49  ;;  %v326_v24 = vmax.f32 %v290_v42, %v4091_v56  ;;  %v292_v32 = vmax.f32 %v258_v22, %v4068_v50 }
  0x39   : > { %v4278_v28 = vmax.f32 %v324_v17, %v4091_v56  ;;  %v260_v44 = vmax.f32 %v4097_v58, %v4068_v50  ;;  %v4285_v45 = vmax.f32 %v325_v23, %v4094_v57  ;;  %v293_v30 = vmax.f32 %v259_v20, %v4071_v51 }
  0x3a   : > { %v327_v29 = vmax.f32 %v291_v43, %v4094_v57  ;;  %v262_v49 = vmax.f32 %v4116_v0, %v4091_v56  ;;  %v4291_v59 = vmax.f32 %v326_v24, %v4097_v58  ;;  %v328_v60 = vmax.f32 %v292_v32, %v4097_v58 }
  0x3b   : > { %v264_v16 = vmax.f32 %v4132_v8, %v4097_v58  ;;  %v294_v50 = vmax.f32 %v260_v44, %v4091_v56  ;;  %v329_v53 = vmax.f32 %v293_v30, %v4113_v63  ;;  %v261_v36 = vmax.f32 %v4113_v63, %v4071_v51 }
  0x3c   : > { %v4298_v35 = vmax.f32 %v327_v29, %v4113_v63  ;;  %v296_v9 = vmax.f32 %v262_v49, %v4097_v58  ;;  %v4305_v21 = vmax.f32 %v328_v60, %v4116_v0  ;;  %v263_v56 = vmax.f32 %v4129_v7, %v4094_v57 }
  0x3d   : > { %v4308_v14 = vmax.f32 %v264_v16, %v4116_v0  ;;  %v330_v37 = vmax.f32 %v294_v50, %v4116_v0  ;;  %v4314_v17 = vmax.f32 %v329_v53, %v4129_v7  ;;  %v265_v51 = vmax.f32 %v4149_v13, %v4113_v63 }
  0x3e   : > { %v4317_v22 = vmax.f32 %v296_v9, %v4132_v8  ;;  %v295_v58 = vmax.f32 %v261_v36, %v4094_v57  ;;  %v297_v60 = vmax.f32 %v263_v56, %v4113_v63  ;;  %v389_v53 = vrot.slane %v3998_v31, 6 }
  0x3f   : > { %v4326_v20 = vmax.f32 %v330_v37, %v4132_v8  ;;  %v4340_v16 = vmax.f32 %v265_v51, %v4129_v7  ;;  %v438_v9 = vrot.slane %v3975_v25, 6  ;;  %v588_v36 = vrot.slane %v3998_v31, 7 }
  0x40   : > { %v331_v50 = vmax.f32 %v295_v58, %v4129_v7  ;;  %v621_v37 = vrot.slane %v3975_v25, 7  ;;  %v4348_v30 = vmax.f32 %v297_v60, %v4149_v13  ;;  %v772_v63 = vrot.slane %v3975_v25, 1 }
  0x41   : > { %v464_v57 = vrot.slane %v4326_v20, 6  ;;  %v773_v56 = vrot.slane %v3998_v31, 1  ;;  %v502_v7 = vsel %vm437_vm1, %v389_v53, %v438_v9  ;;  %v926_v58 = vmax.f32 %v4185_v48, %v4164_v26 }
  0x42   : > { %v4351_v44 = vmax.f32 %v331_v50, %v4149_v13  ;;  %v685_v51 = vsel %vm620_vm2, %v588_v36, %v621_v37  ;;  %v955_v8 = vrot.slane %v3975_v25, 2  ;;  %v524_v32 = vsel %vm518_vm3, %v502_v7, -inf }
  0x43   : > { %v707_v26 = vsel %vm701_vm4, %v685_v51, -inf  ;;  %v556_v60 = vmax.f32 %v3975_v25, %v524_v32  ;;  %v774_v50 = vsel %vm771_vm5, %v772_v63, %v773_v56  ;;  %v956_v29 = vrot.slane %v3998_v31, 2 }
  0x44   : > { %v402_v49 = vrot.slane %v4351_v44, 6  ;;  %v963_v7 = vsel %vm954_vm6, %v961_v62, %v962_v6  ;;  %v439_v51 = vsel %vm437_vm1, %v438_v9, %v389_v53  ;;  %v622_v32 = vsel %vm620_vm2, %v621_v37, %v588_v36 }
  0x45   : > { %v557_v25 = vmax.f32 %v3998_v31, %v439_v51  ;;  %v957_v13 = vsel %vm954_vm6, %v955_v8, %v956_v29  ;;  %v868_v0 = vsel %vm771_vm5, %v773_v56, %v772_v63  ;;  %v1051_v52 = vsel %vm954_vm6, %v956_v29, %v955_v8 }
  0x46   : > { %v4371_v48 = vsel %vm437_vm1, %v464_v57, %v402_v49  ;;  %v4374_v24 = vsel %vm437_vm1, %v402_v49, %v464_v57  ;;  %v739_v57 = vmax.f32 %v556_v60, %v707_v26  ;;  %v4387_v49 = vmax.f32 %v926_v58, %v963_v7 }
  0x47   : > { %v1078_v46 = vsel %vm1070_vm8, %v4173_v33, -inf  ;;  %v740_v6 = vmax.f32 %v557_v25, %v622_v32  ;;  %v891_v31 = vsel %vm887_vm7, %v868_v0, -inf  ;;  %v1074_v53 = vsel %vm1070_vm8, %v1051_v52, -inf }
  0x48   : > { %v922_v62 = vmax.f32 %v739_v57, %v774_v50  ;;  %3705 = vst.msk [vmem:[%s3919_s24 + $0x220] sm:$0xff] %vm169_vm0, %v4387_v49  ;;  %v4407_v29 = vmax.f32 %v927_v61, %v1078_v46  ;;  %v390_v8 = vrot.slane %v4026_v40, 6  ;;  %v440_v33 = vrot.slane %v4022_v38, 6 }
  0x49   : > { %v589_v9 = vrot.slane %v4026_v40, 7  ;;  %v923_v37 = vmax.f32 %v740_v6, %v891_v31  ;;  %v623_v63 = vrot.slane %v4022_v38, 7  ;;  %v775_v0 = vrot.slane %v4022_v38, 1 }
  0x4a   : > { %v4412_v36 = vmax.f32 %v922_v62, %v957_v13  ;;  %3706 = vst.msk [vmem:[%s3919_s24 + $0x228] sm:$0xff] %vm169_vm0, %v4407_v29  ;;  %v503_v39 = vsel %vm437_vm1, %v390_v8, %v440_v33  ;;  %v776_v41 = vrot.slane %v4026_v40, 1  ;;  %v958_v61 = vrot.slane %v4022_v38, 2 }
  0x4b   : > { %v959_v56 = vrot.slane %v4026_v40, 2  ;;  %v4428_v60 = vmax.f32 %v923_v37, %v1074_v53  ;;  %v526_v13 = vsel %vm518_vm3, %v503_v39, -inf  ;;  %v686_v50 = vsel %vm620_vm2, %v589_v9, %v623_v63 }
  0x4c   : > { %3701 = vst.msk [vmem:[%s3919_s24 + $0x200] sm:$0xff] %vm169_vm0, %v4412_v36  ;;  %v1206_v58 = vmax.f32 %v4387_v49, %v4412_v36  ;;  %v558_v26 = vmax.f32 %v4022_v38, %v526_v13  ;;  %v709_v7 = vsel %vm701_vm4, %v686_v50, -inf  ;;  %v777_v51 = vsel %vm771_vm5, %v775_v0, %v776_v41 }
  0x4d   : > { %v960_v57 = vsel %vm954_vm6, %v958_v61, %v959_v56  ;;  %3702 = vst.msk [vmem:[%s3919_s24 + $0x208] sm:$0xff] %vm169_vm0, %v4428_v60  ;;  %v1207_v25 = vmax.f32 %v4407_v29, %v4428_v60  ;;  %v441_v32 = vsel %vm437_vm1, %v440_v33, %v390_v8  ;;  %v624_v52 = vsel %vm620_vm2, %v623_v63, %v589_v9 }
  0x4e   : > { %v869_v46 = vsel %vm771_vm5, %v776_v41, %v775_v0  ;;  %v741_v38 = vmax.f32 %v558_v26, %v709_v7  ;;  %v559_v62 = vmax.f32 %v4026_v40, %v441_v32  ;;  %v1052_v31 = vsel %vm954_vm6, %v959_v56, %v958_v61 }
  0x4f   : > { %v893_v6 = vsel %vm887_vm7, %v869_v46, -inf  ;;  %v1076_v53 = vsel %vm1070_vm8, %v1052_v31, -inf  ;;  %v392_v37 = vrot.slane %v4140_v12, 6  ;;  %v444_v39 = vrot.slane %v4136_v10, 6 }
  0x50   : > { %v591_v8 = vrot.slane %v4140_v12, 7  ;;  %v924_v33 = vmax.f32 %v741_v38, %v777_v51  ;;  %v742_v9 = vmax.f32 %v559_v62, %v624_v52  ;;  %v627_v63 = vrot.slane %v4136_v10, 7 }
  0x51   : > { %v781_v40 = vrot.slane %v4136_v10, 1  ;;  %v505_v0 = vsel %vm437_vm1, %v392_v37, %v444_v39  ;;  %v782_v41 = vrot.slane %v4140_v12, 1  ;;  %v964_v61 = vrot.slane %v4136_v10, 2 }
  0x52   : > { %v965_v56 = vrot.slane %v4140_v12, 2  ;;  %v4461_v13 = vmax.f32 %v924_v33, %v960_v57  ;;  %v925_v50 = vmax.f32 %v742_v9, %v893_v6  ;;  %v530_v26 = vsel %vm518_vm3, %v505_v0, -inf }
  0x53   : > { %v688_v7 = vsel %vm620_vm2, %v591_v8, %v627_v63  ;;  %v562_v51 = vmax.f32 %v4136_v10, %v530_v26  ;;  %v783_v52 = vsel %vm771_vm5, %v781_v40, %v782_v41  ;;  %v445_v31 = vsel %vm437_vm1, %v444_v39, %v392_v37 }
  0x54   : > { %v713_v32 = vsel %vm701_vm4, %v688_v7, -inf  ;;  %v966_v46 = vsel %vm954_vm6, %v964_v61, %v965_v56  ;;  %3703 = vst.msk [vmem:[%s3919_s24 + $0x210] sm:$0xff] %vm169_vm0, %v4461_v13  ;;  %v1238_v57 = vmax.f32 %v4461_v13, %v4412_v36  ;;  %v4477_v38 = vmax.f32 %v1206_v58, %v4461_v13 }
  0x55   : > { %v4481_v10 = vmax.f32 %v925_v50, %v1076_v53  ;;  %v745_v6 = vmax.f32 %v562_v51, %v713_v32  ;;  %v628_v33 = vsel %vm620_vm2, %v627_v63, %v591_v8  ;;  %v871_v9 = vsel %vm771_vm5, %v782_v41, %v781_v40 }
  0x56   : > { %v4487_v0 = vmax.f32 %v1238_v57, %v4387_v49  ;;  %v563_v39 = vmax.f32 %v4140_v12, %v445_v31  ;;  %v897_v8 = vsel %vm887_vm7, %v871_v9, -inf  ;;  %v1054_v63 = vsel %vm954_vm6, %v965_v56, %v964_v61 }
  0x57   : > { %3704 = vst.msk [vmem:[%s3919_s24 + $0x218] sm:$0xff] %vm169_vm0, %v4481_v10  ;;  %v1239_v58 = vmax.f32 %v4481_v10, %v4428_v60  ;;  %v4495_v26 = vmax.f32 %v1207_v25, %v4481_v10  ;;  %v928_v37 = vmax.f32 %v745_v6, %v783_v52  ;;  %v1080_v41 = vsel %vm1070_vm8, %v1054_v63, -inf }
  0x58   : > { %v393_v25 = vrot.slane %v4197_v3, 6  ;;  %v446_v50 = vrot.slane %v4188_v54, 6  ;;  %v746_v51 = vmax.f32 %v563_v39, %v628_v33  ;;  %v592_v12 = vrot.slane %v4197_v3, 7 }
  0x59   : > { %v4504_v40 = vmax.f32 %v1239_v58, %v4407_v29  ;;  %v4510_v7 = vmax.f32 %v928_v37, %v966_v46  ;;  %v629_v32 = vrot.slane %v4188_v54, 7  ;;  %v784_v61 = vrot.slane %v4188_v54, 1 }
  0x5a   : > { %v506_v52 = vsel %vm437_vm1, %v393_v25, %v446_v50  ;;  %v785_v56 = vrot.slane %v4197_v3, 1  ;;  %v967_v57 = vrot.slane %v4188_v54, 2  ;;  %v929_v31 = vmax.f32 %v746_v51, %v897_v8 }
  0x5b   : > { %3707 = vst.msk [vmem:[%s3919_s24 + $0x230] sm:$0xff] %vm169_vm0, %v4510_v7  ;;  %v1208_v46 = vmax.f32 %v4510_v7, %v4461_v13  ;;  %v1276_v6 = vmax.f32 %v4477_v38, %v4510_v7  ;;  %v532_v33 = vsel %vm518_vm3, %v506_v52, -inf  ;;  %v689_v58 = vsel %vm620_vm2, %v592_v12, %v629_v32 }
  0x5c   : > { %v564_v9 = vmax.f32 %v4188_v54, %v532_v33  ;;  %v786_v37 = vsel %vm771_vm5, %v784_v61, %v785_v56  ;;  %v968_v39 = vrot.slane %v4197_v3, 2  ;;  %v4534_v53 = vmax.f32 %v929_v31, %v1080_v41 }
  0x5d   : > { %v4532_v63 = vmax.f32 %v1208_v46, %v4387_v49  ;;  %v715_v38 = vsel %vm701_vm4, %v689_v58, -inf  ;;  %v447_v8 = vsel %vm437_vm1, %v446_v50, %v393_v25  ;;  %v630_v33 = vsel %vm620_vm2, %v629_v32, %v592_v12 }
  0x5e   : > { %v747_v51 = vmax.f32 %v564_v9, %v715_v38  ;;  %v969_v52 = vsel %vm954_vm6, %v967_v57, %v968_v39  ;;  %v565_v54 = vmax.f32 %v4197_v3, %v447_v8  ;;  %3708 = vst.msk [vmem:[%s3919_s24 + $0x238] sm:$0xff] %vm169_vm0, %v4534_v53  ;;  %v1209_v46 = vmax.f32 %v4534_v53, %v4481_v10 }
  0x5f   : > { %6602 = vst [vmem:[#allocation3_spill] sm:$0xff] %v4532_v63  ;;  %v1277_v41 = vmax.f32 %v4495_v26, %v4534_v53  ;;  %v872_v31 = vsel %vm771_vm5, %v785_v56, %v784_v61  ;;  %v1055_v25 = vsel %vm954_vm6, %v968_v39, %v967_v57  ;;  %v394_v58 = vrot.slane %v4217_v19, 6 }
  0x60   : > { %v930_v50 = vmax.f32 %v747_v51, %v786_v37  ;;  %v748_v9 = vmax.f32 %v565_v54, %v630_v33  ;;  %v899_v3 = vsel %vm887_vm7, %v872_v31, -inf  ;;  %v1082_v12 = vsel %vm1070_vm8, %v1055_v25, -inf }
  0x61   : > { %v4556_v32 = vmax.f32 %v1209_v46, %v4407_v29  ;;  %v448_v26 = vrot.slane %v4207_v55, 6  ;;  %v593_v61 = vrot.slane %v4217_v19, 7  ;;  %v631_v37 = vrot.slane %v4207_v55, 7 }
  0x62   : > { %v4561_v56 = vmax.f32 %v930_v50, %v969_v52  ;;  %v931_v57 = vmax.f32 %v748_v9, %v899_v3  ;;  %v787_v39 = vrot.slane %v4207_v55, 1  ;;  %v788_v8 = vrot.slane %v4217_v19, 1 }
  0x63   : > { %v507_v38 = vsel %vm437_vm1, %v394_v58, %v448_v26  ;;  %v970_v51 = vrot.slane %v4207_v55, 2  ;;  %v971_v54 = vrot.slane %v4217_v19, 2  ;;  %v690_v50 = vsel %vm620_vm2, %v593_v61, %v631_v37 }
  0x64   : > { %3709 = vst.msk [vmem:[%s3919_s24 + $0x240] sm:$0xff] %vm169_vm0, %v4561_v56  ;;  %v1210_v52 = vmax.f32 %v4561_v56, %v4387_v49  ;;  %v4577_v46 = vmax.f32 %v1276_v6, %v4561_v56  ;;  %v4579_v31 = vmax.f32 %v931_v57, %v1082_v12  ;;  %v534_v25 = vsel %vm518_vm3, %v507_v38, -inf }
  0x65   : > { %v789_v9 = vsel %vm771_vm5, %v787_v39, %v788_v8  ;;  %v972_v3 = vsel %vm954_vm6, %v970_v51, %v971_v54  ;;  %v566_v57 = vmax.f32 %v4207_v55, %v534_v25  ;;  %v717_v38 = vsel %vm701_vm4, %v690_v50, -inf }
  0x66   : > { %3710 = vst.msk [vmem:[%s3919_s24 + $0x248] sm:$0xff] %vm169_vm0, %v4579_v31  ;;  %v1211_v33 = vmax.f32 %v4579_v31, %v4407_v29  ;;  %v4594_v12 = vmax.f32 %v1277_v41, %v4579_v31  ;;  %v4600_v62 = vmax.f32 %v1210_v52, %v4510_v7  ;;  %v449_v23 = vsel %vm437_vm1, %v448_v26, %v394_v58 }
  0x67   : > { %v632_v43 = vsel %vm620_vm2, %v631_v37, %v593_v61  ;;  %v749_v42 = vmax.f32 %v566_v57, %v717_v38  ;;  %v567_v63 = vmax.f32 %v4217_v19, %v449_v23  ;;  %v873_v6 = vsel %vm771_vm5, %v788_v8, %v787_v39 }
  0x68   : > { %6603 = vst [vmem:[#allocation4_spill] sm:$0xff] %v4600_v62  ;;  %v1056_v41 = vsel %vm954_vm6, %v971_v54, %v970_v51  ;;  %v901_v55 = vsel %vm887_vm7, %v873_v6, -inf  ;;  %v4612_v52 = vmax.f32 %v1211_v33, %v4534_v53  ;;  %v395_v58 = vrot.slane %v4231_v34, 6 }
  0x69   : > { %v1084_v25 = vsel %vm1070_vm8, %v1056_v41, -inf  ;;  %v932_v26 = vmax.f32 %v749_v42, %v789_v9  ;;  %v750_v61 = vmax.f32 %v567_v63, %v632_v43  ;;  %v450_v19 = vrot.slane %v4227_v27, 6 }
  0x6a   : > { %6604 = vst [vmem:[#allocation5_spill] sm:$0xff] %v4612_v52  ;;  %v594_v23 = vrot.slane %v4231_v34, 7  ;;  %v633_v37 = vrot.slane %v4227_v27, 7  ;;  %v790_v39 = vrot.slane %v4227_v27, 1  ;;  %v791_v8 = vrot.slane %v4231_v34, 1 }
  0x6b   : > { %v973_v51 = vrot.slane %v4227_v27, 2  ;;  %v4621_v54 = vmax.f32 %v932_v26, %v972_v3  ;;  %v933_v33 = vmax.f32 %v750_v61, %v901_v55  ;;  %v508_v42 = vsel %vm437_vm1, %v395_v58, %v450_v19 }
  0x6c   : > { %v974_v43 = vrot.slane %v4231_v34, 2  ;;  %v536_v63 = vsel %vm518_vm3, %v508_v42, -inf  ;;  %v691_v50 = vsel %vm620_vm2, %v594_v23, %v633_v37  ;;  %v792_v9 = vsel %vm771_vm5, %v790_v39, %v791_v8 }
  0x6d   : > { %v451_v6 = vsel %vm437_vm1, %v450_v19, %v395_v58  ;;  %3711 = vst.msk [vmem:[%s3919_s24 + $0x250] sm:$0xff] %vm169_vm0, %v4621_v54  ;;  %v1212_v3 = vmax.f32 %v4621_v54, %v4510_v7  ;;  %v4637_v38 = vmax.f32 %v933_v33, %v1084_v25  ;;  %v568_v41 = vmax.f32 %v4227_v27, %v536_v63 }
  0x6e   : > { %v719_v55 = vsel %vm701_vm4, %v691_v50, -inf  ;;  %v975_v26 = vsel %vm954_vm6, %v973_v51, %v974_v43  ;;  %v569_v58 = vmax.f32 %v4231_v34, %v451_v6  ;;  %v634_v61 = vsel %vm620_vm2, %v633_v37, %v594_v23 }
  0x6f   : > { %3712 = vst.msk [vmem:[%s3919_s24 + $0x258] sm:$0xff] %vm169_vm0, %v4637_v38  ;;  %v1213_v19 = vmax.f32 %v4637_v38, %v4534_v53  ;;  %v751_v33 = vmax.f32 %v568_v41, %v719_v55  ;;  %v4653_v27 = vmax.f32 %v1212_v3, %v4561_v56  ;;  %v874_v63 = vsel %vm771_vm5, %v791_v8, %v790_v39 }
  0x70   : > { %v752_v42 = vmax.f32 %v569_v58, %v634_v61  ;;  %v1057_v34 = vsel %vm954_vm6, %v974_v43, %v973_v51  ;;  %v396_v23 = vrot.slane %v4243_v2, 6  ;;  %v903_v50 = vsel %vm887_vm7, %v874_v63, -inf }
  0x71   : > { %6605 = vst [vmem:[#allocation6_spill] sm:$0xff] %v4653_v27  ;;  %v934_v37 = vmax.f32 %v751_v33, %v792_v9  ;;  %v1086_v6 = vsel %vm1070_vm8, %v1057_v34, -inf  ;;  %v4663_v41 = vmax.f32 %v1213_v19, %v4579_v31  ;;  %v452_v55 = vrot.slane %v4236_v47, 6 }
  0x72   : > { %v935_v3 = vmax.f32 %v752_v42, %v903_v50  ;;  %v595_v39 = vrot.slane %v4243_v2, 7  ;;  %v635_v8 = vrot.slane %v4236_v47, 7  ;;  %v793_v43 = vrot.slane %v4236_v47, 1 }
  0x73   : > { %6606 = vst [vmem:[#allocation7_spill] sm:$0xff] %v4663_v41  ;;  %v4668_v51 = vmax.f32 %v934_v37, %v975_v26  ;;  %v794_v9 = vrot.slane %v4243_v2, 1  ;;  %v976_v58 = vrot.slane %v4236_v47, 2  ;;  %v509_v19 = vsel %vm437_vm1, %v396_v23, %v452_v55 }
  0x74   : > { %v4673_v61 = vmax.f32 %v935_v3, %v1086_v6  ;;  %v692_v33 = vsel %vm620_vm2, %v595_v39, %v635_v8  ;;  %v977_v42 = vrot.slane %v4243_v2, 2  ;;  %v538_v34 = vsel %vm518_vm3, %v509_v19, -inf }
  0x75   : > { %3713 = vst.msk [vmem:[%s3919_s24 + $0x260] sm:$0xff] %vm169_vm0, %v4668_v51  ;;  %v1214_v26 = vmax.f32 %v4668_v51, %v4561_v56  ;;  %v721_v37 = vsel %vm701_vm4, %v692_v33, -inf  ;;  %v570_v3 = vmax.f32 %v4236_v47, %v538_v34  ;;  %v795_v25 = vsel %vm771_vm5, %v793_v43, %v794_v9 }
  0x76   : > { %3714 = vst.msk [vmem:[%s3919_s24 + $0x268] sm:$0xff] %vm169_vm0, %v4673_v61  ;;  %v1215_v50 = vmax.f32 %v4673_v61, %v4579_v31  ;;  %v978_v63 = vsel %vm954_vm6, %v976_v58, %v977_v42  ;;  %v453_v33 = vsel %vm437_vm1, %v452_v55, %v396_v23  ;;  %v636_v57 = vsel %vm620_vm2, %v635_v8, %v595_v39 }
  0x77   : > { %v4700_v19 = vmax.f32 %v1214_v26, %v4621_v54  ;;  %v753_v27 = vmax.f32 %v570_v3, %v721_v37  ;;  %v571_v52 = vmax.f32 %v4243_v2, %v453_v33  ;;  %v875_v62 = vsel %vm771_vm5, %v794_v9, %v793_v43 }
  0x78   : > { %v1058_v6 = vsel %vm954_vm6, %v977_v42, %v976_v58  ;;  %v905_v47 = vsel %vm887_vm7, %v875_v62, -inf  ;;  %v4712_v26 = vmax.f32 %v1215_v50, %v4637_v38  ;;  %v397_v23 = vrot.slane %v4257_v11, 6 }
  0x79   : > { %6607 = vst [vmem:[#allocation8_spill] sm:$0xff] %v4700_v19  ;;  %v1088_v34 = vsel %vm1070_vm8, %v1058_v6, -inf  ;;  %v936_v55 = vmax.f32 %v753_v27, %v795_v25  ;;  %v754_v39 = vmax.f32 %v571_v52, %v636_v57  ;;  %v454_v2 = vrot.slane %v4250_v4, 6 }
  0x7a   : > { %6608 = vst [vmem:[#allocation9_spill] sm:$0xff] %v4712_v26  ;;  %v596_v8 = vrot.slane %v4257_v11, 7  ;;  %v637_v43 = vrot.slane %v4250_v4, 7  ;;  %v796_v9 = vrot.slane %v4250_v4, 1  ;;  %v797_v62 = vrot.slane %v4257_v11, 1 }
  0x7b   : > { %v979_v58 = vrot.slane %v4250_v4, 2  ;;  %v4721_v42 = vmax.f32 %v936_v55, %v978_v63  ;;  %v937_v37 = vmax.f32 %v754_v39, %v905_v47  ;;  %v510_v25 = vsel %vm437_vm1, %v397_v23, %v454_v2 }
  0x7c   : > { %v980_v52 = vrot.slane %v4257_v11, 2  ;;  %v540_v57 = vsel %vm518_vm3, %v510_v25, -inf  ;;  %v693_v27 = vsel %vm620_vm2, %v596_v8, %v637_v43  ;;  %v798_v50 = vsel %vm771_vm5, %v796_v9, %v797_v62 }
  0x7d   : > { %v455_v6 = vsel %vm437_vm1, %v454_v2, %v397_v23  ;;  %3715 = vst.msk [vmem:[%s3919_s24 + $0x270] sm:$0xff] %vm169_vm0, %v4721_v42  ;;  %v1216_v63 = vmax.f32 %v4721_v42, %v4621_v54  ;;  %v4737_v33 = vmax.f32 %v937_v37, %v1088_v34  ;;  %v572_v47 = vmax.f32 %v4250_v4, %v540_v57 }
  0x7e   : > { %v723_v55 = vsel %vm701_vm4, %v693_v27, -inf  ;;  %v981_v39 = vsel %vm954_vm6, %v979_v58, %v980_v52  ;;  %v573_v23 = vmax.f32 %v4257_v11, %v455_v6  ;;  %v638_v2 = vsel %vm620_vm2, %v637_v43, %v596_v8 }
  0x7f   : > { %3716 = vst.msk [vmem:[%s3919_s24 + $0x278] sm:$0xff] %vm169_vm0, %v4737_v33  ;;  %v1217_v25 = vmax.f32 %v4737_v33, %v4637_v38  ;;  %v755_v37 = vmax.f32 %v572_v47, %v723_v55  ;;  %v4753_v4 = vmax.f32 %v1216_v63, %v4668_v51  ;;  %v876_v27 = vsel %vm771_vm5, %v797_v62, %v796_v9 }
  0x80   : > { %v756_v57 = vmax.f32 %v573_v23, %v638_v2  ;;  %v1059_v11 = vsel %vm954_vm6, %v980_v52, %v979_v58  ;;  %v398_v8 = vrot.slane %v4271_v15, 6  ;;  %v907_v6 = vsel %vm887_vm7, %v876_v27, -inf }
  0x81   : > { %6609 = vst [vmem:[#allocation10_spill] sm:$0xff] %v4753_v4  ;;  %v938_v43 = vmax.f32 %v755_v37, %v798_v50  ;;  %v1090_v3 = vsel %vm1070_vm8, %v1059_v11, -inf  ;;  %v4763_v47 = vmax.f32 %v1217_v25, %v4673_v61  ;;  %v456_v55 = vrot.slane %v4264_v18, 6 }
  0x82   : > { %v939_v63 = vmax.f32 %v756_v57, %v907_v6  ;;  %v597_v9 = vrot.slane %v4271_v15, 7  ;;  %v639_v62 = vrot.slane %v4264_v18, 7  ;;  %v799_v52 = vrot.slane %v4264_v18, 1 }
  0x83   : > { %6610 = vst [vmem:[#allocation11_spill] sm:$0xff] %v4763_v47  ;;  %v4768_v58 = vmax.f32 %v938_v43, %v981_v39  ;;  %v800_v50 = vrot.slane %v4271_v15, 1  ;;  %v982_v23 = vrot.slane %v4264_v18, 2  ;;  %v511_v25 = vsel %vm437_vm1, %v398_v8, %v456_v55 }
  0x84   : > { %v4773_v2 = vmax.f32 %v939_v63, %v1090_v3  ;;  %v694_v37 = vsel %vm620_vm2, %v597_v9, %v639_v62  ;;  %v983_v57 = vrot.slane %v4271_v15, 2  ;;  %v542_v11 = vsel %vm518_vm3, %v511_v25, -inf }
  0x85   : > { %3717 = vst.msk [vmem:[%s3919_s24 + $0x280] sm:$0xff] %vm169_vm0, %v4768_v58  ;;  %v1218_v39 = vmax.f32 %v4768_v58, %v4668_v51  ;;  %v725_v3 = vsel %vm701_vm4, %v694_v37, -inf  ;;  %v574_v63 = vmax.f32 %v4264_v18, %v542_v11  ;;  %v801_v34 = vsel %vm771_vm5, %v799_v52, %v800_v50 }
  0x86   : > { %3718 = vst.msk [vmem:[%s3919_s24 + $0x288] sm:$0xff] %vm169_vm0, %v4773_v2  ;;  %v1219_v43 = vmax.f32 %v4773_v2, %v4673_v61  ;;  %v984_v27 = vsel %vm954_vm6, %v982_v23, %v983_v57  ;;  %v457_v37 = vsel %vm437_vm1, %v456_v55, %v398_v8  ;;  %v640_v4 = vsel %vm620_vm2, %v639_v62, %v597_v9 }
  0x87   : > { %v4800_v25 = vmax.f32 %v1218_v39, %v4721_v42  ;;  %v757_v26 = vmax.f32 %v574_v63, %v725_v3  ;;  %v575_v19 = vmax.f32 %v4271_v15, %v457_v37  ;;  %v877_v41 = vsel %vm771_vm5, %v800_v50, %v799_v52 }
  0x88   : > { %v1060_v6 = vsel %vm954_vm6, %v983_v57, %v982_v23  ;;  %v909_v18 = vsel %vm887_vm7, %v877_v41, -inf  ;;  %v4812_v39 = vmax.f32 %v1219_v43, %v4737_v33  ;;  %v399_v8 = vrot.slane %v4285_v45, 6 }
  0x89   : > { %6611 = vst [vmem:[#allocation12_spill] sm:$0xff] %v4800_v25  ;;  %v1092_v11 = vsel %vm1070_vm8, %v1060_v6, -inf  ;;  %v940_v55 = vmax.f32 %v757_v26, %v801_v34  ;;  %v758_v9 = vmax.f32 %v575_v19, %v640_v4  ;;  %v458_v15 = vrot.slane %v4278_v28, 6 }
  0x8a   : > { %6612 = vst [vmem:[#allocation13_spill] sm:$0xff] %v4812_v39  ;;  %v598_v62 = vrot.slane %v4285_v45, 7  ;;  %v641_v52 = vrot.slane %v4278_v28, 7  ;;  %v802_v50 = vrot.slane %v4278_v28, 1  ;;  %v803_v41 = vrot.slane %v4285_v45, 1 }
  0x8b   : > { %v985_v23 = vrot.slane %v4278_v28, 2  ;;  %v4821_v57 = vmax.f32 %v940_v55, %v984_v27  ;;  %v941_v3 = vmax.f32 %v758_v9, %v909_v18  ;;  %v512_v26 = vsel %vm437_vm1, %v399_v8, %v458_v15 }
  0x8c   : > { %v986_v19 = vrot.slane %v4285_v45, 2  ;;  %v544_v34 = vsel %vm518_vm3, %v512_v26, -inf  ;;  %v695_v4 = vsel %vm620_vm2, %v598_v62, %v641_v52  ;;  %v804_v43 = vsel %vm771_vm5, %v802_v50, %v803_v41 }
  0x8d   : > { %v459_v6 = vsel %vm437_vm1, %v458_v15, %v399_v8  ;;  %3719 = vst.msk [vmem:[%s3919_s24 + $0x290] sm:$0xff] %vm169_vm0, %v4821_v57  ;;  %v1220_v27 = vmax.f32 %v4821_v57, %v4721_v42  ;;  %v4837_v37 = vmax.f32 %v941_v3, %v1092_v11  ;;  %v576_v18 = vmax.f32 %v4278_v28, %v544_v34 }
  0x8e   : > { %v727_v55 = vsel %vm701_vm4, %v695_v4, -inf  ;;  %v987_v9 = vsel %vm954_vm6, %v985_v23, %v986_v19  ;;  %v577_v8 = vmax.f32 %v4285_v45, %v459_v6  ;;  %v642_v15 = vsel %vm620_vm2, %v641_v52, %v598_v62 }
  0x8f   : > { %3720 = vst.msk [vmem:[%s3919_s24 + $0x298] sm:$0xff] %vm169_vm0, %v4837_v37  ;;  %v1221_v26 = vmax.f32 %v4837_v37, %v4737_v33  ;;  %v759_v3 = vmax.f32 %v576_v18, %v727_v55  ;;  %v4853_v28 = vmax.f32 %v1220_v27, %v4768_v58  ;;  %v878_v4 = vsel %vm771_vm5, %v803_v41, %v802_v50 }
  0x90   : > { %v760_v34 = vmax.f32 %v577_v8, %v642_v15  ;;  %v1061_v45 = vsel %vm954_vm6, %v986_v19, %v985_v23  ;;  %v400_v62 = vrot.slane %v4298_v35, 6  ;;  %v911_v6 = vsel %vm887_vm7, %v878_v4, -inf }
  0x91   : > { %6613 = vst [vmem:[#allocation14_spill] sm:$0xff] %v4853_v28  ;;  %v942_v52 = vmax.f32 %v759_v3, %v804_v43  ;;  %v1094_v63 = vsel %vm1070_vm8, %v1061_v45, -inf  ;;  %v4863_v18 = vmax.f32 %v1221_v26, %v4773_v2  ;;  %v460_v55 = vrot.slane %v4291_v59, 6 }
  0x92   : > { %v943_v27 = vmax.f32 %v760_v34, %v911_v6  ;;  %v599_v50 = vrot.slane %v4298_v35, 7  ;;  %v643_v41 = vrot.slane %v4291_v59, 7  ;;  %v805_v19 = vrot.slane %v4291_v59, 1 }
  0x93   : > { %v4868_v23 = vmax.f32 %v942_v52, %v987_v9  ;;  %v806_v43 = vrot.slane %v4298_v35, 1  ;;  %v988_v8 = vrot.slane %v4291_v59, 2  ;;  %v513_v26 = vsel %vm437_vm1, %v400_v62, %v460_v55 }
  0x94   : > { %v4873_v15 = vmax.f32 %v943_v27, %v1094_v63  ;;  %v696_v3 = vsel %vm620_vm2, %v599_v50, %v643_v41  ;;  %v989_v34 = vrot.slane %v4298_v35, 2  ;;  %v546_v45 = vsel %vm518_vm3, %v513_v26, -inf }
  0x95   : > { %3721 = vst.msk [vmem:[%s3919_s24 + $0x2a0] sm:$0xff] %vm169_vm0, %v4868_v23  ;;  %v1222_v9 = vmax.f32 %v4868_v23, %v4768_v58  ;;  %v729_v63 = vsel %vm701_vm4, %v696_v3, -inf  ;;  %v578_v27 = vmax.f32 %v4291_v59, %v546_v45  ;;  %v807_v11 = vsel %vm771_vm5, %v805_v19, %v806_v43 }
  0x96   : > { %3722 = vst.msk [vmem:[%s3919_s24 + $0x2a8] sm:$0xff] %vm169_vm0, %v4873_v15  ;;  %v1223_v52 = vmax.f32 %v4873_v15, %v4773_v2  ;;  %v990_v4 = vsel %vm954_vm6, %v988_v8, %v989_v34  ;;  %v461_v3 = vsel %vm437_vm1, %v460_v55, %v400_v62  ;;  %v644_v28 = vsel %vm620_vm2, %v643_v41, %v599_v50 }
  0x97   : > { %v4900_v26 = vmax.f32 %v1222_v9, %v4821_v57  ;;  %v761_v39 = vmax.f32 %v578_v27, %v729_v63  ;;  %v579_v25 = vmax.f32 %v4298_v35, %v461_v3  ;;  %v879_v47 = vsel %vm771_vm5, %v806_v43, %v805_v19 }
  0x98   : > { %v1062_v6 = vsel %vm954_vm6, %v989_v34, %v988_v8  ;;  %v913_v59 = vsel %vm887_vm7, %v879_v47, -inf  ;;  %v4912_v9 = vmax.f32 %v1223_v52, %v4837_v37  ;;  %v6615_v62 = vrot.slane %v4305_v21, 6 }
  0x99   : > { %v1096_v45 = vsel %vm1070_vm8, %v1062_v6, -inf  ;;  %v6616_v55 = vrot.slane %v4314_v17, 6  ;;  %v944_v35 = vmax.f32 %v761_v39, %v807_v11  ;;  %v762_v41 = vmax.f32 %v579_v25, %v644_v28 }
  0x9a   : > { %6614 = vst [vmem:[#allocation15_spill] sm:$0xff] %v4912_v9  ;;  %v6617_v47 = vrot.slane %v4305_v21, 7  ;;  %v6618_v43 = vrot.slane %v4314_v17, 7  ;;  %v6619_v52 = vrot.slane %v4314_v17, 1  ;;  %v6620_v39 = vrot.slane %v4305_v21, 1 }
  0x9b   : > { %v514_v50 = vsel %vm437_vm1, %v6616_v55, %v6615_v62  ;;  %v991_v11 = vrot.slane %v4305_v21, 2  ;;  %v4935_v28 = vmax.f32 %v944_v35, %v990_v4  ;;  %v945_v6 = vmax.f32 %v762_v41, %v913_v59 }
  0x9c   : > { %v548_v19 = vsel %vm518_vm3, %v514_v50, -inf  ;;  %v697_v8 = vsel %vm620_vm2, %v6618_v43, %v6617_v47  ;;  %v810_v25 = vsel %vm771_vm5, %v6620_v39, %v6619_v52  ;;  %v992_v27 = vrot.slane %v4314_v17, 2 }
  0x9d   : > { %v580_v34 = vmax.f32 %v4305_v21, %v548_v19  ;;  %v731_v63 = vsel %vm701_vm4, %v697_v8, -inf  ;;  %v6621_v3 = vmov %v6616_v55  ;;  %v6622_v47 = vmov %v6618_v43  ;;  %3723 = vst.msk [vmem:[%s3919_s24 + $0x2b0] sm:$0xff] %vm169_vm0, %v4935_v28 }
  0x9e   : > { %v463_v55 = vsel %vm437_vm1, %v6615_v62, %v6621_v3  ;;  %v6623_v43 = vrot.slane %v4305_v21, 7  ;;  %v6624_v59 = vmov %v6620_v39  ;;  %v6625_v35 = vmov %v6619_v52 }
  0x9f   : > { %v763_v50 = vmax.f32 %v580_v34, %v731_v63  ;;  %v581_v19 = vmax.f32 %v4314_v17, %v463_v55  ;;  %v880_v41 = vsel %vm771_vm5, %v6625_v35, %v6624_v59  ;;  %v1224_v8 = vmax.f32 %v4935_v28, %v4821_v57 }
  0xa0   : > { %v646_v4 = vsel %vm620_vm2, %v6623_v43, %v6622_v47  ;;  %v4961_v63 = vmax.f32 %v945_v6, %v1096_v45  ;;  %v993_v52 = vsel %vm954_vm6, %v991_v11, %v992_v27  ;;  %v915_v21 = vsel %vm887_vm7, %v880_v41, -inf }
  0xa1   : > { %v946_v39 = vmax.f32 %v763_v50, %v810_v25  ;;  %v764_v3 = vmax.f32 %v581_v19, %v646_v4  ;;  %v1063_v17 = vsel %vm954_vm6, %v992_v27, %v991_v11  ;;  %v4975_v6 = vmax.f32 %v1224_v8, %v4868_v23 }
  0xa2   : > { %3724 = vst.msk [vmem:[%s3919_s24 + $0x2b8] sm:$0xff] %vm169_vm0, %v4961_v63  ;;  %v1225_v62 = vmax.f32 %v4961_v63, %v4837_v37  ;;  %v1098_v25 = vsel %vm1070_vm8, %v1063_v17, -inf  ;;  %v550_v11 = vsel %vm518_vm3, %v4374_v24, -inf  ;;  %v6627_v27 = vrot.slane %v4326_v20, 7 }
  0xa3   : > { %6626 = vst [vmem:[#allocation16_spill] sm:$0xff] %v4975_v6  ;;  %v4979_v55 = vmax.f32 %v946_v39, %v993_v52  ;;  %v947_v50 = vmax.f32 %v764_v3, %v915_v21  ;;  %v6628_v19 = vrot.slane %v4351_v44, 7  ;;  %v582_v4 = vmax.f32 %v4326_v20, %v550_v11 }
  0xa4   : > { %v4990_v43 = vmax.f32 %v1225_v62, %v4873_v15  ;;  %v6630_v35 = vrot.slane %v4351_v44, 1  ;;  %v6631_v41 = vrot.slane %v4326_v20, 1  ;;  %v6632_v39 = vrot.slane %v4351_v44, 2 }
  0xa5   : > { %v698_v47 = vsel %vm620_vm2, %v6628_v19, %v6627_v27  ;;  %3725 = vst.msk [vmem:[%s3919_s24 + $0x2c0] sm:$0xff] %vm169_vm0, %v4979_v55  ;;  %v5005_v52 = vmax.f32 %v947_v50, %v1098_v25  ;;  %v6633_v3 = vrot.slane %v4326_v20, 2  ;;  %v6634_v17 = vmov %v6628_v19 }
  0xa6   : > { %6629 = vst [vmem:[#allocation17_spill] sm:$0xff] %v4990_v43  ;;  %v733_v59 = vsel %vm701_vm4, %v698_v47, -inf  ;;  %v813_v24 = vsel %vm771_vm5, %v6631_v41, %v6630_v35  ;;  %v6635_v62 = vmov %v6627_v27  ;;  %v6636_v19 = vmax.f32 %v4351_v44, %v4371_v48 }
  0xa7   : > { %v996_v21 = vsel %vm954_vm6, %v6633_v3, %v6632_v39  ;;  %v648_v11 = vsel %vm620_vm2, %v6635_v62, %v6634_v17  ;;  %v765_v27 = vmax.f32 %v582_v4, %v733_v59  ;;  %v6637_v25 = vmov %v6631_v41  ;;  %3726 = vst.msk [vmem:[%s3919_s24 + $0x2c8] sm:$0xff] %vm169_vm0, %v5005_v52 }
  0xa8   : > { %v766_v47 = vmax.f32 %v6636_v19, %v648_v11  ;;  %v6638_v50 = vmov %v6630_v35  ;;  %v6639_v41 = vmov %v6633_v3  ;;  %v6640_v17 = vrot.slane %v4317_v22, 6 }
  0xa9   : > { %v881_v35 = vsel %vm771_vm5, %v6638_v50, %v6637_v25  ;;  %v1064_v3 = vsel %vm954_vm6, %v6632_v39, %v6639_v41  ;;  %v6641_v20 = vrot.slane %v4348_v30, 6  ;;  %v948_v62 = vmax.f32 %v765_v27, %v813_v24 }
  0xaa   : > { %v917_v48 = vsel %vm887_vm7, %v881_v35, -inf  ;;  %v1100_v59 = vsel %vm1070_vm8, %v1064_v3, -inf  ;;  %v6642_v25 = vrot.slane %v4317_v22, 7  ;;  %v6643_v50 = vrot.slane %v4348_v30, 7 }
  0xab   : > { %v516_v44 = vsel %vm437_vm1, %v6641_v20, %v6640_v17  ;;  %v949_v11 = vmax.f32 %v766_v47, %v917_v48  ;;  %v814_v3 = vrot.slane %v4317_v22, 1  ;;  %v815_v24 = vrot.slane %v4348_v30, 1 }
  0xac   : > { %v552_v19 = vsel %vm518_vm3, %v516_v44, -inf  ;;  %v699_v35 = vsel %vm620_vm2, %v6643_v50, %v6642_v25  ;;  %v5056_v27 = vmax.f32 %v948_v62, %v996_v21  ;;  %v997_v48 = vrot.slane %v4317_v22, 2 }
  0xad   : > { %v584_v41 = vmax.f32 %v4317_v22, %v552_v19  ;;  %v735_v39 = vsel %vm701_vm4, %v699_v35, -inf  ;;  %v5058_v47 = vmax.f32 %v949_v11, %v1100_v59  ;;  %v998_v17 = vrot.slane %v4348_v30, 2 }
  0xae   : > { %v816_v44 = vsel %vm771_vm5, %v814_v3, %v815_v24  ;;  %v1226_v19 = vmax.f32 %v4979_v55, %v4868_v23  ;;  %v6644_v25 = vrot.slane %v4348_v30, 6  ;;  %v6645_v50 = vrot.slane %v4317_v22, 6  ;;  %3727 = vst.msk [vmem:[%s3919_s24 + $0x2d0] sm:$0xff] %vm169_vm0, %v5056_v27 }
  0xaf   : > { %v767_v20 = vmax.f32 %v584_v41, %v735_v39  ;;  %3728 = vst.msk [vmem:[%s3919_s24 + $0x2d8] sm:$0xff] %vm169_vm0, %v5058_v47  ;;  %v999_v21 = vsel %vm954_vm6, %v997_v48, %v998_v17  ;;  %v6646_v62 = vrot.slane %v4348_v30, 7  ;;  %v6647_v11 = vrot.slane %v4317_v22, 7 }
  0xb0   : > { %v467_v35 = vsel %vm437_vm1, %v6645_v50, %v6644_v25  ;;  %v882_v39 = vsel %vm771_vm5, %v815_v24, %v814_v3  ;;  %v1260_v25 = vmax.f32 %v1226_v19, %v4935_v28  ;;  %v1065_v8 = vsel %vm954_vm6, %v998_v17, %v997_v48 }
  0xb1   : > { %v585_v59 = vmax.f32 %v4348_v30, %v467_v35  ;;  %v650_v41 = vsel %vm620_vm2, %v6647_v11, %v6646_v62  ;;  %v950_v4 = vmax.f32 %v767_v20, %v816_v44  ;;  %v919_v50 = vsel %vm887_vm7, %v882_v39, -inf }
  0xb2   : > { %v1102_v35 = vsel %vm1070_vm8, %v1065_v8, -inf  ;;  %v1227_v22 = vmax.f32 %v5005_v52, %v4873_v15  ;;  %v404_v30 = vrot.slane %v4340_v16, 6  ;;  %v1296_v3 = vmax.f32 %v1260_v25, %v5056_v27 }
  0xb3   : > { %v768_v45 = vmax.f32 %v585_v59, %v650_v41  ;;  %v1133_v62 = vmax.f32 %v950_v4, %v999_v21  ;;  %v468_v24 = vrot.slane %v4308_v14, 6  ;;  %v603_v20 = vrot.slane %v4340_v16, 7 }
  0xb4   : > { %v1261_v19 = vmax.f32 %v1227_v22, %v4961_v63  ;;  %v651_v48 = vrot.slane %v4308_v14, 7  ;;  %v817_v8 = vrot.slane %v4308_v14, 1  ;;  %v818_v21 = vrot.slane %v4340_v16, 1 }
  0xb5   : > { %v951_v44 = vmax.f32 %v768_v45, %v919_v50  ;;  %3729 = vst.msk [vmem:[%s3919_s24 + $0x2e0] sm:$0xff] %vm169_vm0, %v1133_v62  ;;  %v5101_v17 = vmax.f32 %v1296_v3, %v1133_v62  ;;  %v517_v4 = vsel %vm437_vm1, %v404_v30, %v468_v24  ;;  %v1000_v59 = vrot.slane %v4308_v14, 2 }
  0xb6   : > { %v1297_v45 = vmax.f32 %v1261_v19, %v5058_v47  ;;  %v554_v41 = vsel %vm518_vm3, %v517_v4, -inf  ;;  %v700_v39 = vsel %vm620_vm2, %v603_v20, %v651_v48  ;;  %v819_v22 = vsel %vm771_vm5, %v817_v8, %v818_v21 }
  0xb7   : > { %6648 = vst [vmem:[#allocation18_spill] sm:$0xff] %v5101_v17  ;;  %v1134_v11 = vmax.f32 %v951_v44, %v1102_v35  ;;  %v586_v25 = vmax.f32 %v4308_v14, %v554_v41  ;;  %v737_v50 = vsel %vm701_vm4, %v700_v39, -inf  ;;  %v1001_v3 = vrot.slane %v4340_v16, 2 }
  0xb8   : > { %v1228_v35 = vmax.f32 %v5056_v27, %v4935_v28  ;;  %v1230_v44 = vmax.f32 %v1133_v62, %v4979_v55  ;;  %v469_v19 = vsel %vm437_vm1, %v468_v24, %v404_v30  ;;  %v652_v39 = vsel %vm620_vm2, %v651_v48, %v603_v20 }
  0xb9   : > { %3730 = vst.msk [vmem:[%s3919_s24 + $0x2e8] sm:$0xff] %vm169_vm0, %v1134_v11  ;;  %v5117_v34 = vmax.f32 %v1297_v45, %v1134_v11  ;;  %v769_v4 = vmax.f32 %v586_v25, %v737_v50  ;;  %v1002_v14 = vsel %vm954_vm6, %v1000_v59, %v1001_v3  ;;  %v587_v41 = vmax.f32 %v4340_v16, %v469_v19 }
  0xba   : > { %v1262_v17 = vmax.f32 %v1228_v35, %v4979_v55  ;;  %v1264_v43 = vmax.f32 %v1230_v44, %v5056_v27  ;;  %v883_v45 = vsel %vm771_vm5, %v818_v21, %v817_v8  ;;  %v1229_v20 = vmax.f32 %v5058_v47, %v4961_v63 }
  0xbb   : > { %6649 = vst [vmem:[#allocation19_spill] sm:$0xff] %v5117_v34  ;;  %v1066_v34 = vsel %vm954_vm6, %v1001_v3, %v1000_v59  ;;  %v952_v6 = vmax.f32 %v769_v4, %v819_v22  ;;  %v770_v9 = vmax.f32 %v587_v41, %v652_v39  ;;  %v921_v30 = vsel %vm887_vm7, %v883_v45, -inf }
  0xbc   : > { %v1104_v24 = vsel %vm1070_vm8, %v1066_v34, -inf  ;;  %v1298_v16 = vmax.f32 %v1262_v17, %v1133_v62  ;;  %v1231_v48 = vmax.f32 %v1134_v11, %v5005_v52  ;;  %v6650_v8 = vmax.f32 %v4412_v36, %v4461_v13 }
  0xbd   : > { %v1135_v59 = vmax.f32 %v952_v6, %v1002_v14  ;;  %v953_v25 = vmax.f32 %v770_v9, %v921_v30  ;;  %v6651_v50 = vmax.f32 %v4428_v60, %v4481_v10  ;;  %v1356_v34 = vrot.slane %v4594_v12, 6 }
  0xbe   : > { %v5141_v21 = vmax.f32 %v6650_v8, %v4387_v49  ;;  %v1263_v17 = vmax.f32 %v1229_v20, %v5005_v52  ;;  %v1265_v3 = vmax.f32 %v1231_v48, %v5058_v47  ;;  %v1406_v49 = vrot.slane %v4577_v46, 6 }
  0xbf   : > { %v5147_v22 = vmax.f32 %v6651_v50, %v4407_v29  ;;  %3731 = vst.msk [vmem:[%s3919_s24 + $0x2f0] sm:$0xff] %vm169_vm0, %v1135_v59  ;;  %v1232_v36 = vmax.f32 %v1135_v59, %v5056_v27  ;;  %v5157_v13 = vmax.f32 %v1264_v43, %v1135_v59  ;;  %v5159_v60 = vmax.f32 %v1298_v16, %v1135_v59 }
  0xc0   : > { %v1402_v35 = vrot.slane %v5141_v21, 6  ;;  %v1136_v29 = vmax.f32 %v953_v25, %v1104_v24  ;;  %v1299_v10 = vmax.f32 %v1263_v17, %v1134_v11  ;;  %v1468_v6 = vsel %vm437_vm1, %v1356_v34, %v1406_v49 }
  0xc1   : > { %6652 = vst [vmem:[#allocation20_spill] sm:$0xff] %v5157_v13  ;;  %v1354_v9 = vrot.slane %v5147_v22, 6  ;;  %v1546_v44 = vrot.slane %v5147_v22, 7  ;;  %v5164_v19 = vmax.f32 %v1232_v36, %v1133_v62  ;;  %v1486_v45 = vsel %vm518_vm3, %v1468_v6, -inf }
  0xc2   : > { %3732 = vst.msk [vmem:[%s3919_s24 + $0x2f8] sm:$0xff] %vm169_vm0, %v1136_v29  ;;  %v1233_v14 = vmax.f32 %v1136_v29, %v5058_v47  ;;  %v5170_v43 = vmax.f32 %v1265_v3, %v1136_v29  ;;  %v5172_v41 = vmax.f32 %v1299_v10, %v1136_v29  ;;  %v1548_v30 = vrot.slane %v4594_v12, 7 }
  0xc3   : > { %6653 = vst [vmem:[#allocation21_spill] sm:$0xff] %v5164_v19  ;;  %v1466_v39 = vsel %vm437_vm1, %v1354_v9, %v1402_v35  ;;  %v1518_v16 = vmax.f32 %v4577_v46, %v1486_v45  ;;  %v1578_v20 = vrot.slane %v5141_v21, 7  ;;  %v1582_v59 = vrot.slane %v4577_v46, 7 }
  0xc4   : > { %6654 = vst [vmem:[#allocation22_spill] sm:$0xff] %v5170_v43  ;;  %v5178_v24 = vmax.f32 %v1233_v14, %v1134_v11  ;;  %v1482_v62 = vsel %vm518_vm3, %v1466_v39, -inf  ;;  %v1722_v25 = vrot.slane %v5141_v21, 1  ;;  %v1723_v11 = vrot.slane %v5147_v22, 1 }
  0xc5   : > { %v1514_v8 = vmax.f32 %v5141_v21, %v1482_v62  ;;  %v1642_v50 = vsel %vm620_vm2, %v1546_v44, %v1578_v20  ;;  %v1728_v17 = vrot.slane %v4577_v46, 1  ;;  %v1729_v3 = vrot.slane %v4594_v12, 1 }
  0xc6   : > { %6655 = vst [vmem:[#allocation23_spill] sm:$0xff] %v5178_v24  ;;  %v1644_v36 = vsel %vm620_vm2, %v1548_v30, %v1582_v59  ;;  %v1658_v29 = vsel %vm701_vm4, %v1642_v50, -inf  ;;  %v1898_v10 = vrot.slane %v5141_v21, 2  ;;  %v1899_v6 = vrot.slane %v5147_v22, 2 }
  0xc7   : > { %v1662_v14 = vsel %vm701_vm4, %v1644_v36, -inf  ;;  %v1690_v39 = vmax.f32 %v1514_v8, %v1658_v29  ;;  %v1724_v45 = vsel %vm771_vm5, %v1722_v25, %v1723_v11  ;;  %v1730_v62 = vsel %vm771_vm5, %v1728_v17, %v1729_v3 }
  0xc8   : > { %v1694_v48 = vmax.f32 %v1518_v16, %v1662_v14  ;;  %v1900_v4 = vsel %vm954_vm6, %v1898_v10, %v1899_v6  ;;  %v1904_v19 = vrot.slane %v4577_v46, 2  ;;  %v1905_v24 = vrot.slane %v4594_v12, 2 }
  0xc9   : > { %v1866_v50 = vmax.f32 %v1690_v39, %v1724_v45  ;;  %v1403_v21 = vsel %vm437_vm1, %v1402_v35, %v1354_v9  ;;  %v1407_v13 = vsel %vm437_vm1, %v1406_v49, %v1356_v34  ;;  %v1579_v36 = vsel %vm620_vm2, %v1578_v20, %v1546_v44 }
  0xca   : > { %v1870_v8 = vmax.f32 %v1694_v48, %v1730_v62  ;;  %v1906_v29 = vsel %vm954_vm6, %v1904_v19, %v1905_v24  ;;  %v1515_v43 = vmax.f32 %v5147_v22, %v1403_v21  ;;  %v1519_v16 = vmax.f32 %v4594_v12, %v1407_v13 }
  0xcb   : > { %v5210_v14 = vmax.f32 %v1866_v50, %v1900_v4  ;;  %v1583_v46 = vsel %vm620_vm2, %v1582_v59, %v1548_v30  ;;  %v1818_v39 = vsel %vm771_vm5, %v1723_v11, %v1722_v25  ;;  %v1820_v35 = vsel %vm771_vm5, %v1729_v3, %v1728_v17 }
  0xcc   : > { %v5215_v9 = vmax.f32 %v1870_v8, %v1906_v29  ;;  %v1691_v34 = vmax.f32 %v1515_v43, %v1579_v36  ;;  %v1695_v49 = vmax.f32 %v1519_v16, %v1583_v46  ;;  %v1835_v44 = vsel %vm887_vm7, %v1818_v39, -inf  ;;  %v6659_v8 = vld [vmem:[#allocation4_spill] sm:$0xff] }
  0xcd   : > { %3733 = vst.msk [vmem:[%s3919_s24 + $0x100] sm:$0xff] %vm169_vm0, %v5210_v14  ;;  %v1839_v12 = vsel %vm887_vm7, %v1820_v35, -inf  ;;  %v1994_v22 = vsel %vm954_vm6, %v1899_v6, %v1898_v10  ;;  %v1996_v13 = vsel %vm954_vm6, %v1905_v24, %v1904_v19  ;;  %v1308_v4 = vmax.f32 %v4487_v0, %v4510_v7 }
  0xce   : > { %v2143_v43 = vmax.f32 %v5215_v9, %v5210_v14  ;;  %3737 = vst.msk [vmem:[%s3919_s24 + $0x120] sm:$0xff] %vm169_vm0, %v5215_v9  ;;  %v1867_v30 = vmax.f32 %v1691_v34, %v1835_v44  ;;  %v1871_v20 = vmax.f32 %v1695_v49, %v1839_v12  ;;  %v2011_v48 = vsel %vm1070_vm8, %v1994_v22, -inf }
  0xcf   : > { %v2015_v59 = vsel %vm1070_vm8, %v1996_v13, -inf  ;;  %v1309_v19 = vmax.f32 %v4504_v40, %v4534_v53  ;;  %v1404_v0 = vrot.slane %v1308_v4, 6  ;;  %v1580_v7 = vrot.slane %v1308_v4, 7  ;;  %v6656_v53 = vld [vmem:[#allocation3_spill] sm:$0xff] }
  0xd0   : > { %v5239_v24 = vmax.f32 %v1867_v30, %v2011_v48  ;;  %v5241_v25 = vmax.f32 %v1871_v20, %v2015_v59  ;;  %v1725_v11 = vrot.slane %v1308_v4, 1  ;;  %v1901_v17 = vrot.slane %v1308_v4, 2 }
  0xd1   : > { %v1355_v3 = vrot.slane %v1309_v19, 6  ;;  %v1547_v10 = vrot.slane %v1309_v19, 7  ;;  %v1726_v6 = vrot.slane %v1309_v19, 1  ;;  %v1902_v45 = vrot.slane %v1309_v19, 2 }
  0xd2   : > { %3734 = vst.msk [vmem:[%s3919_s24 + $0x108] sm:$0xff] %vm169_vm0, %v5239_v24  ;;  %v2144_v62 = vmax.f32 %v5241_v25, %v5239_v24  ;;  %3738 = vst.msk [vmem:[%s3919_s24 + $0x128] sm:$0xff] %vm169_vm0, %v5241_v25  ;;  %v6657_v40 = vmax.f32 %v6656_v53, %v4561_v56  ;;  %v6658_v21 = vmax.f32 %v4556_v32, %v4579_v31 }
  0xd3   : > { %v6660_v29 = vmax.f32 %v6659_v8, %v4621_v54  ;;  %v1467_v46 = vsel %vm437_vm1, %v1355_v3, %v1404_v0  ;;  %v1643_v39 = vsel %vm620_vm2, %v1547_v10, %v1580_v7  ;;  %v1727_v35 = vsel %vm771_vm5, %v1725_v11, %v1726_v6 }
  0xd4   : > { %v1312_v50 = vmax.f32 %v6657_v40, %v4621_v54  ;;  %v1313_v36 = vmax.f32 %v6658_v21, %v4637_v38  ;;  %v1903_v56 = vsel %vm954_vm6, %v1901_v17, %v1902_v45  ;;  %v1484_v34 = vsel %vm518_vm3, %v1467_v46, -inf }
  0xd5   : > { %v5263_v16 = vmax.f32 %v6660_v29, %v4668_v51  ;;  %v1660_v32 = vsel %vm701_vm4, %v1643_v39, -inf  ;;  %v1405_v31 = vsel %vm437_vm1, %v1404_v0, %v1355_v3  ;;  %v1581_v54 = vsel %vm620_vm2, %v1580_v7, %v1547_v10 }
  0xd6   : > { %v1516_v49 = vmax.f32 %v1308_v4, %v1484_v34  ;;  %v1517_v44 = vmax.f32 %v1309_v19, %v1405_v31  ;;  %v1819_v12 = vsel %vm771_vm5, %v1726_v6, %v1725_v11  ;;  %v1995_v22 = vsel %vm954_vm6, %v1902_v45, %v1901_v17 }
  0xd7   : > { %v1837_v13 = vsel %vm887_vm7, %v1819_v12, -inf  ;;  %v2013_v30 = vsel %vm1070_vm8, %v1995_v22, -inf  ;;  %v1357_v20 = vrot.slane %v1313_v36, 6  ;;  %v1408_v48 = vrot.slane %v1312_v50, 6 }
  0xd8   : > { %v1692_v59 = vmax.f32 %v1516_v49, %v1660_v32  ;;  %v1693_v53 = vmax.f32 %v1517_v44, %v1581_v54  ;;  %v1549_v40 = vrot.slane %v1313_v36, 7  ;;  %v1584_v0 = vrot.slane %v1312_v50, 7 }
  0xd9   : > { %v1469_v7 = vsel %vm437_vm1, %v1357_v20, %v1408_v48  ;;  %v1731_v4 = vrot.slane %v1312_v50, 1  ;;  %v1732_v19 = vrot.slane %v1313_v36, 1  ;;  %v1907_v3 = vrot.slane %v1312_v50, 2 }
  0xda   : > { %v1868_v11 = vmax.f32 %v1692_v59, %v1727_v35  ;;  %v1869_v17 = vmax.f32 %v1693_v53, %v1837_v13  ;;  %v1488_v10 = vsel %vm518_vm3, %v1469_v7, -inf  ;;  %v1645_v6 = vsel %vm620_vm2, %v1549_v40, %v1584_v0 }
  0xdb   : > { %v1520_v45 = vmax.f32 %v1312_v50, %v1488_v10  ;;  %v1664_v21 = vsel %vm701_vm4, %v1645_v6, -inf  ;;  %v1733_v8 = vsel %vm771_vm5, %v1731_v4, %v1732_v19  ;;  %v1908_v29 = vrot.slane %v1313_v36, 2  ;;  %v6663_v10 = vld [vmem:[#allocation6_spill] sm:$0xff] }
  0xdc   : > { %v5288_v46 = vmax.f32 %v1868_v11, %v1903_v56  ;;  %v5290_v39 = vmax.f32 %v1869_v17, %v2013_v30  ;;  %v1409_v35 = vsel %vm437_vm1, %v1408_v48, %v1357_v20  ;;  %v1585_v34 = vsel %vm620_vm2, %v1584_v0, %v1549_v40  ;;  %v6661_v20 = vld [vmem:[#allocation5_spill] sm:$0xff] }
  0xdd   : > { %v1696_v32 = vmax.f32 %v1520_v45, %v1664_v21  ;;  %v1909_v31 = vsel %vm954_vm6, %v1907_v3, %v1908_v29  ;;  %v1521_v54 = vmax.f32 %v1313_v36, %v1409_v35  ;;  %v1821_v50 = vsel %vm771_vm5, %v1732_v19, %v1731_v4  ;;  %v6665_v21 = vld [vmem:[#allocation7_spill] sm:$0xff]  ;;  %v6667_v35 = vld [vmem:[#allocation8_spill] sm:$0xff] }
  0xde   : > { %3735 = vst.msk [vmem:[%s3919_s24 + $0x110] sm:$0xff] %vm169_vm0, %v5288_v46  ;;  %v2175_v49 = vmax.f32 %v5288_v46, %v5210_v14  ;;  %v5305_v56 = vmax.f32 %v2143_v43, %v5288_v46  ;;  %3736 = vst.msk [vmem:[%s3919_s24 + $0x118] sm:$0xff] %vm169_vm0, %v5290_v39  ;;  %v2176_v36 = vmax.f32 %v5290_v39, %v5239_v24  ;;  %v1841_v13 = vsel %vm887_vm7, %v1821_v50, -inf }
  0xdf   : > { %v5313_v44 = vmax.f32 %v2144_v62, %v5290_v39  ;;  %v1872_v12 = vmax.f32 %v1696_v32, %v1733_v8  ;;  %v1697_v22 = vmax.f32 %v1521_v54, %v1585_v34  ;;  %v1997_v30 = vsel %vm954_vm6, %v1908_v29, %v1907_v3 }
  0xe0   : > { %v2017_v43 = vsel %vm1070_vm8, %v1997_v30, -inf  ;;  %v6662_v48 = vmax.f32 %v6661_v20, %v4637_v38  ;;  %v1410_v53 = vrot.slane %v5263_v16, 6  ;;  %v1586_v62 = vrot.slane %v5263_v16, 7 }
  0xe1   : > { %v5326_v40 = vmax.f32 %v1872_v12, %v1909_v31  ;;  %v1873_v0 = vmax.f32 %v1697_v22, %v1841_v13  ;;  %v1734_v7 = vrot.slane %v5263_v16, 1  ;;  %v1910_v4 = vrot.slane %v5263_v16, 2 }
  0xe2   : > { %v1315_v59 = vmax.f32 %v6662_v48, %v4673_v61  ;;  %v6664_v6 = vmax.f32 %v6663_v10, %v4668_v51  ;;  %v6666_v8 = vmax.f32 %v6665_v21, %v4673_v61  ;;  %v6668_v34 = vmax.f32 %v6667_v35, %v4721_v42 }
  0xe3   : > { %3739 = vst.msk [vmem:[%s3919_s24 + $0x130] sm:$0xff] %vm169_vm0, %v5326_v40  ;;  %v5333_v38 = vmax.f32 %v1873_v0, %v2017_v43 }
  0xe4   : > { %v1358_v19 = vrot.slane %v1315_v59, 6  ;;  %v1550_v3 = vrot.slane %v1315_v59, 7  ;;  %v1735_v11 = vrot.slane %v1315_v59, 1  ;;  %v1911_v17 = vrot.slane %v1315_v59, 2 }
  0xe5   : > { %v1316_v45 = vmax.f32 %v6664_v6, %v4721_v42  ;;  %v1317_v29 = vmax.f32 %v6666_v8, %v4737_v33  ;;  %v5347_v32 = vmax.f32 %v6668_v34, %v4768_v58  ;;  %3740 = vst.msk [vmem:[%s3919_s24 + $0x138] sm:$0xff] %vm169_vm0, %v5333_v38 }
  0xe6   : > { %v1470_v31 = vsel %vm437_vm1, %v1358_v19, %v1410_v53  ;;  %v1646_v54 = vsel %vm620_vm2, %v1550_v3, %v1586_v62  ;;  %v1736_v50 = vsel %vm771_vm5, %v1734_v7, %v1735_v11  ;;  %v1912_v51 = vsel %vm954_vm6, %v1910_v4, %v1911_v17 }
  0xe7   : > { %v1490_v61 = vsel %vm518_vm3, %v1470_v31, -inf  ;;  %v1666_v12 = vsel %vm701_vm4, %v1646_v54, -inf  ;;  %v1411_v42 = vsel %vm437_vm1, %v1410_v53, %v1358_v19  ;;  %v1587_v22 = vsel %vm620_vm2, %v1586_v62, %v1550_v3 }
  0xe8   : > { %v1522_v13 = vmax.f32 %v5263_v16, %v1490_v61  ;;  %v1523_v30 = vmax.f32 %v1315_v59, %v1411_v42  ;;  %v1822_v43 = vsel %vm771_vm5, %v1735_v11, %v1734_v7  ;;  %v1998_v20 = vsel %vm954_vm6, %v1911_v17, %v1910_v4 }
  0xe9   : > { %v1843_v48 = vsel %vm887_vm7, %v1822_v43, -inf  ;;  %v2019_v0 = vsel %vm1070_vm8, %v1998_v20, -inf  ;;  %v1359_v10 = vrot.slane %v1317_v29, 6  ;;  %v1412_v6 = vrot.slane %v1316_v45, 6  ;;  %v6669_v20 = vld [vmem:[#allocation9_spill] sm:$0xff] }
  0xea   : > { %v1698_v21 = vmax.f32 %v1522_v13, %v1666_v12  ;;  %v1699_v8 = vmax.f32 %v1523_v30, %v1587_v22  ;;  %v1551_v53 = vrot.slane %v1317_v29, 7  ;;  %v1588_v19 = vrot.slane %v1316_v45, 7 }
  0xeb   : > { %v1471_v62 = vsel %vm437_vm1, %v1359_v10, %v1412_v6  ;;  %v1737_v16 = vrot.slane %v1316_v45, 1  ;;  %v1738_v59 = vrot.slane %v1317_v29, 1  ;;  %v1913_v3 = vrot.slane %v1316_v45, 2 }
  0xec   : > { %v1874_v7 = vmax.f32 %v1698_v21, %v1736_v50  ;;  %v1875_v4 = vmax.f32 %v1699_v8, %v1843_v48  ;;  %v1492_v11 = vsel %vm518_vm3, %v1471_v62, -inf  ;;  %v1647_v17 = vsel %vm620_vm2, %v1551_v53, %v1588_v19 }
  0xed   : > { %v1524_v35 = vmax.f32 %v1316_v45, %v1492_v11  ;;  %v1668_v34 = vsel %vm701_vm4, %v1647_v17, -inf  ;;  %v1739_v31 = vsel %vm771_vm5, %v1737_v16, %v1738_v59  ;;  %v1914_v54 = vrot.slane %v1317_v29, 2 }
  0xee   : > { %v5376_v61 = vmax.f32 %v1874_v7, %v1912_v51  ;;  %v5378_v12 = vmax.f32 %v1875_v4, %v2019_v0  ;;  %v1413_v50 = vsel %vm437_vm1, %v1412_v6, %v1359_v10  ;;  %v1589_v42 = vsel %vm620_vm2, %v1588_v19, %v1551_v53 }
  0xef   : > { %v1700_v22 = vmax.f32 %v1524_v35, %v1668_v34  ;;  %v1915_v13 = vsel %vm954_vm6, %v1913_v3, %v1914_v54  ;;  %v1525_v30 = vmax.f32 %v1317_v29, %v1413_v50  ;;  %v1823_v45 = vsel %vm771_vm5, %v1738_v59, %v1737_v16 }
  0xf0   : > { %3741 = vst.msk [vmem:[%s3919_s24 + $0x140] sm:$0xff] %vm169_vm0, %v5376_v61  ;;  %3742 = vst.msk [vmem:[%s3919_s24 + $0x148] sm:$0xff] %vm169_vm0, %v5378_v12  ;;  %v1845_v51 = vsel %vm887_vm7, %v1823_v45, -inf  ;;  %v1999_v43 = vsel %vm954_vm6, %v1914_v54, %v1913_v3  ;;  %v6670_v48 = vmax.f32 %v6669_v20, %v4737_v33  ;;  %v1414_v29 = vrot.slane %v5347_v32, 6 }
  0xf1   : > { %v1876_v10 = vmax.f32 %v1700_v22, %v1739_v31  ;;  %v1701_v6 = vmax.f32 %v1525_v30, %v1589_v42  ;;  %v2021_v21 = vsel %vm1070_vm8, %v1999_v43, -inf  ;;  %v1590_v8 = vrot.slane %v5347_v32, 7  ;;  %v6671_v43 = vld [vmem:[#allocation10_spill] sm:$0xff] }
  0xf2   : > { %v1319_v0 = vmax.f32 %v6670_v48, %v4773_v2  ;;  %v1740_v62 = vrot.slane %v5347_v32, 1  ;;  %v1916_v33 = vrot.slane %v5347_v32, 2  ;;  %v6672_v20 = vmax.f32 %v6671_v43, %v4768_v58 }
  0xf3   : > { %v5402_v59 = vmax.f32 %v1876_v10, %v1915_v13  ;;  %v1877_v3 = vmax.f32 %v1701_v6, %v1845_v51 }
  0xf4   : > { %v1360_v53 = vrot.slane %v1319_v0, 6  ;;  %v1552_v19 = vrot.slane %v1319_v0, 7  ;;  %v1741_v16 = vrot.slane %v1319_v0, 1  ;;  %v1917_v7 = vrot.slane %v1319_v0, 2 }
  0xf5   : > { %3743 = vst.msk [vmem:[%s3919_s24 + $0x150] sm:$0xff] %vm169_vm0, %v5402_v59  ;;  %v5412_v34 = vmax.f32 %v1877_v3, %v2021_v21  ;;  %v1320_v48 = vmax.f32 %v6672_v20, %v4821_v57 }
  0xf6   : > { %v1472_v4 = vsel %vm437_vm1, %v1360_v53, %v1414_v29  ;;  %v1648_v11 = vsel %vm620_vm2, %v1552_v19, %v1590_v8  ;;  %v1742_v17 = vsel %vm771_vm5, %v1740_v62, %v1741_v16  ;;  %v1415_v35 = vsel %vm437_vm1, %v1414_v29, %v1360_v53 }
  0xf7   : > { %v1494_v31 = vsel %vm518_vm3, %v1472_v4, -inf  ;;  %v1670_v54 = vsel %vm701_vm4, %v1648_v11, -inf  ;;  %v1918_v50 = vsel %vm954_vm6, %v1916_v33, %v1917_v7  ;;  %v1527_v22 = vmax.f32 %v1319_v0, %v1415_v35  ;;  %3744 = vst.msk [vmem:[%s3919_s24 + $0x158] sm:$0xff] %vm169_vm0, %v5412_v34 }
  0xf8   : > { %v1526_v42 = vmax.f32 %v5347_v32, %v1494_v31  ;;  %v1591_v13 = vsel %vm620_vm2, %v1590_v8, %v1552_v19  ;;  %v1824_v30 = vsel %vm771_vm5, %v1741_v16, %v1740_v62  ;;  %v2000_v51 = vsel %vm954_vm6, %v1917_v7, %v1916_v33  ;;  %v6673_v32 = vld [vmem:[#allocation11_spill] sm:$0xff]  ;;  %v6675_v8 = vld [vmem:[#allocation12_spill] sm:$0xff] }
  0xf9   : > { %v1847_v45 = vsel %vm887_vm7, %v1824_v30, -inf  ;;  %v6674_v0 = vmax.f32 %v6673_v32, %v4773_v2  ;;  %v1703_v6 = vmax.f32 %v1527_v22, %v1591_v13  ;;  %v2023_v21 = vsel %vm1070_vm8, %v2000_v51, -inf }
  0xfa   : > { %v1702_v10 = vmax.f32 %v1526_v42, %v1670_v54  ;;  %v6676_v53 = vmax.f32 %v6675_v8, %v4821_v57  ;;  %v1416_v16 = vrot.slane %v1320_v48, 6  ;;  %v1592_v58 = vrot.slane %v1320_v48, 7 }
  0xfb   : > { %v1321_v29 = vmax.f32 %v6674_v0, %v4837_v37  ;;  %v1879_v7 = vmax.f32 %v1703_v6, %v1847_v45  ;;  %v1743_v2 = vrot.slane %v1320_v48, 1  ;;  %v1919_v31 = vrot.slane %v1320_v48, 2  ;;  %v6677_v6 = vld [vmem:[#allocation13_spill] sm:$0xff] }
  0xfc   : > { %v1322_v19 = vmax.f32 %v6676_v53, %v4868_v23  ;;  %v1878_v33 = vmax.f32 %v1702_v10, %v1742_v17 }
  0xfd   : > { %v1361_v62 = vrot.slane %v1321_v29, 6  ;;  %v1553_v3 = vrot.slane %v1321_v29, 7  ;;  %v1744_v4 = vrot.slane %v1321_v29, 1  ;;  %v1920_v54 = vrot.slane %v1321_v29, 2 }
  0xfe   : > { %v5444_v42 = vmax.f32 %v1878_v33, %v1918_v50  ;;  %v5446_v57 = vmax.f32 %v1879_v7, %v2023_v21  ;;  %v6678_v21 = vmax.f32 %v6677_v6, %v4837_v37  ;;  %v6681_v6 = vmax.f32 %v4863_v18, %v4873_v15 }
  0xff   : > { %v1473_v11 = vsel %vm437_vm1, %v1361_v62, %v1416_v16  ;;  %v1649_v35 = vsel %vm620_vm2, %v1553_v3, %v1592_v58  ;;  %v1745_v30 = vsel %vm771_vm5, %v1743_v2, %v1744_v4  ;;  %v1921_v45 = vsel %vm954_vm6, %v1919_v31, %v1920_v54 }
 0x100   : > { %v1496_v22 = vsel %vm518_vm3, %v1473_v11, -inf  ;;  %v1672_v17 = vsel %vm701_vm4, %v1649_v35, -inf  ;;  %v1417_v51 = vsel %vm437_vm1, %v1416_v16, %v1361_v62  ;;  %3745 = vst.msk [vmem:[%s3919_s24 + $0x160] sm:$0xff] %vm169_vm0, %v5444_v42  ;;  %3746 = vst.msk [vmem:[%s3919_s24 + $0x168] sm:$0xff] %vm169_vm0, %v5446_v57  ;;  %v1593_v43 = vsel %vm620_vm2, %v1592_v58, %v1553_v3  ;;  %v6679_v35 = vld [vmem:[#allocation14_spill] sm:$0xff] }
 0x101   : > { %v1528_v13 = vmax.f32 %v1320_v48, %v1496_v22  ;;  %v1529_v50 = vmax.f32 %v1321_v29, %v1417_v51  ;;  %v1825_v20 = vsel %vm771_vm5, %v1744_v4, %v1743_v2  ;;  %v2001_v32 = vsel %vm954_vm6, %v1920_v54, %v1919_v31 }
 0x102   : > { %v1849_v0 = vsel %vm887_vm7, %v1825_v20, -inf  ;;  %v2025_v10 = vsel %vm1070_vm8, %v2001_v32, -inf  ;;  %v1323_v8 = vmax.f32 %v6678_v21, %v4873_v15  ;;  %v1418_v29 = vrot.slane %v1322_v19, 6 }
 0x103   : > { %v1704_v48 = vmax.f32 %v1528_v13, %v1672_v17  ;;  %v1705_v53 = vmax.f32 %v1529_v50, %v1593_v43  ;;  %v1594_v62 = vrot.slane %v1322_v19, 7  ;;  %v1746_v16 = vrot.slane %v1322_v19, 1 }
 0x104   : > { %v1362_v58 = vrot.slane %v1323_v8, 6  ;;  %v1554_v33 = vrot.slane %v1323_v8, 7  ;;  %v1747_v7 = vrot.slane %v1323_v8, 1  ;;  %v1922_v4 = vrot.slane %v1322_v19, 2 }
 0x105   : > { %v1880_v3 = vmax.f32 %v1704_v48, %v1745_v30  ;;  %v1881_v2 = vmax.f32 %v1705_v53, %v1849_v0  ;;  %v1923_v11 = vrot.slane %v1323_v8, 2  ;;  %v6680_v31 = vmax.f32 %v6679_v35, %v4868_v23 }
 0x106   : > { %v1474_v22 = vsel %vm437_vm1, %v1362_v58, %v1418_v29  ;;  %v1650_v17 = vsel %vm620_vm2, %v1554_v33, %v1594_v62  ;;  %v1748_v13 = vsel %vm771_vm5, %v1746_v16, %v1747_v7  ;;  %v1595_v20 = vsel %vm620_vm2, %v1594_v62, %v1554_v33 }
 0x107   : > { %v1324_v54 = vmax.f32 %v6680_v31, %v4935_v28  ;;  %v5476_v37 = vmax.f32 %v1880_v3, %v1921_v45  ;;  %v5481_v30 = vmax.f32 %v1881_v2, %v2025_v10  ;;  %v1498_v51 = vsel %vm518_vm3, %v1474_v22, -inf }
 0x108   : > { %v1674_v50 = vsel %vm701_vm4, %v1650_v17, -inf  ;;  %v1924_v43 = vsel %vm954_vm6, %v1922_v4, %v1923_v11  ;;  %v1530_v23 = vmax.f32 %v1322_v19, %v1498_v51  ;;  %v1419_v45 = vsel %vm437_vm1, %v1418_v29, %v1362_v58 }
 0x109   : > { %3747 = vst.msk [vmem:[%s3919_s24 + $0x170] sm:$0xff] %vm169_vm0, %v5476_v37  ;;  %v1826_v32 = vsel %vm771_vm5, %v1747_v7, %v1746_v16  ;;  %3748 = vst.msk [vmem:[%s3919_s24 + $0x178] sm:$0xff] %vm169_vm0, %v5481_v30  ;;  %v1531_v48 = vmax.f32 %v1323_v8, %v1419_v45  ;;  %v2002_v10 = vsel %vm954_vm6, %v1923_v11, %v1922_v4  ;;  %v1420_v29 = vrot.slane %v1324_v54, 6 }
 0x10a   : > { %v1851_v0 = vsel %vm887_vm7, %v1826_v32, -inf  ;;  %v1325_v19 = vmax.f32 %v6681_v6, %v4961_v63  ;;  %v1706_v21 = vmax.f32 %v1530_v23, %v1674_v50  ;;  %v2027_v53 = vsel %vm1070_vm8, %v2002_v10, -inf }
 0x10b   : > { %v1596_v62 = vrot.slane %v1324_v54, 7  ;;  %v1707_v16 = vmax.f32 %v1531_v48, %v1595_v20  ;;  %v1749_v8 = vrot.slane %v1324_v54, 1  ;;  %v1925_v2 = vrot.slane %v1324_v54, 2 }
 0x10c   : > { %v1363_v3 = vrot.slane %v1325_v19, 6  ;;  %v1555_v58 = vrot.slane %v1325_v19, 7  ;;  %v1882_v33 = vmax.f32 %v1706_v21, %v1748_v13  ;;  %v1750_v7 = vrot.slane %v1325_v19, 1  ;;  %v6683_v21 = vld [vmem:[#allocation15_spill] sm:$0xff] }
 0x10d   : > { %v1926_v4 = vrot.slane %v1325_v19, 2  ;;  %v1883_v11 = vmax.f32 %v1707_v16, %v1851_v0  ;;  %v6682_v48 = vmax.f32 %v4900_v26, %v4935_v28 }
 0x10e   : > { %v1475_v35 = vsel %vm437_vm1, %v1363_v3, %v1420_v29  ;;  %v1651_v18 = vsel %vm620_vm2, %v1555_v58, %v1596_v62  ;;  %v1421_v15 = vsel %vm437_vm1, %v1420_v29, %v1363_v3  ;;  %v5509_v31 = vmax.f32 %v1882_v33, %v1924_v43 }
 0x10f   : > { %v1500_v22 = vsel %vm518_vm3, %v1475_v35, -inf  ;;  %v1676_v17 = vsel %vm701_vm4, %v1651_v18, -inf  ;;  %v1751_v13 = vsel %vm771_vm5, %v1749_v8, %v1750_v7  ;;  %v5516_v51 = vmax.f32 %v1883_v11, %v2027_v53 }
 0x110   : > { %v1532_v50 = vmax.f32 %v1324_v54, %v1500_v22  ;;  %v1927_v23 = vsel %vm954_vm6, %v1925_v2, %v1926_v4  ;;  %v1533_v45 = vmax.f32 %v1325_v19, %v1421_v15  ;;  %3749 = vst.msk [vmem:[%s3919_s24 + $0x180] sm:$0xff] %vm169_vm0, %v5509_v31  ;;  %v1597_v43 = vsel %vm620_vm2, %v1596_v62, %v1555_v58  ;;  %v6687_v15 = vld [vmem:[#allocation17_spill] sm:$0xff] }
 0x111   : > { %v1827_v20 = vsel %vm771_vm5, %v1750_v7, %v1749_v8  ;;  %v2003_v32 = vsel %vm954_vm6, %v1926_v4, %v1925_v2  ;;  %v1326_v0 = vmax.f32 %v6682_v48, %v4979_v55  ;;  %3750 = vst.msk [vmem:[%s3919_s24 + $0x188] sm:$0xff] %vm169_vm0, %v5516_v51  ;;  %v6684_v53 = vmax.f32 %v6683_v21, %v4961_v63  ;;  %v6685_v8 = vld [vmem:[#allocation16_spill] sm:$0xff] }
 0x112   : > { %v1708_v54 = vmax.f32 %v1532_v50, %v1676_v17  ;;  %v1709_v10 = vmax.f32 %v1533_v45, %v1597_v43  ;;  %v1853_v6 = vsel %vm887_vm7, %v1827_v20, -inf  ;;  %v2029_v19 = vsel %vm1070_vm8, %v2003_v32, -inf }
 0x113   : > { %v1327_v29 = vmax.f32 %v6684_v53, %v5005_v52  ;;  %v1422_v62 = vrot.slane %v1326_v0, 6  ;;  %v1598_v16 = vrot.slane %v1326_v0, 7  ;;  %v1752_v26 = vrot.slane %v1326_v0, 1 }
 0x114   : > { %v1884_v28 = vmax.f32 %v1708_v54, %v1751_v13  ;;  %v1885_v3 = vmax.f32 %v1709_v10, %v1853_v6  ;;  %v1928_v58 = vrot.slane %v1326_v0, 2  ;;  %v6686_v33 = vmax.f32 %v6685_v8, %v4979_v55 }
 0x115   : > { %v1364_v2 = vrot.slane %v1327_v29, 6  ;;  %v1556_v4 = vrot.slane %v1327_v29, 7  ;;  %v1753_v11 = vrot.slane %v1327_v29, 1  ;;  %v1929_v35 = vrot.slane %v1327_v29, 2 }
 0x116   : > { %v1328_v7 = vmax.f32 %v6686_v33, %v5056_v27  ;;  %v5544_v18 = vmax.f32 %v1884_v28, %v1927_v23  ;;  %v5546_v63 = vmax.f32 %v1885_v3, %v2029_v19  ;;  %v6688_v22 = vmax.f32 %v6687_v15, %v5005_v52 }
 0x117   : > { %v1476_v50 = vsel %vm437_vm1, %v1364_v2, %v1422_v62  ;;  %v1652_v45 = vsel %vm620_vm2, %v1556_v4, %v1598_v16  ;;  %v1754_v55 = vsel %vm771_vm5, %v1752_v26, %v1753_v11  ;;  %v1930_v27 = vsel %vm954_vm6, %v1928_v58, %v1929_v35 }
 0x118   : > { %v1329_v17 = vmax.f32 %v6688_v22, %v5058_v47  ;;  %v1424_v13 = vrot.slane %v1328_v7, 6  ;;  %3751 = vst.msk [vmem:[%s3919_s24 + $0x190] sm:$0xff] %vm169_vm0, %v5544_v18  ;;  %3752 = vst.msk [vmem:[%s3919_s24 + $0x198] sm:$0xff] %vm169_vm0, %v5546_v63  ;;  %v1502_v23 = vsel %vm518_vm3, %v1476_v50, -inf  ;;  %v1678_v52 = vsel %vm701_vm4, %v1652_v45, -inf }
 0x119   : > { %v1423_v47 = vsel %vm437_vm1, %v1422_v62, %v1364_v2  ;;  %v1599_v43 = vsel %vm620_vm2, %v1598_v16, %v1556_v4  ;;  %v1534_v20 = vmax.f32 %v1326_v0, %v1502_v23  ;;  %v1828_v48 = vsel %vm771_vm5, %v1753_v11, %v1752_v26 }
 0x11a   : > { %v1535_v32 = vmax.f32 %v1327_v29, %v1423_v47  ;;  %v2004_v54 = vsel %vm954_vm6, %v1929_v35, %v1928_v58  ;;  %v1855_v10 = vsel %vm887_vm7, %v1828_v48, -inf  ;;  %v1365_v19 = vrot.slane %v1329_v17, 6 }
 0x11b   : > { %v2031_v6 = vsel %vm1070_vm8, %v2004_v54, -inf  ;;  %v1557_v21 = vrot.slane %v1329_v17, 7  ;;  %v1710_v53 = vmax.f32 %v1534_v20, %v1678_v52  ;;  %v1600_v3 = vrot.slane %v1328_v7, 7 }
 0x11c   : > { %v1711_v28 = vmax.f32 %v1535_v32, %v1599_v43  ;;  %v1755_v62 = vrot.slane %v1328_v7, 1  ;;  %v1477_v16 = vsel %vm437_vm1, %v1365_v19, %v1424_v13  ;;  %v1756_v0 = vrot.slane %v1329_v17, 1  ;;  %v6689_v43 = vld [vmem:[#allocation19_spill] sm:$0xff]  ;;  %v6690_v32 = vld [vmem:[#allocation18_spill] sm:$0xff] }
 0x11d   : > { %v1931_v29 = vrot.slane %v1328_v7, 2  ;;  %v1932_v8 = vrot.slane %v1329_v17, 2  ;;  %v1886_v26 = vmax.f32 %v1710_v53, %v1754_v55  ;;  %v1504_v33 = vsel %vm518_vm3, %v1477_v16, -inf }
 0x11e   : > { %v1887_v58 = vmax.f32 %v1711_v28, %v1855_v10  ;;  %v1653_v2 = vsel %vm620_vm2, %v1557_v21, %v1600_v3  ;;  %v1536_v4 = vmax.f32 %v1328_v7, %v1504_v33  ;;  %v1757_v35 = vsel %vm771_vm5, %v1755_v62, %v1756_v0 }
 0x11f   : > { %v1680_v11 = vsel %vm701_vm4, %v1653_v2, -inf  ;;  %v1933_v15 = vsel %vm954_vm6, %v1931_v29, %v1932_v8  ;;  %v5582_v22 = vmax.f32 %v1886_v26, %v1930_v27  ;;  %v1425_v45 = vsel %vm437_vm1, %v1424_v13, %v1365_v19 }
 0x120   : > { %v5584_v50 = vmax.f32 %v1887_v58, %v2031_v6  ;;  %v1601_v55 = vsel %vm620_vm2, %v1600_v3, %v1557_v21  ;;  %v1712_v23 = vmax.f32 %v1536_v4, %v1680_v11  ;;  %v1537_v52 = vmax.f32 %v1329_v17, %v1425_v45 }
 0x121   : > { %v1829_v47 = vsel %vm771_vm5, %v1756_v0, %v1755_v62  ;;  %v2005_v7 = vsel %vm954_vm6, %v1932_v8, %v1931_v29  ;;  %3753 = vst.msk [vmem:[%s3919_s24 + $0x1a0] sm:$0xff] %vm169_vm0, %v5582_v22  ;;  %v1366_v20 = vrot.slane %v6689_v43, 6  ;;  %v1426_v17 = vrot.slane %v6690_v32, 6 }
 0x122   : > { %3754 = vst.msk [vmem:[%s3919_s24 + $0x1a8] sm:$0xff] %vm169_vm0, %v5584_v50  ;;  %v1857_v27 = vsel %vm887_vm7, %v1829_v47, -inf  ;;  %v2033_v13 = vsel %vm1070_vm8, %v2005_v7, -inf  ;;  %v1888_v48 = vmax.f32 %v1712_v23, %v1757_v35  ;;  %v1713_v54 = vmax.f32 %v1537_v52, %v1601_v55 }
 0x123   : > { %v1558_v10 = vrot.slane %v6689_v43, 7  ;;  %v1602_v6 = vrot.slane %v6690_v32, 7  ;;  %v1478_v19 = vsel %vm437_vm1, %v1366_v20, %v1426_v17  ;;  %v1758_v21 = vrot.slane %v6690_v32, 1 }
 0x124   : > { %v1759_v53 = vrot.slane %v6689_v43, 1  ;;  %v1934_v28 = vrot.slane %v6690_v32, 2  ;;  %v5608_v3 = vmax.f32 %v1888_v48, %v1933_v15  ;;  %v1889_v62 = vmax.f32 %v1713_v54, %v1857_v27 }
 0x125   : > { %v1506_v16 = vsel %vm518_vm3, %v1478_v19, -inf  ;;  %v1654_v0 = vsel %vm620_vm2, %v1558_v10, %v1602_v6  ;;  %v1935_v58 = vrot.slane %v6689_v43, 2  ;;  %v1427_v2 = vsel %vm437_vm1, %v1426_v17, %v1366_v20 }
 0x126   : > { %v1538_v29 = vmax.f32 %v6690_v32, %v1506_v16  ;;  %v1682_v8 = vsel %vm701_vm4, %v1654_v0, -inf  ;;  %v1760_v26 = vsel %vm771_vm5, %v1758_v21, %v1759_v53  ;;  %3755 = vst.msk [vmem:[%s3919_s24 + $0x1b0] sm:$0xff] %vm169_vm0, %v5608_v3  ;;  %v5621_v33 = vmax.f32 %v1889_v62, %v2033_v13 }
 0x127   : > { %v1603_v4 = vsel %vm620_vm2, %v1602_v6, %v1558_v10  ;;  %v1830_v11 = vsel %vm771_vm5, %v1759_v53, %v1758_v21  ;;  %v1936_v15 = vsel %vm954_vm6, %v1934_v28, %v1935_v58  ;;  %v1539_v45 = vmax.f32 %v6689_v43, %v1427_v2 }
 0x128   : > { %v1714_v35 = vmax.f32 %v1538_v29, %v1682_v8  ;;  %v1859_v55 = vsel %vm887_vm7, %v1830_v11, -inf  ;;  %3756 = vst.msk [vmem:[%s3919_s24 + $0x1b8] sm:$0xff] %vm169_vm0, %v5621_v33  ;;  %v2006_v23 = vsel %vm954_vm6, %v1935_v58, %v1934_v28  ;;  %v6691_v52 = vrot.slane %v5159_v60, 6 }
 0x129   : > { %v6692_v47 = vrot.slane %v5172_v41, 6  ;;  %v1559_v27 = vrot.slane %v5172_v41, 7  ;;  %v1604_v13 = vrot.slane %v5159_v60, 7  ;;  %v1715_v43 = vmax.f32 %v1539_v45, %v1603_v4 }
 0x12a   : > { %v1890_v20 = vmax.f32 %v1714_v35, %v1760_v26  ;;  %v2035_v32 = vsel %vm1070_vm8, %v2006_v23, -inf  ;;  %v1761_v10 = vrot.slane %v5159_v60, 1  ;;  %v1762_v6 = vrot.slane %v5172_v41, 1  ;;  %v6695_v23 = vld [vmem:[#allocation22_spill] sm:$0xff] }
 0x12b   : > { %v1479_v7 = vsel %vm437_vm1, %v6692_v47, %v6691_v52  ;;  %v1655_v54 = vsel %vm620_vm2, %v1559_v27, %v1604_v13  ;;  %v1891_v21 = vmax.f32 %v1715_v43, %v1859_v55  ;;  %v1937_v28 = vrot.slane %v5159_v60, 2 }
 0x12c   : > { %v1508_v17 = vsel %vm518_vm3, %v1479_v7, -inf  ;;  %v5649_v19 = vmax.f32 %v1890_v20, %v1936_v15  ;;  %v1684_v53 = vsel %vm701_vm4, %v1655_v54, -inf  ;;  %v1763_v16 = vsel %vm771_vm5, %v1761_v10, %v1762_v6 }
 0x12d   : > { %v1540_v48 = vmax.f32 %v5159_v60, %v1508_v17  ;;  %v1938_v0 = vrot.slane %v5172_v41, 2  ;;  %v6693_v29 = vmov %v6692_v47  ;;  %v6694_v8 = vmov %v6691_v52  ;;  %v6696_v47 = vld [vmem:[#allocation20_spill] sm:$0xff] }
 0x12e   : > { %v1429_v26 = vsel %vm437_vm1, %v6694_v8, %v6693_v29  ;;  %3757 = vst.msk [vmem:[%s3919_s24 + $0x1c0] sm:$0xff] %vm169_vm0, %v5649_v19  ;;  %v5664_v58 = vmax.f32 %v1891_v21, %v2035_v32  ;;  %v1605_v4 = vsel %vm620_vm2, %v1604_v13, %v1559_v27  ;;  %v1831_v11 = vsel %vm771_vm5, %v1762_v6, %v1761_v10 }
 0x12f   : > { %v1716_v62 = vmax.f32 %v1540_v48, %v1684_v53  ;;  %v1541_v2 = vmax.f32 %v5172_v41, %v1429_v26  ;;  %v1939_v15 = vsel %vm954_vm6, %v1937_v28, %v1938_v0  ;;  %v1861_v60 = vsel %vm887_vm7, %v1831_v11, -inf }
 0x130   : > { %v2007_v45 = vsel %vm954_vm6, %v1938_v0, %v1937_v28  ;;  %3758 = vst.msk [vmem:[%s3919_s24 + $0x1c8] sm:$0xff] %vm169_vm0, %v5664_v58  ;;  %v1368_v52 = vrot.slane %v6695_v23, 6  ;;  %v1430_v7 = vrot.slane %v6696_v47, 6  ;;  %v1560_v13 = vrot.slane %v6695_v23, 7 }
 0x131   : > { %v1892_v35 = vmax.f32 %v1716_v62, %v1763_v16  ;;  %v1717_v55 = vmax.f32 %v1541_v2, %v1605_v4  ;;  %v2037_v41 = vsel %vm1070_vm8, %v2007_v45, -inf  ;;  %v1606_v20 = vrot.slane %v6696_v47, 7 }
 0x132   : > { %v1764_v43 = vrot.slane %v6696_v47, 1  ;;  %v1480_v17 = vsel %vm437_vm1, %v1368_v52, %v1430_v7  ;;  %v1765_v48 = vrot.slane %v6695_v23, 1  ;;  %v1940_v54 = vrot.slane %v6696_v47, 2 }
 0x133   : > { %v5680_v27 = vmax.f32 %v1892_v35, %v1939_v15  ;;  %v1893_v32 = vmax.f32 %v1717_v55, %v1861_v60  ;;  %v1510_v10 = vsel %vm518_vm3, %v1480_v17, -inf  ;;  %v1656_v6 = vsel %vm620_vm2, %v1560_v13, %v1606_v20  ;;  %v6697_v15 = vld [vmem:[#allocation23_spill] sm:$0xff] }
 0x134   : > { %v1941_v21 = vrot.slane %v6695_v23, 2  ;;  %v1431_v53 = vsel %vm437_vm1, %v1430_v7, %v1368_v52  ;;  %v1542_v62 = vmax.f32 %v6696_v47, %v1510_v10  ;;  %v1686_v16 = vsel %vm701_vm4, %v1656_v6, -inf }
 0x135   : > { %3759 = vst.msk [vmem:[%s3919_s24 + $0x1d0] sm:$0xff] %vm169_vm0, %v5680_v27  ;;  %v5696_v28 = vmax.f32 %v1893_v32, %v2037_v41  ;;  %v1766_v0 = vsel %vm771_vm5, %v1764_v43, %v1765_v48  ;;  %v1543_v8 = vmax.f32 %v6695_v23, %v1431_v53  ;;  %v1607_v26 = vsel %vm620_vm2, %v1606_v20, %v1560_v13  ;;  %v6698_v41 = vld [vmem:[#allocation21_spill] sm:$0xff] }
 0x136   : > { %v1942_v29 = vsel %vm954_vm6, %v1940_v54, %v1941_v21  ;;  %v1832_v2 = vsel %vm771_vm5, %v1765_v48, %v1764_v43  ;;  %v1718_v4 = vmax.f32 %v1542_v62, %v1686_v16  ;;  %v2008_v35 = vsel %vm954_vm6, %v1941_v21, %v1940_v54 }
 0x137   : > { %3760 = vst.msk [vmem:[%s3919_s24 + $0x1d8] sm:$0xff] %vm169_vm0, %v5696_v28  ;;  %v1863_v11 = vsel %vm887_vm7, %v1832_v2, -inf  ;;  %v1369_v60 = vrot.slane %v6697_v15, 6  ;;  %v1719_v45 = vmax.f32 %v1543_v8, %v1607_v26  ;;  %v2039_v55 = vsel %vm1070_vm8, %v2008_v35, -inf }
 0x138   : > { %v1432_v23 = vrot.slane %v6698_v41, 6  ;;  %v1561_v52 = vrot.slane %v6697_v15, 7  ;;  %v1894_v47 = vmax.f32 %v1718_v4, %v1766_v0  ;;  %v1608_v7 = vrot.slane %v6698_v41, 7 }
 0x139   : > { %v1767_v13 = vrot.slane %v6698_v41, 1  ;;  %v1768_v20 = vrot.slane %v6697_v15, 1  ;;  %v1895_v43 = vmax.f32 %v1719_v45, %v1863_v11  ;;  %v1943_v17 = vrot.slane %v6698_v41, 2 }
 0x13a   : > { %v1481_v32 = vsel %vm437_vm1, %v1369_v60, %v1432_v23  ;;  %v1944_v48 = vrot.slane %v6697_v15, 2  ;;  %v5723_v54 = vmax.f32 %v1894_v47, %v1942_v29  ;;  %v1657_v6 = vsel %vm620_vm2, %v1561_v52, %v1608_v7 }
 0x13b   : > { %v1512_v10 = vsel %vm518_vm3, %v1481_v32, -inf  ;;  %v1769_v21 = vsel %vm771_vm5, %v1767_v13, %v1768_v20  ;;  %v5729_v53 = vmax.f32 %v1895_v43, %v2039_v55  ;;  %v1688_v16 = vsel %vm701_vm4, %v1657_v6, -inf }
 0x13c   : > { %v1544_v62 = vmax.f32 %v6698_v41, %v1512_v10  ;;  %v1945_v0 = vsel %vm954_vm6, %v1943_v17, %v1944_v48  ;;  %3761 = vst.msk [vmem:[%s3919_s24 + $0x1e0] sm:$0xff] %vm169_vm0, %v5723_v54  ;;  %v2165_v29 = vmax.f32 %v5680_v27, %v5608_v3  ;;  %v2167_v8 = vmax.f32 %v5723_v54, %v5649_v19 }
 0x13d   : > { %v1433_v26 = vsel %vm437_vm1, %v1432_v23, %v1369_v60  ;;  %v1609_v2 = vsel %vm620_vm2, %v1608_v7, %v1561_v52  ;;  %3762 = vst.msk [vmem:[%s3919_s24 + $0x1e8] sm:$0xff] %vm169_vm0, %v5729_v53  ;;  %v1833_v35 = vsel %vm771_vm5, %v1768_v20, %v1767_v13  ;;  %v2009_v45 = vsel %vm954_vm6, %v1944_v48, %v1943_v17 }
 0x13e   : > { %v1720_v4 = vmax.f32 %v1544_v62, %v1688_v16  ;;  %v1545_v11 = vmax.f32 %v6697_v15, %v1433_v26  ;;  %v2199_v55 = vmax.f32 %v2165_v29, %v5649_v19  ;;  %v2201_v41 = vmax.f32 %v2167_v8, %v5680_v27 }
 0x13f   : > { %v1865_v47 = vsel %vm887_vm7, %v1833_v35, -inf  ;;  %v2041_v60 = vsel %vm1070_vm8, %v2009_v45, -inf  ;;  %v2166_v15 = vmax.f32 %v5696_v28, %v5621_v33  ;;  %v2168_v7 = vmax.f32 %v5729_v53, %v5664_v58 }
 0x140   : > { %v1896_v23 = vmax.f32 %v1720_v4, %v1769_v21  ;;  %v1721_v52 = vmax.f32 %v1545_v11, %v1609_v2  ;;  %v2235_v13 = vmax.f32 %v2199_v55, %v5723_v54  ;;  %v2209_v20 = vmax.f32 %v5210_v14, %v5288_v46 }
 0x141   : > { %v2210_v43 = vmax.f32 %v5239_v24, %v5290_v39  ;;  %v2211_v32 = vmax.f32 %v2175_v49, %v5215_v9  ;;  %v2200_v10 = vmax.f32 %v2166_v15, %v5664_v58  ;;  %v2202_v6 = vmax.f32 %v2168_v7, %v5696_v28 }
 0x142   : > { %v2072_v17 = vmax.f32 %v1896_v23, %v1945_v0  ;;  %v1897_v48 = vmax.f32 %v1721_v52, %v1865_v47  ;;  %v2243_v21 = vmax.f32 %v2209_v20, %v5215_v9  ;;  %v2212_v16 = vmax.f32 %v2176_v36, %v5241_v25 }
 0x143   : > { %v2244_v62 = vmax.f32 %v2210_v43, %v5241_v25  ;;  %v5778_v29 = vmax.f32 %v2211_v32, %v5326_v40  ;;  %v2236_v26 = vmax.f32 %v2200_v10, %v5729_v53 }
 0x144   : > { %3763 = vst.msk [vmem:[%s3919_s24 + $0x1f0] sm:$0xff] %vm169_vm0, %v2072_v17  ;;  %v2169_v14 = vmax.f32 %v2072_v17, %v5680_v27  ;;  %v5783_v49 = vmax.f32 %v2201_v41, %v2072_v17  ;;  %v5785_v0 = vmax.f32 %v2235_v13, %v2072_v17  ;;  %v2073_v8 = vmax.f32 %v1897_v48, %v2041_v60 }
 0x145   : > { %v2291_v2 = vrot.slane %v2244_v62, 6  ;;  %v2339_v4 = vrot.slane %v2243_v21, 6  ;;  %v2483_v11 = vrot.slane %v2244_v62, 7  ;;  %v2515_v45 = vrot.slane %v2243_v21, 7 }
 0x146   : > { %v5789_v24 = vmax.f32 %v2169_v14, %v5723_v54  ;;  %3764 = vst.msk [vmem:[%s3919_s24 + $0x1f8] sm:$0xff] %vm169_vm0, %v2073_v8  ;;  %v2170_v36 = vmax.f32 %v2073_v8, %v5696_v28  ;;  %v5794_v35 = vmax.f32 %v2202_v6, %v2073_v8  ;;  %v5796_v55 = vmax.f32 %v2236_v26, %v2073_v8 }
 0x147   : > { %v2403_v41 = vsel %vm437_vm1, %v2291_v2, %v2339_v4  ;;  %v2659_v47 = vrot.slane %v2243_v21, 1  ;;  %v2660_v60 = vrot.slane %v2244_v62, 1  ;;  %v2579_v15 = vsel %vm620_vm2, %v2483_v11, %v2515_v45 }
 0x148   : > { %v5800_v23 = vmax.f32 %v2170_v36, %v5729_v53  ;;  %v2419_v52 = vsel %vm518_vm3, %v2403_v41, -inf  ;;  %v2835_v7 = vrot.slane %v2243_v21, 2  ;;  %v2595_v20 = vsel %vm701_vm4, %v2579_v15, -inf }
 0x149   : > { %v2451_v13 = vmax.f32 %v2243_v21, %v2419_v52  ;;  %v2661_v43 = vsel %vm771_vm5, %v2659_v47, %v2660_v60  ;;  %v2836_v32 = vrot.slane %v2244_v62, 2  ;;  %v2340_v17 = vsel %vm437_vm1, %v2339_v4, %v2291_v2 }
 0x14a   : > { %v2516_v48 = vsel %vm620_vm2, %v2515_v45, %v2483_v11  ;;  %v2755_v10 = vsel %vm771_vm5, %v2660_v60, %v2659_v47  ;;  %v2246_v6 = vmax.f32 %v2212_v16, %v5333_v38  ;;  %v2452_v26 = vmax.f32 %v2244_v62, %v2340_v17 }
 0x14b   : > { %v2627_v14 = vmax.f32 %v2451_v13, %v2595_v20  ;;  %v2837_v8 = vsel %vm954_vm6, %v2835_v7, %v2836_v32  ;;  %v2772_v21 = vsel %vm887_vm7, %v2755_v10, -inf  ;;  %v2931_v36 = vsel %vm954_vm6, %v2836_v32, %v2835_v7 }
 0x14c   : > { %v2292_v41 = vrot.slane %v2246_v6, 6  ;;  %v2341_v52 = vrot.slane %v5778_v29, 6  ;;  %v2484_v15 = vrot.slane %v2246_v6, 7  ;;  %v2628_v4 = vmax.f32 %v2452_v26, %v2516_v48 }
 0x14d   : > { %v2803_v2 = vmax.f32 %v2627_v14, %v2661_v43  ;;  %v2948_v11 = vsel %vm1070_vm8, %v2931_v36, -inf  ;;  %v2517_v16 = vrot.slane %v5778_v29, 7  ;;  %v2662_v62 = vrot.slane %v5778_v29, 1 }
 0x14e   : > { %v2404_v45 = vsel %vm437_vm1, %v2292_v41, %v2341_v52  ;;  %v2663_v47 = vrot.slane %v2246_v6, 1  ;;  %v2838_v60 = vrot.slane %v5778_v29, 2  ;;  %v2804_v13 = vmax.f32 %v2628_v4, %v2772_v21 }
 0x14f   : > { %v2979_v7 = vmax.f32 %v2803_v2, %v2837_v8  ;;  %v2421_v20 = vsel %vm518_vm3, %v2404_v45, -inf  ;;  %v2580_v43 = vsel %vm620_vm2, %v2484_v15, %v2517_v16  ;;  %v2839_v10 = vrot.slane %v2246_v6, 2 }
 0x150   : > { %v2453_v32 = vmax.f32 %v5778_v29, %v2421_v20  ;;  %v2597_v17 = vsel %vm701_vm4, %v2580_v43, -inf  ;;  %v2664_v48 = vsel %vm771_vm5, %v2662_v62, %v2663_v47  ;;  %v2980_v14 = vmax.f32 %v2804_v13, %v2948_v11 }
 0x151   : > { %3011 = vst.msk [vmem:[%s3919_s24] sm:$0xff] %vm169_vm0, %v2979_v7  ;;  %v2342_v8 = vsel %vm437_vm1, %v2341_v52, %v2292_v41  ;;  %v2518_v26 = vsel %vm620_vm2, %v2517_v16, %v2484_v15  ;;  %v2756_v21 = vsel %vm771_vm5, %v2663_v47, %v2662_v62  ;;  %v2840_v2 = vsel %vm954_vm6, %v2838_v60, %v2839_v10 }
 0x152   : > { %v2629_v36 = vmax.f32 %v2453_v32, %v2597_v17  ;;  %v2454_v4 = vmax.f32 %v2246_v6, %v2342_v8  ;;  %v2774_v29 = vsel %vm887_vm7, %v2756_v21, -inf  ;;  %3012 = vst.msk [vmem:[%s3919_s24 + $0x8] sm:$0xff] %vm169_vm0, %v2980_v14  ;;  %v2932_v45 = vsel %vm954_vm6, %v2839_v10, %v2838_v60 }
 0x153   : > { %v2213_v11 = vmax.f32 %v5305_v56, %v5326_v40  ;;  %v2214_v41 = vmax.f32 %v5313_v44, %v5333_v38  ;;  %v2145_v52 = vmax.f32 %v5326_v40, %v5288_v46  ;;  %v2950_v6 = vsel %vm1070_vm8, %v2932_v45, -inf }
 0x154   : > { %v2805_v15 = vmax.f32 %v2629_v36, %v2664_v48  ;;  %v2630_v16 = vmax.f32 %v2454_v4, %v2518_v26  ;;  %v2146_v62 = vmax.f32 %v5333_v38, %v5290_v39  ;;  %v2147_v44 = vmax.f32 %v5376_v61, %v5215_v9 }
 0x155   : > { %v2247_v47 = vmax.f32 %v2213_v11, %v5376_v61  ;;  %v2248_v60 = vmax.f32 %v2214_v41, %v5378_v12  ;;  %v2179_v56 = vmax.f32 %v2145_v52, %v5215_v9  ;;  %v2148_v20 = vmax.f32 %v5378_v12, %v5241_v25 }
 0x156   : > { %v2981_v7 = vmax.f32 %v2805_v15, %v2840_v2  ;;  %v2806_v46 = vmax.f32 %v2630_v16, %v2774_v29  ;;  %v2180_v13 = vmax.f32 %v2146_v62, %v5241_v25 }
 0x157   : > { %v2293_v43 = vrot.slane %v2248_v60, 6  ;;  %v2343_v32 = vrot.slane %v2247_v47, 6  ;;  %v2485_v39 = vrot.slane %v2248_v60, 7  ;;  %v2519_v17 = vrot.slane %v2247_v47, 7 }
 0x158   : > { %3013 = vst.msk [vmem:[%s3919_s24 + $0x10] sm:$0xff] %vm169_vm0, %v2981_v7  ;;  %v2982_v48 = vmax.f32 %v2806_v46, %v2950_v6  ;;  %v2665_v10 = vrot.slane %v2247_v47, 1  ;;  %v2666_v14 = vrot.slane %v2248_v60, 1  ;;  %v2841_v8 = vrot.slane %v2247_v47, 2  ;;  %v3335_v5 = vld [vmem:[%s3919_s24] sm:$0xff] (%p3891_p3) }
 0x159   : > { %v2405_v9 = vsel %vm437_vm1, %v2293_v43, %v2343_v32  ;;  %v2581_v26 = vsel %vm620_vm2, %v2485_v39, %v2519_v17  ;;  %v2842_v21 = vrot.slane %v2248_v60, 2  ;;  %v2344_v36 = vsel %vm437_vm1, %v2343_v32, %v2293_v43  ;;  %3336 = vst [vmem:[%s6308_s28] sm:$0xff] (%p3891_p3), %v3335_v5  ;;  %v3463_v5 = vld [vmem:[%s3919_s24 + $0x200] sm:$0xff] (%p3891_p3) }
 0x15a   : > { %3014 = vst.msk [vmem:[%s3919_s24 + $0x18] sm:$0xff] %vm169_vm0, %v2982_v48  ;;  %v2423_v25 = vsel %vm518_vm3, %v2405_v9, -inf  ;;  %v2599_v2 = vsel %vm701_vm4, %v2581_v26, -inf  ;;  %v2667_v4 = vsel %vm771_vm5, %v2665_v10, %v2666_v14  ;;  %v2456_v29 = vmax.f32 %v2248_v60, %v2344_v36  ;;  %3464 = vst [vmem:[%s6308_s28 + $0x400] sm:$0xff] (%p3891_p3), %v3463_v5 }
 0x15b   : > { %v2455_v45 = vmax.f32 %v2247_v47, %v2423_v25  ;;  %v2843_v11 = vsel %vm954_vm6, %v2841_v8, %v2842_v21  ;;  %v2520_v41 = vsel %vm620_vm2, %v2519_v17, %v2485_v39  ;;  %v2757_v52 = vsel %vm771_vm5, %v2666_v14, %v2665_v10 }
 0x15c   : > { %v2632_v15 = vmax.f32 %v2456_v29, %v2520_v41  ;;  %v2776_v16 = vsel %vm887_vm7, %v2757_v52, -inf  ;;  %v2933_v6 = vsel %vm954_vm6, %v2842_v21, %v2841_v8  ;;  %v2215_v62 = vmax.f32 %v2179_v56, %v5376_v61 }
 0x15d   : > { %v2631_v7 = vmax.f32 %v2455_v45, %v2599_v2  ;;  %v2952_v46 = vsel %vm1070_vm8, %v2933_v6, -inf  ;;  %v2216_v47 = vmax.f32 %v2180_v13, %v5378_v12  ;;  %v2181_v60 = vmax.f32 %v2147_v44, %v5326_v40 }
 0x15e   : > { %v2808_v43 = vmax.f32 %v2632_v15, %v2776_v16  ;;  %v2249_v32 = vmax.f32 %v2215_v62, %v5402_v59  ;;  %v2182_v39 = vmax.f32 %v2148_v20, %v5333_v38  ;;  %v2149_v17 = vmax.f32 %v5402_v59, %v5326_v40 }
 0x15f   : > { %v2807_v48 = vmax.f32 %v2631_v7, %v2667_v4  ;;  %v2250_v56 = vmax.f32 %v2216_v47, %v5412_v34  ;;  %v2217_v10 = vmax.f32 %v2181_v60, %v5402_v59  ;;  %v2150_v13 = vmax.f32 %v5412_v34, %v5333_v38 }
 0x160   : > { %v2984_v14 = vmax.f32 %v2808_v43, %v2952_v46  ;;  %v2345_v44 = vrot.slane %v2249_v32, 6  ;;  %v2521_v8 = vrot.slane %v2249_v32, 7  ;;  %v2668_v9 = vrot.slane %v2249_v32, 1 }
 0x161   : > { %v2983_v26 = vmax.f32 %v2807_v48, %v2843_v11  ;;  %v2294_v21 = vrot.slane %v2250_v56, 6  ;;  %v2486_v36 = vrot.slane %v2250_v56, 7  ;;  %v2669_v20 = vrot.slane %v2250_v56, 1 }
 0x162   : > { %3016 = vst.msk [vmem:[%s3919_s24 + $0x28] sm:$0xff] %vm169_vm0, %v2984_v14  ;;  %v2844_v40 = vrot.slane %v2249_v32, 2  ;;  %v2845_v25 = vrot.slane %v2250_v56, 2  ;;  %v2218_v2 = vmax.f32 %v2182_v39, %v5412_v34  ;;  %v2251_v4 = vmax.f32 %v2217_v10, %v5444_v42 }
 0x163   : > { %3015 = vst.msk [vmem:[%s3919_s24 + $0x20] sm:$0xff] %vm169_vm0, %v2983_v26  ;;  %v2406_v38 = vsel %vm437_vm1, %v2294_v21, %v2345_v44  ;;  %v2582_v29 = vsel %vm620_vm2, %v2486_v36, %v2521_v8  ;;  %v2670_v45 = vsel %vm771_vm5, %v2668_v9, %v2669_v20  ;;  %v2346_v11 = vsel %vm437_vm1, %v2345_v44, %v2294_v21 }
 0x164   : > { %v2425_v41 = vsel %vm518_vm3, %v2406_v38, -inf  ;;  %v2601_v52 = vsel %vm701_vm4, %v2582_v29, -inf  ;;  %v2846_v15 = vsel %vm954_vm6, %v2844_v40, %v2845_v25  ;;  %v2458_v16 = vmax.f32 %v2250_v56, %v2346_v11 }
 0x165   : > { %v2457_v6 = vmax.f32 %v2249_v32, %v2425_v41  ;;  %v2522_v62 = vsel %vm620_vm2, %v2521_v8, %v2486_v36  ;;  %v2758_v7 = vsel %vm771_vm5, %v2669_v20, %v2668_v9  ;;  %v2934_v46 = vsel %vm954_vm6, %v2845_v25, %v2844_v40 }
 0x166   : > { %v2634_v47 = vmax.f32 %v2458_v16, %v2522_v62  ;;  %v2778_v60 = vsel %vm887_vm7, %v2758_v7, -inf  ;;  %v2954_v43 = vsel %vm1070_vm8, %v2934_v46, -inf  ;;  %v2252_v39 = vmax.f32 %v2218_v2, %v5446_v57 }
 0x167   : > { %v2633_v48 = vmax.f32 %v2457_v6, %v2601_v52  ;;  %v2347_v10 = vrot.slane %v2251_v4, 6  ;;  %v2523_v14 = vrot.slane %v2251_v4, 7  ;;  %v2671_v56 = vrot.slane %v2251_v4, 1 }
 0x168   : > { %v2810_v32 = vmax.f32 %v2634_v47, %v2778_v60  ;;  %v2295_v44 = vrot.slane %v2252_v39, 6  ;;  %v2487_v8 = vrot.slane %v2252_v39, 7  ;;  %v2672_v9 = vrot.slane %v2252_v39, 1 }
 0x169   : > { %v2809_v26 = vmax.f32 %v2633_v48, %v2670_v45  ;;  %v2847_v21 = vrot.slane %v2251_v4, 2  ;;  %v2848_v36 = vrot.slane %v2252_v39, 2  ;;  %v2183_v20 = vmax.f32 %v2149_v17, %v5376_v61 }
 0x16a   : > { %v2986_v40 = vmax.f32 %v2810_v32, %v2954_v43  ;;  %v2407_v25 = vsel %vm437_vm1, %v2295_v44, %v2347_v10  ;;  %v2583_v2 = vsel %vm620_vm2, %v2487_v8, %v2523_v14  ;;  %v2673_v38 = vsel %vm771_vm5, %v2671_v56, %v2672_v9 }
 0x16b   : > { %v2985_v29 = vmax.f32 %v2809_v26, %v2846_v15  ;;  %v2427_v11 = vsel %vm518_vm3, %v2407_v25, -inf  ;;  %v2603_v41 = vsel %vm701_vm4, %v2583_v2, -inf  ;;  %v2849_v45 = vsel %vm954_vm6, %v2847_v21, %v2848_v36 }
 0x16c   : > { %3018 = vst.msk [vmem:[%s3919_s24 + $0x38] sm:$0xff] %vm169_vm0, %v2986_v40  ;;  %v2459_v52 = vmax.f32 %v2251_v4, %v2427_v11  ;;  %v2348_v17 = vsel %vm437_vm1, %v2347_v10, %v2295_v44  ;;  %v2524_v16 = vsel %vm620_vm2, %v2523_v14, %v2487_v8  ;;  %v2759_v6 = vsel %vm771_vm5, %v2672_v9, %v2671_v56 }
 0x16d   : > { %3017 = vst.msk [vmem:[%s3919_s24 + $0x30] sm:$0xff] %vm169_vm0, %v2985_v29  ;;  %v2460_v15 = vmax.f32 %v2252_v39, %v2348_v17  ;;  %v2780_v62 = vsel %vm887_vm7, %v2759_v6, -inf  ;;  %v2935_v7 = vsel %vm954_vm6, %v2848_v36, %v2847_v21  ;;  %v2184_v46 = vmax.f32 %v2150_v13, %v5378_v12 }
 0x16e   : > { %v2635_v47 = vmax.f32 %v2459_v52, %v2603_v41  ;;  %v2956_v4 = vsel %vm1070_vm8, %v2935_v7, -inf  ;;  %v2219_v60 = vmax.f32 %v2183_v20, %v5444_v42  ;;  %v2151_v43 = vmax.f32 %v5444_v42, %v5376_v61 }
 0x16f   : > { %v2636_v48 = vmax.f32 %v2460_v15, %v2524_v16  ;;  %v2220_v10 = vmax.f32 %v2184_v46, %v5446_v57  ;;  %v2152_v39 = vmax.f32 %v5446_v57, %v5378_v12  ;;  %v2153_v14 = vmax.f32 %v5476_v37, %v5402_v59 }
 0x170   : > { %v2811_v56 = vmax.f32 %v2635_v47, %v2673_v38  ;;  %v2253_v13 = vmax.f32 %v2219_v60, %v5476_v37  ;;  %v2185_v32 = vmax.f32 %v2151_v43, %v5402_v59  ;;  %v2154_v44 = vmax.f32 %v5481_v30, %v5412_v34 }
 0x171   : > { %v2812_v8 = vmax.f32 %v2636_v48, %v2780_v62  ;;  %v2254_v61 = vmax.f32 %v2220_v10, %v5481_v30  ;;  %v2186_v9 = vmax.f32 %v2152_v39, %v5412_v34  ;;  %v5950_v12 = vmax.f32 %v2153_v14, %v5444_v42 }
 0x172   : > { %v2987_v26 = vmax.f32 %v2811_v56, %v2849_v45  ;;  %v2349_v21 = vrot.slane %v2253_v13, 6  ;;  %v2525_v36 = vrot.slane %v2253_v13, 7  ;;  %v2674_v20 = vrot.slane %v2253_v13, 1 }
 0x173   : > { %v2988_v40 = vmax.f32 %v2812_v8, %v2956_v4  ;;  %v2296_v25 = vrot.slane %v2254_v61, 6  ;;  %v2488_v2 = vrot.slane %v2254_v61, 7  ;;  %v2675_v59 = vrot.slane %v2254_v61, 1 }
 0x174   : > { %3019 = vst.msk [vmem:[%s3919_s24 + $0x40] sm:$0xff] %vm169_vm0, %v2987_v26  ;;  %v2850_v38 = vrot.slane %v2253_v13, 2  ;;  %v2851_v29 = vrot.slane %v2254_v61, 2  ;;  %v2221_v11 = vmax.f32 %v2185_v32, %v5476_v37  ;;  %v2222_v41 = vmax.f32 %v2186_v9, %v5481_v30 }
 0x175   : > { %3020 = vst.msk [vmem:[%s3919_s24 + $0x48] sm:$0xff] %vm169_vm0, %v2988_v40  ;;  %v2408_v34 = vsel %vm437_vm1, %v2296_v25, %v2349_v21  ;;  %v2584_v45 = vsel %vm620_vm2, %v2488_v2, %v2525_v36  ;;  %v2676_v52 = vsel %vm771_vm5, %v2674_v20, %v2675_v59  ;;  %v2350_v17 = vsel %vm437_vm1, %v2349_v21, %v2296_v25 }
 0x176   : > { %v2429_v16 = vsel %vm518_vm3, %v2408_v34, -inf  ;;  %v2605_v6 = vsel %vm701_vm4, %v2584_v45, -inf  ;;  %v2852_v15 = vsel %vm954_vm6, %v2850_v38, %v2851_v29  ;;  %v2462_v62 = vmax.f32 %v2254_v61, %v2350_v17 }
 0x177   : > { %v2461_v7 = vmax.f32 %v2253_v13, %v2429_v16  ;;  %v2526_v46 = vsel %vm620_vm2, %v2525_v36, %v2488_v2  ;;  %v2760_v47 = vsel %vm771_vm5, %v2675_v59, %v2674_v20  ;;  %v2936_v4 = vsel %vm954_vm6, %v2851_v29, %v2850_v38 }
 0x178   : > { %v2638_v60 = vmax.f32 %v2462_v62, %v2526_v46  ;;  %v2782_v43 = vsel %vm887_vm7, %v2760_v47, -inf  ;;  %v2958_v48 = vsel %vm1070_vm8, %v2936_v4, -inf  ;;  %v2255_v10 = vmax.f32 %v2221_v11, %v5509_v31 }
 0x179   : > { %v2637_v39 = vmax.f32 %v2461_v7, %v2605_v6  ;;  %v2256_v14 = vmax.f32 %v2222_v41, %v5516_v51  ;;  %v2188_v56 = vmax.f32 %v2154_v44, %v5446_v57  ;;  %v2223_v13 = vmax.f32 %v5950_v12, %v5509_v31 }
 0x17a   : > { %v2814_v32 = vmax.f32 %v2638_v60, %v2782_v43  ;;  %v2351_v8 = vrot.slane %v2255_v10, 6  ;;  %v2527_v61 = vrot.slane %v2255_v10, 7  ;;  %v2677_v9 = vrot.slane %v2255_v10, 1 }
 0x17b   : > { %v2813_v26 = vmax.f32 %v2637_v39, %v2676_v52  ;;  %v2297_v21 = vrot.slane %v2256_v14, 6  ;;  %v2489_v36 = vrot.slane %v2256_v14, 7  ;;  %v2678_v20 = vrot.slane %v2256_v14, 1 }
 0x17c   : > { %v2990_v40 = vmax.f32 %v2814_v32, %v2958_v48  ;;  %v2853_v25 = vrot.slane %v2255_v10, 2  ;;  %v2854_v2 = vrot.slane %v2256_v14, 2  ;;  %v2224_v59 = vmax.f32 %v2188_v56, %v5516_v51 }
 0x17d   : > { %v2989_v38 = vmax.f32 %v2813_v26, %v2852_v15  ;;  %v2409_v44 = vsel %vm437_vm1, %v2297_v21, %v2351_v8  ;;  %v2585_v12 = vsel %vm620_vm2, %v2489_v36, %v2527_v61  ;;  %v2679_v29 = vsel %vm771_vm5, %v2677_v9, %v2678_v20 }
 0x17e   : > { %3022 = vst.msk [vmem:[%s3919_s24 + $0x58] sm:$0xff] %vm169_vm0, %v2990_v40  ;;  %v2431_v11 = vsel %vm518_vm3, %v2409_v44, -inf  ;;  %v2607_v41 = vsel %vm701_vm4, %v2585_v12, -inf  ;;  %v2855_v34 = vsel %vm954_vm6, %v2853_v25, %v2854_v2  ;;  %v2352_v45 = vsel %vm437_vm1, %v2351_v8, %v2297_v21 }
 0x17f   : > { %3021 = vst.msk [vmem:[%s3919_s24 + $0x50] sm:$0xff] %vm169_vm0, %v2989_v38  ;;  %v2463_v52 = vmax.f32 %v2255_v10, %v2431_v11  ;;  %v2464_v17 = vmax.f32 %v2256_v14, %v2352_v45  ;;  %v2528_v16 = vsel %vm620_vm2, %v2527_v61, %v2489_v36  ;;  %v2761_v6 = vsel %vm771_vm5, %v2678_v20, %v2677_v9 }
 0x180   : > { %v2784_v15 = vsel %vm887_vm7, %v2761_v6, -inf  ;;  %v2937_v62 = vsel %vm954_vm6, %v2854_v2, %v2853_v25  ;;  %v2257_v7 = vmax.f32 %v2223_v13, %v5544_v18  ;;  %v2258_v46 = vmax.f32 %v2224_v59, %v5546_v63 }
 0x181   : > { %v2639_v47 = vmax.f32 %v2463_v52, %v2607_v41  ;;  %v2640_v4 = vmax.f32 %v2464_v17, %v2528_v16  ;;  %v2960_v60 = vsel %vm1070_vm8, %v2937_v62, -inf  ;;  %v2155_v43 = vmax.f32 %v5509_v31, %v5444_v42 }
 0x182   : > { %v2298_v48 = vrot.slane %v2258_v46, 6  ;;  %v2353_v10 = vrot.slane %v2257_v7, 6  ;;  %v2490_v39 = vrot.slane %v2258_v46, 7  ;;  %v2529_v14 = vrot.slane %v2257_v7, 7 }
 0x183   : > { %v2815_v56 = vmax.f32 %v2639_v47, %v2679_v29  ;;  %v2816_v32 = vmax.f32 %v2640_v4, %v2784_v15  ;;  %v2680_v8 = vrot.slane %v2257_v7, 1  ;;  %v2681_v13 = vrot.slane %v2258_v46, 1 }
 0x184   : > { %v2410_v61 = vsel %vm437_vm1, %v2298_v48, %v2353_v10  ;;  %v2586_v9 = vsel %vm620_vm2, %v2490_v39, %v2529_v14  ;;  %v2856_v26 = vrot.slane %v2257_v7, 2  ;;  %v2857_v21 = vrot.slane %v2258_v46, 2 }
 0x185   : > { %v2991_v36 = vmax.f32 %v2815_v56, %v2855_v34  ;;  %v2992_v20 = vmax.f32 %v2816_v32, %v2960_v60  ;;  %v2433_v42 = vsel %vm518_vm3, %v2410_v61, -inf  ;;  %v2609_v40 = vsel %vm701_vm4, %v2586_v9, -inf }
 0x186   : > { %v2465_v25 = vmax.f32 %v2257_v7, %v2433_v42  ;;  %v2682_v2 = vsel %vm771_vm5, %v2680_v8, %v2681_v13  ;;  %v2858_v59 = vsel %vm954_vm6, %v2856_v26, %v2857_v21  ;;  %v2354_v38 = vsel %vm437_vm1, %v2353_v10, %v2298_v48 }
 0x187   : > { %3023 = vst.msk [vmem:[%s3919_s24 + $0x60] sm:$0xff] %vm169_vm0, %v2991_v36  ;;  %3024 = vst.msk [vmem:[%s3919_s24 + $0x68] sm:$0xff] %vm169_vm0, %v2992_v20  ;;  %v2466_v44 = vmax.f32 %v2258_v46, %v2354_v38  ;;  %v2530_v12 = vsel %vm620_vm2, %v2529_v14, %v2490_v39  ;;  %v2762_v29 = vsel %vm771_vm5, %v2681_v13, %v2680_v8 }
 0x188   : > { %v2938_v11 = vsel %vm954_vm6, %v2857_v21, %v2856_v26  ;;  %v2641_v41 = vmax.f32 %v2465_v25, %v2609_v40  ;;  %v2786_v34 = vsel %vm887_vm7, %v2762_v29, -inf  ;;  %v2156_v52 = vmax.f32 %v5516_v51, %v5446_v57 }
 0x189   : > { %v2962_v45 = vsel %vm1070_vm8, %v2938_v11, -inf  ;;  %v2642_v17 = vmax.f32 %v2466_v44, %v2530_v12  ;;  %v2189_v16 = vmax.f32 %v2155_v43, %v5476_v37  ;;  %v2157_v6 = vmax.f32 %v5544_v18, %v5476_v37 }
 0x18a   : > { %v2158_v15 = vmax.f32 %v5546_v63, %v5481_v30  ;;  %v2817_v62 = vmax.f32 %v2641_v41, %v2682_v2  ;;  %v2190_v7 = vmax.f32 %v2156_v52, %v5481_v30  ;;  %v2159_v46 = vmax.f32 %v5582_v22, %v5509_v31 }
 0x18b   : > { %v2160_v47 = vmax.f32 %v5584_v50, %v5516_v51  ;;  %v2818_v57 = vmax.f32 %v2642_v17, %v2786_v34  ;;  %v2225_v4 = vmax.f32 %v2189_v16, %v5544_v18  ;;  %v2191_v60 = vmax.f32 %v2157_v6, %v5509_v31 }
 0x18c   : > { %v2192_v37 = vmax.f32 %v2158_v15, %v5516_v51  ;;  %v2993_v43 = vmax.f32 %v2817_v62, %v2858_v59  ;;  %v2226_v48 = vmax.f32 %v2190_v7, %v5546_v63  ;;  %v2193_v10 = vmax.f32 %v2159_v46, %v5544_v18 }
 0x18d   : > { %v2194_v30 = vmax.f32 %v2160_v47, %v5546_v63  ;;  %v2994_v39 = vmax.f32 %v2818_v57, %v2962_v45  ;;  %v2259_v14 = vmax.f32 %v2225_v4, %v5582_v22  ;;  %v2227_v56 = vmax.f32 %v2191_v60, %v5582_v22 }
 0x18e   : > { %v2228_v32 = vmax.f32 %v2192_v37, %v5584_v50  ;;  %3025 = vst.msk [vmem:[%s3919_s24 + $0x70] sm:$0xff] %vm169_vm0, %v2993_v43  ;;  %v2260_v31 = vmax.f32 %v2226_v48, %v5584_v50  ;;  %v2229_v51 = vmax.f32 %v2193_v10, %v5608_v3  ;;  %v2161_v13 = vmax.f32 %v5608_v3, %v5544_v18 }
 0x18f   : > { %v2230_v8 = vmax.f32 %v2194_v30, %v5621_v33  ;;  %3026 = vst.msk [vmem:[%s3919_s24 + $0x78] sm:$0xff] %vm169_vm0, %v2994_v39  ;;  %v2355_v61 = vrot.slane %v2259_v14, 6  ;;  %v2531_v9 = vrot.slane %v2259_v14, 7  ;;  %v2683_v26 = vrot.slane %v2259_v14, 1 }
 0x190   : > { %v2859_v21 = vrot.slane %v2259_v14, 2  ;;  %v2299_v36 = vrot.slane %v2260_v31, 6  ;;  %v2491_v20 = vrot.slane %v2260_v31, 7  ;;  %v2684_v42 = vrot.slane %v2260_v31, 1 }
 0x191   : > { %v2860_v40 = vrot.slane %v2260_v31, 2  ;;  %v2261_v25 = vmax.f32 %v2227_v56, %v5608_v3  ;;  %v2262_v2 = vmax.f32 %v2228_v32, %v5621_v33  ;;  %v6057_v59 = vmax.f32 %v2229_v51, %v5649_v19 }
 0x192   : > { %v6060_v38 = vmax.f32 %v2230_v8, %v5664_v58  ;;  %v2411_v44 = vsel %vm437_vm1, %v2299_v36, %v2355_v61  ;;  %v2587_v12 = vsel %vm620_vm2, %v2491_v20, %v2531_v9  ;;  %v2685_v29 = vsel %vm771_vm5, %v2683_v26, %v2684_v42 }
 0x193   : > { %v2861_v11 = vsel %vm954_vm6, %v2859_v21, %v2860_v40  ;;  %v2435_v41 = vsel %vm518_vm3, %v2411_v44, -inf  ;;  %v2611_v34 = vsel %vm701_vm4, %v2587_v12, -inf  ;;  %v2356_v45 = vsel %vm437_vm1, %v2355_v61, %v2299_v36 }
 0x194   : > { %v2532_v52 = vsel %vm620_vm2, %v2531_v9, %v2491_v20  ;;  %v2467_v17 = vmax.f32 %v2259_v14, %v2435_v41  ;;  %v2468_v16 = vmax.f32 %v2260_v31, %v2356_v45  ;;  %v2763_v6 = vsel %vm771_vm5, %v2684_v42, %v2683_v26 }
 0x195   : > { %v2939_v15 = vsel %vm954_vm6, %v2860_v40, %v2859_v21  ;;  %v2788_v62 = vsel %vm887_vm7, %v2763_v6, -inf  ;;  %v2300_v46 = vrot.slane %v2262_v2, 6  ;;  %v2357_v47 = vrot.slane %v2261_v25, 6 }
 0x196   : > { %v2964_v7 = vsel %vm1070_vm8, %v2939_v15, -inf  ;;  %v2643_v57 = vmax.f32 %v2467_v17, %v2611_v34  ;;  %v2644_v4 = vmax.f32 %v2468_v16, %v2532_v52  ;;  %v2492_v60 = vrot.slane %v2262_v2, 7 }
 0x197   : > { %v2533_v37 = vrot.slane %v2261_v25, 7  ;;  %v2412_v43 = vsel %vm437_vm1, %v2300_v46, %v2357_v47  ;;  %v2686_v48 = vrot.slane %v2261_v25, 1  ;;  %v2687_v10 = vrot.slane %v2262_v2, 1 }
 0x198   : > { %v2862_v30 = vrot.slane %v2261_v25, 2  ;;  %v2819_v39 = vmax.f32 %v2643_v57, %v2685_v29  ;;  %v2820_v14 = vmax.f32 %v2644_v4, %v2788_v62  ;;  %v2437_v56 = vsel %vm518_vm3, %v2412_v43, -inf }
 0x199   : > { %v2588_v32 = vsel %vm620_vm2, %v2492_v60, %v2533_v37  ;;  %v2469_v31 = vmax.f32 %v2261_v25, %v2437_v56  ;;  %v2688_v8 = vsel %vm771_vm5, %v2686_v48, %v2687_v10  ;;  %v2863_v61 = vrot.slane %v2262_v2, 2 }
 0x19a   : > { %v2613_v51 = vsel %vm701_vm4, %v2588_v32, -inf  ;;  %v2995_v9 = vmax.f32 %v2819_v39, %v2861_v11  ;;  %v2996_v26 = vmax.f32 %v2820_v14, %v2964_v7  ;;  %v2358_v21 = vsel %vm437_vm1, %v2357_v47, %v2300_v46 }
 0x19b   : > { %v2534_v36 = vsel %vm620_vm2, %v2533_v37, %v2492_v60  ;;  %v2645_v20 = vmax.f32 %v2469_v31, %v2613_v51  ;;  %v2864_v42 = vsel %vm954_vm6, %v2862_v30, %v2863_v61  ;;  %v2470_v40 = vmax.f32 %v2262_v2, %v2358_v21 }
 0x19c   : > { %v2764_v44 = vsel %vm771_vm5, %v2687_v10, %v2686_v48  ;;  %3027 = vst.msk [vmem:[%s3919_s24 + $0x80] sm:$0xff] %vm169_vm0, %v2995_v9  ;;  %3028 = vst.msk [vmem:[%s3919_s24 + $0x88] sm:$0xff] %vm169_vm0, %v2996_v26  ;;  %v2940_v12 = vsel %vm954_vm6, %v2863_v61, %v2862_v30  ;;  %v2301_v29 = vrot.slane %v6060_v38, 6  ;;  %v2359_v11 = vrot.slane %v6057_v59, 6 }
 0x19d   : > { %v2790_v25 = vsel %vm887_vm7, %v2764_v44, -inf  ;;  %v2821_v41 = vmax.f32 %v2645_v20, %v2688_v8  ;;  %v2646_v34 = vmax.f32 %v2470_v40, %v2534_v36  ;;  %v2966_v2 = vsel %vm1070_vm8, %v2940_v12, -inf }
 0x19e   : > { %v2493_v45 = vrot.slane %v6060_v38, 7  ;;  %v2413_v52 = vsel %vm437_vm1, %v2301_v29, %v2359_v11  ;;  %v2535_v17 = vrot.slane %v6057_v59, 7  ;;  %v2689_v16 = vrot.slane %v6057_v59, 1 }
 0x19f   : > { %v2690_v6 = vrot.slane %v6060_v38, 1  ;;  %v2997_v15 = vmax.f32 %v2821_v41, %v2864_v42  ;;  %v2822_v62 = vmax.f32 %v2646_v34, %v2790_v25  ;;  %v2439_v7 = vsel %vm518_vm3, %v2413_v52, -inf }
 0x1a0   : > { %v2865_v46 = vrot.slane %v6057_v59, 2  ;;  %v2471_v47 = vmax.f32 %v6057_v59, %v2439_v7  ;;  %v2589_v57 = vsel %vm620_vm2, %v2493_v45, %v2535_v17  ;;  %v2866_v60 = vrot.slane %v6060_v38, 2 }
 0x1a1   : > { %v2691_v4 = vsel %vm771_vm5, %v2689_v16, %v2690_v6  ;;  %3029 = vst.msk [vmem:[%s3919_s24 + $0x90] sm:$0xff] %vm169_vm0, %v2997_v15  ;;  %v2998_v37 = vmax.f32 %v2822_v62, %v2966_v2  ;;  %v2615_v43 = vsel %vm701_vm4, %v2589_v57, -inf  ;;  %v2360_v48 = vsel %vm437_vm1, %v2359_v11, %v2301_v29 }
 0x1a2   : > { %v2536_v10 = vsel %vm620_vm2, %v2535_v17, %v2493_v45  ;;  %v2647_v30 = vmax.f32 %v2471_v47, %v2615_v43  ;;  %v2867_v39 = vsel %vm954_vm6, %v2865_v46, %v2866_v60  ;;  %v2472_v59 = vmax.f32 %v6060_v38, %v2360_v48 }
 0x1a3   : > { %v2765_v14 = vsel %vm771_vm5, %v2690_v6, %v2689_v16  ;;  %3030 = vst.msk [vmem:[%s3919_s24 + $0x98] sm:$0xff] %vm169_vm0, %v2998_v37  ;;  %v2941_v32 = vsel %vm954_vm6, %v2866_v60, %v2865_v46  ;;  %v2162_v31 = vmax.f32 %v5621_v33, %v5546_v63  ;;  %v2195_v51 = vmax.f32 %v2161_v13, %v5582_v22 }
 0x1a4   : > { %v2792_v56 = vsel %vm887_vm7, %v2765_v14, -inf  ;;  %v2823_v8 = vmax.f32 %v2647_v30, %v2691_v4  ;;  %v2648_v38 = vmax.f32 %v2472_v59, %v2536_v10  ;;  %v2968_v61 = vsel %vm1070_vm8, %v2941_v32, -inf }
 0x1a5   : > { %v2163_v9 = vmax.f32 %v5649_v19, %v5582_v22  ;;  %v2196_v26 = vmax.f32 %v2162_v31, %v5584_v50  ;;  %v2231_v21 = vmax.f32 %v2195_v51, %v5649_v19  ;;  %v2164_v63 = vmax.f32 %v5664_v58, %v5584_v50 }
 0x1a6   : > { %v2304_v36 = vrot.slane %v5796_v55, 6  ;;  %v2999_v18 = vmax.f32 %v2823_v8, %v2867_v39  ;;  %v2824_v13 = vmax.f32 %v2648_v38, %v2792_v56  ;;  %v2365_v42 = vrot.slane %v5785_v0, 6 }
 0x1a7   : > { %v2197_v20 = vmax.f32 %v2163_v9, %v5608_v3  ;;  %v2232_v40 = vmax.f32 %v2196_v26, %v5664_v58  ;;  %v2265_v22 = vmax.f32 %v2231_v21, %v5680_v27  ;;  %v2198_v44 = vmax.f32 %v2164_v63, %v5621_v33 }
 0x1a8   : > { %v2496_v19 = vrot.slane %v5796_v55, 7  ;;  %3031 = vst.msk [vmem:[%s3919_s24 + $0xa0] sm:$0xff] %vm169_vm0, %v2999_v18  ;;  %v3000_v50 = vmax.f32 %v2824_v13, %v2968_v61  ;;  %v2416_v3 = vsel %vm437_vm1, %v2304_v36, %v2365_v42  ;;  %v2541_v12 = vrot.slane %v5785_v0, 7 }
 0x1a9   : > { %v2233_v25 = vmax.f32 %v2197_v20, %v5680_v27  ;;  %v2266_v58 = vmax.f32 %v2232_v40, %v5696_v28  ;;  %v2361_v29 = vrot.slane %v2265_v22, 6  ;;  %v2537_v11 = vrot.slane %v2265_v22, 7 }
 0x1aa   : > { %v2692_v33 = vrot.slane %v2265_v22, 1  ;;  %3032 = vst.msk [vmem:[%s3919_s24 + $0xa8] sm:$0xff] %vm169_vm0, %v3000_v50  ;;  %v2868_v41 = vrot.slane %v2265_v22, 2  ;;  %v2234_v34 = vmax.f32 %v2198_v44, %v5696_v28  ;;  %v2445_v2 = vsel %vm518_vm3, %v2416_v3, -inf }
 0x1ab   : > { %v2267_v27 = vmax.f32 %v2233_v25, %v5723_v54  ;;  %v2302_v45 = vrot.slane %v2266_v58, 6  ;;  %v2494_v52 = vrot.slane %v2266_v58, 7  ;;  %v2693_v17 = vrot.slane %v2266_v58, 1 }
 0x1ac   : > { %v2869_v16 = vrot.slane %v2266_v58, 2  ;;  %v2268_v6 = vmax.f32 %v2234_v34, %v5729_v53  ;;  %v2477_v34 = vmax.f32 %v5785_v0, %v2445_v2  ;;  %v2874_v2 = vrot.slane %v5785_v0, 2 }
 0x1ad   : > { %v2363_v15 = vrot.slane %v2267_v27, 6  ;;  %v2539_v62 = vrot.slane %v2267_v27, 7  ;;  %v2695_v7 = vrot.slane %v2267_v27, 1  ;;  %v2414_v46 = vsel %vm437_vm1, %v2302_v45, %v2361_v29 }
 0x1ae   : > { %v2590_v47 = vsel %vm620_vm2, %v2494_v52, %v2537_v11  ;;  %v2694_v28 = vsel %vm771_vm5, %v2692_v33, %v2693_v17  ;;  %v2870_v54 = vsel %vm954_vm6, %v2868_v41, %v2869_v16  ;;  %v2441_v57 = vsel %vm518_vm3, %v2414_v46, -inf }
 0x1af   : > { %v2617_v4 = vsel %vm701_vm4, %v2590_v47, -inf  ;;  %v2362_v60 = vsel %vm437_vm1, %v2361_v29, %v2302_v45  ;;  %v2538_v53 = vsel %vm620_vm2, %v2537_v11, %v2494_v52  ;;  %v2473_v37 = vmax.f32 %v2265_v22, %v2441_v57 }
 0x1b0   : > { %v2474_v43 = vmax.f32 %v2266_v58, %v2362_v60  ;;  %v2766_v48 = vsel %vm771_vm5, %v2693_v17, %v2692_v33  ;;  %v2942_v10 = vsel %vm954_vm6, %v2869_v16, %v2868_v41  ;;  %v2303_v59 = vrot.slane %v2268_v6, 6 }
 0x1b1   : > { %v2794_v30 = vsel %vm887_vm7, %v2766_v48, -inf  ;;  %v2970_v39 = vsel %vm1070_vm8, %v2942_v10, -inf  ;;  %v2495_v14 = vrot.slane %v2268_v6, 7  ;;  %v2649_v56 = vmax.f32 %v2473_v37, %v2617_v4 }
 0x1b2   : > { %v2650_v32 = vmax.f32 %v2474_v43, %v2538_v53  ;;  %v2696_v31 = vrot.slane %v2268_v6, 1  ;;  %v2871_v51 = vrot.slane %v2267_v27, 2  ;;  %v2415_v8 = vsel %vm437_vm1, %v2303_v59, %v2363_v15 }
 0x1b3   : > { %v2591_v38 = vsel %vm620_vm2, %v2495_v14, %v2539_v62  ;;  %v2872_v61 = vrot.slane %v2268_v6, 2  ;;  %v2364_v9 = vsel %vm437_vm1, %v2363_v15, %v2303_v59  ;;  %v2825_v26 = vmax.f32 %v2649_v56, %v2694_v28 }
 0x1b4   : > { %v2826_v21 = vmax.f32 %v2650_v32, %v2794_v30  ;;  %v2443_v63 = vsel %vm518_vm3, %v2415_v8, -inf  ;;  %v2619_v18 = vsel %vm701_vm4, %v2591_v38, -inf  ;;  %v2697_v20 = vsel %vm771_vm5, %v2695_v7, %v2696_v31 }
 0x1b5   : > { %v2475_v13 = vmax.f32 %v2267_v27, %v2443_v63  ;;  %v2873_v40 = vsel %vm954_vm6, %v2871_v51, %v2872_v61  ;;  %v2476_v22 = vmax.f32 %v2268_v6, %v2364_v9  ;;  %v3001_v44 = vmax.f32 %v2825_v26, %v2870_v54 }
 0x1b6   : > { %v3002_v50 = vmax.f32 %v2826_v21, %v2970_v39  ;;  %v2540_v25 = vsel %vm620_vm2, %v2539_v62, %v2495_v14  ;;  %v2767_v3 = vsel %vm771_vm5, %v2696_v31, %v2695_v7  ;;  %v2943_v33 = vsel %vm954_vm6, %v2872_v61, %v2871_v51 }
 0x1b7   : > { %v2651_v58 = vmax.f32 %v2475_v13, %v2619_v18  ;;  %v2652_v29 = vmax.f32 %v2476_v22, %v2540_v25  ;;  %v2796_v11 = vsel %vm887_vm7, %v2767_v3, -inf  ;;  %3033 = vst.msk [vmem:[%s3919_s24 + $0xb0] sm:$0xff] %vm169_vm0, %v3001_v44  ;;  %v2972_v41 = vsel %vm1070_vm8, %v2943_v33, -inf }
 0x1b8   : > { %3034 = vst.msk [vmem:[%s3919_s24 + $0xb8] sm:$0xff] %vm169_vm0, %v3002_v50  ;;  %v2592_v27 = vsel %vm620_vm2, %v2496_v19, %v2541_v12  ;;  %v2698_v45 = vrot.slane %v5785_v0, 1  ;;  %v2699_v6 = vrot.slane %v5796_v55, 1  ;;  %v2875_v62 = vrot.slane %v5796_v55, 2 }
 0x1b9   : > { %v2827_v52 = vmax.f32 %v2651_v58, %v2697_v20  ;;  %v2828_v17 = vmax.f32 %v2652_v29, %v2796_v11  ;;  %v2621_v16 = vsel %vm701_vm4, %v2592_v27, -inf  ;;  %v2366_v7 = vsel %vm437_vm1, %v2365_v42, %v2304_v36 }
 0x1ba   : > { %v2653_v15 = vmax.f32 %v2477_v34, %v2621_v16  ;;  %v2700_v28 = vsel %vm771_vm5, %v2698_v45, %v2699_v6  ;;  %v2478_v54 = vmax.f32 %v5796_v55, %v2366_v7  ;;  %v2876_v4 = vsel %vm954_vm6, %v2874_v2, %v2875_v62 }
 0x1bb   : > { %v3003_v46 = vmax.f32 %v2827_v52, %v2873_v40  ;;  %v3004_v47 = vmax.f32 %v2828_v17, %v2972_v41  ;;  %v2542_v60 = vsel %vm620_vm2, %v2541_v12, %v2496_v19  ;;  %v2768_v53 = vsel %vm771_vm5, %v2699_v6, %v2698_v45 }
 0x1bc   : > { %v2829_v57 = vmax.f32 %v2653_v15, %v2700_v28  ;;  %v2654_v36 = vmax.f32 %v2478_v54, %v2542_v60  ;;  %v2798_v42 = vsel %vm887_vm7, %v2768_v53, -inf  ;;  %v2944_v37 = vsel %vm954_vm6, %v2875_v62, %v2874_v2 }
 0x1bd   : > { %3035 = vst.msk [vmem:[%s3919_s24 + $0xc0] sm:$0xff] %vm169_vm0, %v3003_v46  ;;  %3036 = vst.msk [vmem:[%s3919_s24 + $0xc8] sm:$0xff] %vm169_vm0, %v3004_v47  ;;  %v2305_v43 = vrot.slane %v5794_v35, 6  ;;  %v2974_v0 = vsel %vm1070_vm8, %v2944_v37, -inf  ;;  %v2367_v19 = vrot.slane %v5783_v49, 6  ;;  %v2497_v12 = vrot.slane %v5794_v35, 7 }
 0x1be   : > { %v3005_v55 = vmax.f32 %v2829_v57, %v2876_v4  ;;  %v2830_v48 = vmax.f32 %v2654_v36, %v2798_v42  ;;  %v2543_v10 = vrot.slane %v5783_v49, 7  ;;  %v2701_v30 = vrot.slane %v5783_v49, 1  ;;  %v3337_v36 = vld [vmem:[%s3919_s24 + $0x8] sm:$0xff] (%p3891_p3)  ;;  %v3339_v42 = vld [vmem:[%s3919_s24 + $0x10] sm:$0xff] (%p3891_p3)  ;;  %v3341_v37 = vld [vmem:[%s3919_s24 + $0x18] sm:$0xff] (%p3891_p3) }
 0x1bf   : > { %v2702_v39 = vrot.slane %v5794_v35, 1  ;;  %v2417_v59 = vsel %vm437_vm1, %v2305_v43, %v2367_v19  ;;  %v2877_v14 = vrot.slane %v5783_v49, 2  ;;  %v2878_v56 = vrot.slane %v5794_v35, 2  ;;  %3338 = vst [vmem:[%s6308_s28 + $0x8] sm:$0xff] (%p3891_p3), %v3337_v36  ;;  %3340 = vst [vmem:[%s6308_s28 + $0x10] sm:$0xff] (%p3891_p3), %v3339_v42  ;;  %v3465_v36 = vld [vmem:[%s3919_s24 + $0x208] sm:$0xff] (%p3891_p3) }
 0x1c0   : > { %3037 = vst.msk [vmem:[%s3919_s24 + $0xd0] sm:$0xff] %vm169_vm0, %v3005_v55  ;;  %v2368_v32 = vsel %vm437_vm1, %v2367_v19, %v2305_v43  ;;  %v3006_v31 = vmax.f32 %v2830_v48, %v2974_v0  ;;  %v2447_v51 = vsel %vm518_vm3, %v2417_v59, -inf  ;;  %v2593_v8 = vsel %vm620_vm2, %v2497_v12, %v2543_v10  ;;  %v3343_v43 = vld [vmem:[%s3919_s24 + $0x20] sm:$0xff] (%p3891_p3)  ;;  %v3345_v55 = vld [vmem:[%s3919_s24 + $0x28] sm:$0xff] (%p3891_p3)  ;;  %3342 = vst [vmem:[%s6308_s28 + $0x18] sm:$0xff] (%p3891_p3), %v3341_v37 }
 0x1c1   : > { %v2703_v38 = vsel %vm771_vm5, %v2701_v30, %v2702_v39  ;;  %v2479_v61 = vmax.f32 %v5783_v49, %v2447_v51  ;;  %v2623_v9 = vsel %vm701_vm4, %v2593_v8, -inf  ;;  %v2879_v26 = vsel %vm954_vm6, %v2877_v14, %v2878_v56  ;;  %3344 = vst [vmem:[%s6308_s28 + $0x20] sm:$0xff] (%p3891_p3), %v3343_v43  ;;  %3346 = vst [vmem:[%s6308_s28 + $0x28] sm:$0xff] (%p3891_p3), %v3345_v55  ;;  %v3347_v0 = vld [vmem:[%s3919_s24 + $0x30] sm:$0xff] (%p3891_p3)  ;;  %v3349_v19 = vld [vmem:[%s3919_s24 + $0x38] sm:$0xff] (%p3891_p3) }
 0x1c2   : > { %v2480_v21 = vmax.f32 %v5794_v35, %v2368_v32  ;;  %3038 = vst.msk [vmem:[%s3919_s24 + $0xd8] sm:$0xff] %vm169_vm0, %v3006_v31  ;;  %v2544_v63 = vsel %vm620_vm2, %v2543_v10, %v2497_v12  ;;  %v2769_v18 = vsel %vm771_vm5, %v2702_v39, %v2701_v30  ;;  %v2945_v13 = vsel %vm954_vm6, %v2878_v56, %v2877_v14  ;;  %v3351_v12 = vld [vmem:[%s3919_s24 + $0x40] sm:$0xff] (%p3891_p3)  ;;  %v3353_v48 = vld [vmem:[%s3919_s24 + $0x48] sm:$0xff] (%p3891_p3)  ;;  %v3355_v10 = vld [vmem:[%s3919_s24 + $0x50] sm:$0xff] (%p3891_p3) }
 0x1c3   : > { %v2306_v20 = vrot.slane %v5800_v23, 6  ;;  %v2655_v40 = vmax.f32 %v2479_v61, %v2623_v9  ;;  %v2800_v49 = vsel %vm887_vm7, %v2769_v18, -inf  ;;  %v2976_v44 = vsel %vm1070_vm8, %v2945_v13, -inf  ;;  %3348 = vst [vmem:[%s6308_s28 + $0x30] sm:$0xff] (%p3891_p3), %v3347_v0  ;;  %3350 = vst [vmem:[%s6308_s28 + $0x38] sm:$0xff] (%p3891_p3), %v3349_v19  ;;  %v3357_v30 = vld [vmem:[%s3919_s24 + $0x58] sm:$0xff] (%p3891_p3) }
 0x1c4   : > { %v2656_v22 = vmax.f32 %v2480_v21, %v2544_v63  ;;  %v2369_v35 = vrot.slane %v5789_v24, 6  ;;  %v2498_v50 = vrot.slane %v5800_v23, 7  ;;  %v2545_v25 = vrot.slane %v5789_v24, 7  ;;  %3352 = vst [vmem:[%s6308_s28 + $0x40] sm:$0xff] (%p3891_p3), %v3351_v12  ;;  %3354 = vst [vmem:[%s6308_s28 + $0x48] sm:$0xff] (%p3891_p3), %v3353_v48  ;;  %v3359_v39 = vld [vmem:[%s3919_s24 + $0x60] sm:$0xff] (%p3891_p3) }
 0x1c5   : > { %v2704_v3 = vrot.slane %v5789_v24, 1  ;;  %v2831_v58 = vmax.f32 %v2655_v40, %v2703_v38  ;;  %v2705_v11 = vrot.slane %v5800_v23, 1  ;;  %v2880_v33 = vrot.slane %v5789_v24, 2  ;;  %3356 = vst [vmem:[%s6308_s28 + $0x50] sm:$0xff] (%p3891_p3), %v3355_v10  ;;  %3358 = vst [vmem:[%s6308_s28 + $0x58] sm:$0xff] (%p3891_p3), %v3357_v30  ;;  %v3361_v59 = vld [vmem:[%s3919_s24 + $0x68] sm:$0xff] (%p3891_p3) }
 0x1c6   : > { %v2832_v29 = vmax.f32 %v2656_v22, %v2800_v49  ;;  %v2418_v41 = vsel %vm437_vm1, %v2306_v20, %v2369_v35  ;;  %v2594_v34 = vsel %vm620_vm2, %v2498_v50, %v2545_v25  ;;  %v2881_v27 = vrot.slane %v5800_v23, 2  ;;  %v3363_v14 = vld [vmem:[%s3919_s24 + $0x70] sm:$0xff] (%p3891_p3)  ;;  %3360 = vst [vmem:[%s6308_s28 + $0x60] sm:$0xff] (%p3891_p3), %v3359_v39  ;;  %3362 = vst [vmem:[%s6308_s28 + $0x68] sm:$0xff] (%p3891_p3), %v3361_v59  ;;  %v3365_v56 = vld [vmem:[%s3919_s24 + $0x78] sm:$0xff] (%p3891_p3) }
 0x1c7   : > { %v2370_v45 = vsel %vm437_vm1, %v2369_v35, %v2306_v20  ;;  %v3007_v52 = vmax.f32 %v2831_v58, %v2879_v26  ;;  %v2449_v16 = vsel %vm518_vm3, %v2418_v41, -inf  ;;  %v2625_v6 = vsel %vm701_vm4, %v2594_v34, -inf  ;;  %3364 = vst [vmem:[%s6308_s28 + $0x70] sm:$0xff] (%p3891_p3), %v3363_v14  ;;  %v3367_v32 = vld [vmem:[%s3919_s24 + $0x80] sm:$0xff] (%p3891_p3)  ;;  %v3369_v31 = vld [vmem:[%s3919_s24 + $0x88] sm:$0xff] (%p3891_p3)  ;;  %3366 = vst [vmem:[%s6308_s28 + $0x78] sm:$0xff] (%p3891_p3), %v3365_v56 }
 0x1c8   : > { %v3008_v17 = vmax.f32 %v2832_v29, %v2976_v44  ;;  %v2481_v15 = vmax.f32 %v5789_v24, %v2449_v16  ;;  %v2706_v2 = vsel %vm771_vm5, %v2704_v3, %v2705_v11  ;;  %v2882_v62 = vsel %vm954_vm6, %v2880_v33, %v2881_v27  ;;  %3368 = vst [vmem:[%s6308_s28 + $0x80] sm:$0xff] (%p3891_p3), %v3367_v32  ;;  %v3371_v51 = vld [vmem:[%s3919_s24 + $0x90] sm:$0xff] (%p3891_p3)  ;;  %v3373_v8 = vld [vmem:[%s3919_s24 + $0x98] sm:$0xff] (%p3891_p3)  ;;  %v3375_v38 = vld [vmem:[%s3919_s24 + $0xa0] sm:$0xff] (%p3891_p3) }
 0x1c9   : > { %v2482_v7 = vmax.f32 %v5800_v23, %v2370_v45  ;;  %3039 = vst.msk [vmem:[%s3919_s24 + $0xe0] sm:$0xff] %vm169_vm0, %v3007_v52  ;;  %v2546_v46 = vsel %vm620_vm2, %v2545_v25, %v2498_v50  ;;  %v2770_v47 = vsel %vm771_vm5, %v2705_v11, %v2704_v3  ;;  %v2946_v1 = vsel %vm954_vm6, %v2881_v27, %v2880_v33  ;;  %v3377_v61 = vld [vmem:[%s3919_s24 + $0xa8] sm:$0xff] (%p3891_p3)  ;;  %v3379_v9 = vld [vmem:[%s3919_s24 + $0xb0] sm:$0xff] (%p3891_p3)  ;;  %v3381_v26 = vld [vmem:[%s3919_s24 + $0xb8] sm:$0xff] (%p3891_p3) }
 0x1ca   : > { %3040 = vst.msk [vmem:[%s3919_s24 + $0xe8] sm:$0xff] %vm169_vm0, %v3008_v17  ;;  %v2657_v28 = vmax.f32 %v2481_v15, %v2625_v6  ;;  %v2802_v54 = vsel %vm887_vm7, %v2770_v47, -inf  ;;  %v2978_v57 = vsel %vm1070_vm8, %v2946_v1, -inf  ;;  %3370 = vst [vmem:[%s6308_s28 + $0x88] sm:$0xff] (%p3891_p3), %v3369_v31  ;;  %v3383_v21 = vld [vmem:[%s3919_s24 + $0xc0] sm:$0xff] (%p3891_p3)  ;;  %v3385_v63 = vld [vmem:[%s3919_s24 + $0xc8] sm:$0xff] (%p3891_p3) }
 0x1cb   : > { %v2658_v24 = vmax.f32 %v2482_v7, %v2546_v46  ;;  %3049 = sbr.rel (!%p3891_p3) target bundleno = 515 (0x203), region = 28  ;;  %3372 = vst [vmem:[%s6308_s28 + $0x90] sm:$0xff] (%p3891_p3), %v3371_v51  ;;  %3374 = vst [vmem:[%s6308_s28 + $0x98] sm:$0xff] (%p3891_p3), %v3373_v8  ;;  %v3387_v18 = vld [vmem:[%s3919_s24 + $0xd0] sm:$0xff] (%p3891_p3)  ;;  %v3389_v13 = vld [vmem:[%s3919_s24 + $0xd8] sm:$0xff] (%p3891_p3) }
 0x1cc   : > { %v2833_v4 = vmax.f32 %v2657_v28, %v2706_v2  ;;  %3376 = vst [vmem:[%s6308_s28 + $0xa0] sm:$0xff] (%p3891_p3), %v3375_v38  ;;  %3378 = vst [vmem:[%s6308_s28 + $0xa8] sm:$0xff] (%p3891_p3), %v3377_v61  ;;  %v3399_v44 = vld [vmem:[%s3919_s24 + $0x100] sm:$0xff] (%p3891_p3)  ;;  %v3401_v35 = vld [vmem:[%s3919_s24 + $0x108] sm:$0xff] (%p3891_p3) }
 0x1cd   : > { %v2834_v23 = vmax.f32 %v2658_v24, %v2802_v54  ;;  %3380 = vst [vmem:[%s6308_s28 + $0xb0] sm:$0xff] (%p3891_p3), %v3379_v9  ;;  %3382 = vst [vmem:[%s6308_s28 + $0xb8] sm:$0xff] (%p3891_p3), %v3381_v26  ;;  %v3403_v50 = vld [vmem:[%s3919_s24 + $0x110] sm:$0xff] (%p3891_p3)  ;;  %v3405_v25 = vld [vmem:[%s3919_s24 + $0x118] sm:$0xff] (%p3891_p3) }
 0x1ce   : > { %v3009_v60 = vmax.f32 %v2833_v4, %v2882_v62  ;;  %3384 = vst [vmem:[%s6308_s28 + $0xc0] sm:$0xff] (%p3891_p3), %v3383_v21  ;;  %3386 = vst [vmem:[%s6308_s28 + $0xc8] sm:$0xff] (%p3891_p3), %v3385_v63  ;;  %v3407_v3 = vld [vmem:[%s3919_s24 + $0x120] sm:$0xff] (%p3891_p3)  ;;  %v3409_v58 = vld [vmem:[%s3919_s24 + $0x128] sm:$0xff] (%p3891_p3) }
 0x1cf   : > { %v3010_v53 = vmax.f32 %v2834_v23, %v2978_v57  ;;  %3388 = vst [vmem:[%s6308_s28 + $0xd0] sm:$0xff] (%p3891_p3), %v3387_v18  ;;  %3390 = vst [vmem:[%s6308_s28 + $0xd8] sm:$0xff] (%p3891_p3), %v3389_v13  ;;  %v3411_v29 = vld [vmem:[%s3919_s24 + $0x130] sm:$0xff] (%p3891_p3)  ;;  %v3413_v11 = vld [vmem:[%s3919_s24 + $0x138] sm:$0xff] (%p3891_p3) }
 0x1d0   : > { %3041 = vst.msk [vmem:[%s3919_s24 + $0xf0] sm:$0xff] %vm169_vm0, %v3009_v60  ;;  %v3391_v20 = vld [vmem:[%s3919_s24 + $0xe0] sm:$0xff] (%p3891_p3)  ;;  %3400 = vst [vmem:[%s6308_s28 + $0x200] sm:$0xff] (%p3891_p3), %v3399_v44  ;;  %v3417_v41 = vld [vmem:[%s3919_s24 + $0x148] sm:$0xff] (%p3891_p3) }
 0x1d1   : > { %3042 = vst.msk [vmem:[%s3919_s24 + $0xf8] sm:$0xff] %vm169_vm0, %v3010_v53  ;;  %v3393_v40 = vld [vmem:[%s3919_s24 + $0xe8] sm:$0xff] (%p3891_p3)  ;;  %3392 = vst [vmem:[%s6308_s28 + $0xe0] sm:$0xff] (%p3891_p3), %v3391_v20  ;;  %v3415_v33 = vld [vmem:[%s3919_s24 + $0x140] sm:$0xff] (%p3891_p3) }
 0x1d2   : > { %3394 = vst [vmem:[%s6308_s28 + $0xe8] sm:$0xff] %v3393_v40  ;;  %3402 = vst [vmem:[%s6308_s28 + $0x208] sm:$0xff] %v3401_v35  ;;  %v3419_v34 = vld [vmem:[%s3919_s24 + $0x150] sm:$0xff]  ;;  %v3421_v27 = vld [vmem:[%s3919_s24 + $0x158] sm:$0xff] }
 0x1d3   : > { %3404 = vst [vmem:[%s6308_s28 + $0x210] sm:$0xff] %v3403_v50  ;;  %3406 = vst [vmem:[%s6308_s28 + $0x218] sm:$0xff] %v3405_v25  ;;  %v3423_v45 = vld [vmem:[%s3919_s24 + $0x160] sm:$0xff]  ;;  %v3425_v52 = vld [vmem:[%s3919_s24 + $0x168] sm:$0xff] }
 0x1d4   : > { %3408 = vst [vmem:[%s6308_s28 + $0x220] sm:$0xff] %v3407_v3  ;;  %3410 = vst [vmem:[%s6308_s28 + $0x228] sm:$0xff] %v3409_v58  ;;  %v3427_v17 = vld [vmem:[%s3919_s24 + $0x170] sm:$0xff]  ;;  %v3429_v16 = vld [vmem:[%s3919_s24 + $0x178] sm:$0xff] }
 0x1d5   : > { %3412 = vst [vmem:[%s6308_s28 + $0x230] sm:$0xff] %v3411_v29  ;;  %3414 = vst [vmem:[%s6308_s28 + $0x238] sm:$0xff] %v3413_v11  ;;  %v3431_v6 = vld [vmem:[%s3919_s24 + $0x180] sm:$0xff]  ;;  %v3433_v15 = vld [vmem:[%s3919_s24 + $0x188] sm:$0xff] }
 0x1d6   : > { %3416 = vst [vmem:[%s6308_s28 + $0x240] sm:$0xff] %v3415_v33  ;;  %3418 = vst [vmem:[%s6308_s28 + $0x248] sm:$0xff] %v3417_v41  ;;  %v3435_v2 = vld [vmem:[%s3919_s24 + $0x190] sm:$0xff]  ;;  %v3437_v62 = vld [vmem:[%s3919_s24 + $0x198] sm:$0xff] }
 0x1d7   : > { %v3395_v22 = vld [vmem:[%s3919_s24 + $0xf0] sm:$0xff]  ;;  %3420 = vst [vmem:[%s6308_s28 + $0x250] sm:$0xff] %v3419_v34  ;;  %3422 = vst [vmem:[%s6308_s28 + $0x258] sm:$0xff] %v3421_v27  ;;  %v3439_v7 = vld [vmem:[%s3919_s24 + $0x1a0] sm:$0xff] }
 0x1d8   : > { %v3397_v49 = vld [vmem:[%s3919_s24 + $0xf8] sm:$0xff]  ;;  %3396 = vst [vmem:[%s6308_s28 + $0xf0] sm:$0xff] %v3395_v22  ;;  %3424 = vst [vmem:[%s6308_s28 + $0x260] sm:$0xff] %v3423_v45  ;;  %v3441_v46 = vld [vmem:[%s3919_s24 + $0x1a8] sm:$0xff] }
 0x1d9   : > { %3398 = vst [vmem:[%s6308_s28 + $0xf8] sm:$0xff] %v3397_v49  ;;  %3426 = vst [vmem:[%s6308_s28 + $0x268] sm:$0xff] %v3425_v52  ;;  %v3443_v47 = vld [vmem:[%s3919_s24 + $0x1b0] sm:$0xff]  ;;  %v3445_v1 = vld [vmem:[%s3919_s24 + $0x1b8] sm:$0xff] }
 0x1da   : > { %3428 = vst [vmem:[%s6308_s28 + $0x270] sm:$0xff] %v3427_v17  ;;  %3430 = vst [vmem:[%s6308_s28 + $0x278] sm:$0xff] %v3429_v16  ;;  %v3447_v28 = vld [vmem:[%s3919_s24 + $0x1c0] sm:$0xff]  ;;  %v3449_v24 = vld [vmem:[%s3919_s24 + $0x1c8] sm:$0xff] }
 0x1db   : > { %3432 = vst [vmem:[%s6308_s28 + $0x280] sm:$0xff] %v3431_v6  ;;  %3434 = vst [vmem:[%s6308_s28 + $0x288] sm:$0xff] %v3433_v15  ;;  %v3451_v54 = vld [vmem:[%s3919_s24 + $0x1d0] sm:$0xff]  ;;  %v3453_v57 = vld [vmem:[%s3919_s24 + $0x1d8] sm:$0xff] }
 0x1dc   : > { %3436 = vst [vmem:[%s6308_s28 + $0x290] sm:$0xff] %v3435_v2  ;;  %3438 = vst [vmem:[%s6308_s28 + $0x298] sm:$0xff] %v3437_v62  ;;  %v3455_v4 = vld [vmem:[%s3919_s24 + $0x1e0] sm:$0xff]  ;;  %v3457_v23 = vld [vmem:[%s3919_s24 + $0x1e8] sm:$0xff] }
 0x1dd   : > { %3440 = vst [vmem:[%s6308_s28 + $0x2a0] sm:$0xff] %v3439_v7  ;;  %3442 = vst [vmem:[%s6308_s28 + $0x2a8] sm:$0xff] %v3441_v46  ;;  %v3459_v60 = vld [vmem:[%s3919_s24 + $0x1f0] sm:$0xff]  ;;  %v3461_v53 = vld [vmem:[%s3919_s24 + $0x1f8] sm:$0xff] }
 0x1de   : > { %3444 = vst [vmem:[%s6308_s28 + $0x2b0] sm:$0xff] %v3443_v47  ;;  %3446 = vst [vmem:[%s6308_s28 + $0x2b8] sm:$0xff] %v3445_v1  ;;  %v3467_v42 = vld [vmem:[%s3919_s24 + $0x210] sm:$0xff]  ;;  %v3469_v37 = vld [vmem:[%s3919_s24 + $0x218] sm:$0xff] }
 0x1df   : > { %3448 = vst [vmem:[%s6308_s28 + $0x2c0] sm:$0xff] %v3447_v28  ;;  %3450 = vst [vmem:[%s6308_s28 + $0x2c8] sm:$0xff] %v3449_v24  ;;  %v3471_v43 = vld [vmem:[%s3919_s24 + $0x220] sm:$0xff]  ;;  %v3473_v55 = vld [vmem:[%s3919_s24 + $0x228] sm:$0xff] }
 0x1e0   : > { %3452 = vst [vmem:[%s6308_s28 + $0x2d0] sm:$0xff] %v3451_v54  ;;  %3454 = vst [vmem:[%s6308_s28 + $0x2d8] sm:$0xff] %v3453_v57  ;;  %v3475_v0 = vld [vmem:[%s3919_s24 + $0x230] sm:$0xff]  ;;  %v3477_v19 = vld [vmem:[%s3919_s24 + $0x238] sm:$0xff] }
 0x1e1   : > { %3456 = vst [vmem:[%s6308_s28 + $0x2e0] sm:$0xff] %v3455_v4  ;;  %3458 = vst [vmem:[%s6308_s28 + $0x2e8] sm:$0xff] %v3457_v23  ;;  %v3479_v12 = vld [vmem:[%s3919_s24 + $0x240] sm:$0xff]  ;;  %v3481_v48 = vld [vmem:[%s3919_s24 + $0x248] sm:$0xff] }
 0x1e2   : > { %3460 = vst [vmem:[%s6308_s28 + $0x2f0] sm:$0xff] %v3459_v60  ;;  %3462 = vst [vmem:[%s6308_s28 + $0x2f8] sm:$0xff] %v3461_v53  ;;  %v3483_v10 = vld [vmem:[%s3919_s24 + $0x250] sm:$0xff]  ;;  %v3485_v30 = vld [vmem:[%s3919_s24 + $0x258] sm:$0xff] }
 0x1e3   : > { %3466 = vst [vmem:[%s6308_s28 + $0x408] sm:$0xff] %v3465_v36  ;;  %3468 = vst [vmem:[%s6308_s28 + $0x410] sm:$0xff] %v3467_v42  ;;  %v3487_v39 = vld [vmem:[%s3919_s24 + $0x260] sm:$0xff]  ;;  %v3489_v59 = vld [vmem:[%s3919_s24 + $0x268] sm:$0xff] }
 0x1e4   : > { %3470 = vst [vmem:[%s6308_s28 + $0x418] sm:$0xff] %v3469_v37  ;;  %3472 = vst [vmem:[%s6308_s28 + $0x420] sm:$0xff] %v3471_v43  ;;  %v3491_v14 = vld [vmem:[%s3919_s24 + $0x270] sm:$0xff]  ;;  %v3493_v56 = vld [vmem:[%s3919_s24 + $0x278] sm:$0xff] }
 0x1e5   : > { %3474 = vst [vmem:[%s6308_s28 + $0x428] sm:$0xff] %v3473_v55  ;;  %3476 = vst [vmem:[%s6308_s28 + $0x430] sm:$0xff] %v3475_v0  ;;  %v3495_v32 = vld [vmem:[%s3919_s24 + $0x280] sm:$0xff]  ;;  %v3497_v31 = vld [vmem:[%s3919_s24 + $0x288] sm:$0xff] }
 0x1e6   : > { %3478 = vst [vmem:[%s6308_s28 + $0x438] sm:$0xff] %v3477_v19  ;;  %3480 = vst [vmem:[%s6308_s28 + $0x440] sm:$0xff] %v3479_v12  ;;  %v3499_v51 = vld [vmem:[%s3919_s24 + $0x290] sm:$0xff]  ;;  %v3501_v8 = vld [vmem:[%s3919_s24 + $0x298] sm:$0xff] }
 0x1e7   : > { %3482 = vst [vmem:[%s6308_s28 + $0x448] sm:$0xff] %v3481_v48  ;;  %3484 = vst [vmem:[%s6308_s28 + $0x450] sm:$0xff] %v3483_v10  ;;  %v3503_v38 = vld [vmem:[%s3919_s24 + $0x2a0] sm:$0xff]  ;;  %v3505_v61 = vld [vmem:[%s3919_s24 + $0x2a8] sm:$0xff] }
 0x1e8   : > { %3486 = vst [vmem:[%s6308_s28 + $0x458] sm:$0xff] %v3485_v30  ;;  %3488 = vst [vmem:[%s6308_s28 + $0x460] sm:$0xff] %v3487_v39  ;;  %v3507_v9 = vld [vmem:[%s3919_s24 + $0x2b0] sm:$0xff]  ;;  %v3509_v26 = vld [vmem:[%s3919_s24 + $0x2b8] sm:$0xff] }
 0x1e9   : > { %3490 = vst [vmem:[%s6308_s28 + $0x468] sm:$0xff] %v3489_v59  ;;  %3492 = vst [vmem:[%s6308_s28 + $0x470] sm:$0xff] %v3491_v14  ;;  %v3511_v21 = vld [vmem:[%s3919_s24 + $0x2c0] sm:$0xff]  ;;  %v3513_v63 = vld [vmem:[%s3919_s24 + $0x2c8] sm:$0xff] }
 0x1ea   : > { %3494 = vst [vmem:[%s6308_s28 + $0x478] sm:$0xff] %v3493_v56  ;;  %3496 = vst [vmem:[%s6308_s28 + $0x480] sm:$0xff] %v3495_v32  ;;  %v3515_v18 = vld [vmem:[%s3919_s24 + $0x2d0] sm:$0xff]  ;;  %v3517_v13 = vld [vmem:[%s3919_s24 + $0x2d8] sm:$0xff] }
 0x1eb   : > { %3498 = vst [vmem:[%s6308_s28 + $0x488] sm:$0xff] %v3497_v31  ;;  %3500 = vst [vmem:[%s6308_s28 + $0x490] sm:$0xff] %v3499_v51  ;;  %v3519_v20 = vld [vmem:[%s3919_s24 + $0x2e0] sm:$0xff]  ;;  %v3521_v40 = vld [vmem:[%s3919_s24 + $0x2e8] sm:$0xff] }
 0x1ec   : > { %3502 = vst [vmem:[%s6308_s28 + $0x498] sm:$0xff] %v3501_v8  ;;  %3504 = vst [vmem:[%s6308_s28 + $0x4a0] sm:$0xff] %v3503_v38  ;;  %v3523_v22 = vld [vmem:[%s3919_s24 + $0x2f0] sm:$0xff]  ;;  %v3525_v49 = vld [vmem:[%s3919_s24 + $0x2f8] sm:$0xff] }
 0x1ed   : > { %3506 = vst [vmem:[%s6308_s28 + $0x4a8] sm:$0xff] %v3505_v61  ;;  %3508 = vst [vmem:[%s6308_s28 + $0x4b0] sm:$0xff] %v3507_v9  ;;  %v3527_v44 = vld [vmem:[%s3919_s24 + $0x300] sm:$0xff]  ;;  %v3529_v35 = vld [vmem:[%s3919_s24 + $0x308] sm:$0xff] }
 0x1ee   : > { %3510 = vst [vmem:[%s6308_s28 + $0x4b8] sm:$0xff] %v3509_v26  ;;  %3512 = vst [vmem:[%s6308_s28 + $0x4c0] sm:$0xff] %v3511_v21  ;;  %v3531_v50 = vld [vmem:[%s3919_s24 + $0x310] sm:$0xff]  ;;  %v3533_v25 = vld [vmem:[%s3919_s24 + $0x318] sm:$0xff] }
 0x1ef   : > { %3514 = vst [vmem:[%s6308_s28 + $0x4c8] sm:$0xff] %v3513_v63  ;;  %3516 = vst [vmem:[%s6308_s28 + $0x4d0] sm:$0xff] %v3515_v18  ;;  %v3535_v3 = vld [vmem:[%s3919_s24 + $0x320] sm:$0xff]  ;;  %v3537_v58 = vld [vmem:[%s3919_s24 + $0x328] sm:$0xff] }
 0x1f0   : > { %3518 = vst [vmem:[%s6308_s28 + $0x4d8] sm:$0xff] %v3517_v13  ;;  %3520 = vst [vmem:[%s6308_s28 + $0x4e0] sm:$0xff] %v3519_v20  ;;  %v3539_v29 = vld [vmem:[%s3919_s24 + $0x330] sm:$0xff]  ;;  %v3541_v11 = vld [vmem:[%s3919_s24 + $0x338] sm:$0xff] }
 0x1f1   : > { %3522 = vst [vmem:[%s6308_s28 + $0x4e8] sm:$0xff] %v3521_v40  ;;  %3524 = vst [vmem:[%s6308_s28 + $0x4f0] sm:$0xff] %v3523_v22  ;;  %v3543_v33 = vld [vmem:[%s3919_s24 + $0x340] sm:$0xff]  ;;  %v3545_v41 = vld [vmem:[%s3919_s24 + $0x348] sm:$0xff] }
 0x1f2   : > { %3526 = vst [vmem:[%s6308_s28 + $0x4f8] sm:$0xff] %v3525_v49  ;;  %3528 = vst [vmem:[%s6308_s28 + $0x600] sm:$0xff] %v3527_v44  ;;  %v3547_v34 = vld [vmem:[%s3919_s24 + $0x350] sm:$0xff]  ;;  %v3549_v27 = vld [vmem:[%s3919_s24 + $0x358] sm:$0xff] }
 0x1f3   : > { %3530 = vst [vmem:[%s6308_s28 + $0x608] sm:$0xff] %v3529_v35  ;;  %3532 = vst [vmem:[%s6308_s28 + $0x610] sm:$0xff] %v3531_v50  ;;  %v3551_v45 = vld [vmem:[%s3919_s24 + $0x360] sm:$0xff]  ;;  %v3553_v52 = vld [vmem:[%s3919_s24 + $0x368] sm:$0xff] }
 0x1f4   : > { %3534 = vst [vmem:[%s6308_s28 + $0x618] sm:$0xff] %v3533_v25  ;;  %3536 = vst [vmem:[%s6308_s28 + $0x620] sm:$0xff] %v3535_v3  ;;  %v3555_v17 = vld [vmem:[%s3919_s24 + $0x370] sm:$0xff]  ;;  %v3557_v16 = vld [vmem:[%s3919_s24 + $0x378] sm:$0xff] }
 0x1f5   : > { %3538 = vst [vmem:[%s6308_s28 + $0x628] sm:$0xff] %v3537_v58  ;;  %3540 = vst [vmem:[%s6308_s28 + $0x630] sm:$0xff] %v3539_v29  ;;  %v3559_v6 = vld [vmem:[%s3919_s24 + $0x380] sm:$0xff]  ;;  %v3561_v15 = vld [vmem:[%s3919_s24 + $0x388] sm:$0xff] }
 0x1f6   : > { %3542 = vst [vmem:[%s6308_s28 + $0x638] sm:$0xff] %v3541_v11  ;;  %3544 = vst [vmem:[%s6308_s28 + $0x640] sm:$0xff] %v3543_v33  ;;  %v3563_v2 = vld [vmem:[%s3919_s24 + $0x390] sm:$0xff]  ;;  %v3565_v62 = vld [vmem:[%s3919_s24 + $0x398] sm:$0xff] }
 0x1f7   : > { %3546 = vst [vmem:[%s6308_s28 + $0x648] sm:$0xff] %v3545_v41  ;;  %3548 = vst [vmem:[%s6308_s28 + $0x650] sm:$0xff] %v3547_v34  ;;  %v3567_v7 = vld [vmem:[%s3919_s24 + $0x3a0] sm:$0xff]  ;;  %v3569_v46 = vld [vmem:[%s3919_s24 + $0x3a8] sm:$0xff] }
 0x1f8   : > { %3550 = vst [vmem:[%s6308_s28 + $0x658] sm:$0xff] %v3549_v27  ;;  %3552 = vst [vmem:[%s6308_s28 + $0x660] sm:$0xff] %v3551_v45  ;;  %v3571_v47 = vld [vmem:[%s3919_s24 + $0x3b0] sm:$0xff]  ;;  %v3573_v1 = vld [vmem:[%s3919_s24 + $0x3b8] sm:$0xff] }
 0x1f9   : > { %3554 = vst [vmem:[%s6308_s28 + $0x668] sm:$0xff] %v3553_v52  ;;  %3556 = vst [vmem:[%s6308_s28 + $0x670] sm:$0xff] %v3555_v17  ;;  %v3575_v28 = vld [vmem:[%s3919_s24 + $0x3c0] sm:$0xff]  ;;  %v3577_v24 = vld [vmem:[%s3919_s24 + $0x3c8] sm:$0xff] }
 0x1fa   : > { %3558 = vst [vmem:[%s6308_s28 + $0x678] sm:$0xff] %v3557_v16  ;;  %3560 = vst [vmem:[%s6308_s28 + $0x680] sm:$0xff] %v3559_v6  ;;  %v3579_v54 = vld [vmem:[%s3919_s24 + $0x3d0] sm:$0xff]  ;;  %v3581_v57 = vld [vmem:[%s3919_s24 + $0x3d8] sm:$0xff] }
 0x1fb   : > { %3562 = vst [vmem:[%s6308_s28 + $0x688] sm:$0xff] %v3561_v15  ;;  %3564 = vst [vmem:[%s6308_s28 + $0x690] sm:$0xff] %v3563_v2  ;;  %v3583_v4 = vld [vmem:[%s3919_s24 + $0x3e0] sm:$0xff]  ;;  %v3585_v23 = vld [vmem:[%s3919_s24 + $0x3e8] sm:$0xff] }
 0x1fc   : > { %3566 = vst [vmem:[%s6308_s28 + $0x698] sm:$0xff] %v3565_v62  ;;  %3568 = vst [vmem:[%s6308_s28 + $0x6a0] sm:$0xff] %v3567_v7  ;;  %v3587_v60 = vld [vmem:[%s3919_s24 + $0x3f0] sm:$0xff]  ;;  %v3589_v53 = vld [vmem:[%s3919_s24 + $0x3f8] sm:$0xff] }
 0x1fd   : > { %3570 = vst [vmem:[%s6308_s28 + $0x6a8] sm:$0xff] %v3569_v46  ;;  %3572 = vst [vmem:[%s6308_s28 + $0x6b0] sm:$0xff] %v3571_v47 }
 0x1fe   : > { %3574 = vst [vmem:[%s6308_s28 + $0x6b8] sm:$0xff] %v3573_v1  ;;  %3576 = vst [vmem:[%s6308_s28 + $0x6c0] sm:$0xff] %v3575_v28 }
 0x1ff   : > { %3578 = vst [vmem:[%s6308_s28 + $0x6c8] sm:$0xff] %v3577_v24  ;;  %3580 = vst [vmem:[%s6308_s28 + $0x6d0] sm:$0xff] %v3579_v54 }
 0x200   : > { %3582 = vst [vmem:[%s6308_s28 + $0x6d8] sm:$0xff] %v3581_v57  ;;  %3584 = vst [vmem:[%s6308_s28 + $0x6e0] sm:$0xff] %v3583_v4 }
 0x201   : > { %3586 = vst [vmem:[%s6308_s28 + $0x6e8] sm:$0xff] %v3585_v23  ;;  %3588 = vst [vmem:[%s6308_s28 + $0x6f0] sm:$0xff] %v3587_v60 }
 0x202   : > { %3590 = vst [vmem:[%s6308_s28 + $0x6f8] sm:$0xff] %v3589_v53 }
 0x203 PF: > { %s11_s10 = sadd.s32 1, %s3850_s10   ;;  %s6699_s6 = smov %s3838_s7 }
 0x204   : > { %p8_p9 = scmp.ge.s32.totalorder %s11_s10, 4   ;;  %s6700_s7 = smov %s3900_s16 }
 0x205   : > { %s6701_s8 = smov %s3846_s9  ;;  %s6702_s9 = smov %s6704_s12 }
 0x206   :  { %10 = sbr.rel (!%p8_p9) target bundleno = 3 (0x3), region = 95 }

</bundles_post_ra>
